<compile_context>
chip_gen: v7x
topology: tpu7x:2x2x1
jax: 0.10.0
libtpu: 0.0.40
codegen_flags: <defaults>
</compile_context>

<pallas_src>
import functools
import math

import jax
import jax.numpy as jnp
from jax.experimental import pallas as pl
from jax.experimental.pallas import tpu as pltpu


# ----------------------------------------------------------------------------
# In-kernel helpers (bf16 MXU operands, f32 accumulation / f32 epilogues)
# ----------------------------------------------------------------------------

def _mm(a, w, b=None):
    """a:(M,K) f32, w:(K,N) bf16 (host-cast), b:(1,N) f32 or None -> (M,N) f32."""
    y = jax.lax.dot_general(
        a.astype(jnp.bfloat16), w,
        (((1,), (0,)), ((), ())), preferred_element_type=jnp.float32)
    if b is not None:
        y = y + b.astype(jnp.float32)
    return y


def _layernorm(x, g, b, eps):
    mu = jnp.mean(x, axis=-1, keepdims=True)
    xc = x - mu
    var = jnp.mean(xc * xc, axis=-1, keepdims=True)
    return xc * jax.lax.rsqrt(var + eps) * g.astype(jnp.float32) + b.astype(jnp.float32)


def _attention_proj(q2, k2, v2, wo, B, Lq, Lk, n_heads):
    """Multi-head attention fused with the output projection.

    q2:(B*Lq, D) f32, k2/v2:(B*Lk, D) f32, wo:(D, Do) bf16 -> (B*Lq, Do) f32.
    Score / PV matmuls are batched over the batch dim; each head's output is
    contracted directly against its rows of `wo` and accumulated (no concat).
    """
    D = q2.shape[-1]
    dh = D // n_heads
    scale = 1.0 / math.sqrt(dh)

    # (B*Lx, D) -> (B, Lx, D): sublane-group split at multiples of 8 (cheap).
    q3 = q2.reshape(B, Lq, D).astype(jnp.bfloat16)
    k3 = k2.reshape(B, Lk, D).astype(jnp.bfloat16)
    v3 = v2.reshape(B, Lk, D).astype(jnp.bfloat16)

    proj = None
    for h in range(n_heads):                                  # static unroll
        sl = slice(h * dh, (h + 1) * dh)
        # TODO(synk): contraction of K's last dim may cost an XLU transpose on
        # v6e/v7x at large Lk; negligible at Lk <= 16.
        s = jnp.einsum('bqd,bkd->bqk', q3[:, :, sl], k3[:, :, sl],
                       preferred_element_type=jnp.float32) * scale
        m = jnp.max(s, axis=-1, keepdims=True)
        p = jnp.exp(s - m)
        p = p * pl.reciprocal(jnp.sum(p, axis=-1, keepdims=True), approx=True)
        o = jnp.einsum('bqk,bkd->bqd', p.astype(jnp.bfloat16), v3[:, :, sl],
                       preferred_element_type=jnp.float32)    # (B, Lq, dh)
        contrib = _mm(o.reshape(B * Lq, dh), wo[sl, :])       # (B*Lq, Do)
        proj = contrib if proj is None else proj + contrib
    return proj


# ----------------------------------------------------------------------------
# The single fused kernel: grid = (num_layers,), "arbitrary" (sequential carry)
# ----------------------------------------------------------------------------

def _dit_kernel(
        # prologue (constant-index) inputs -------------------------------
        xp_ref, pe_ref, pw_ref, pb_ref,           # patchify
        fr_ref, tw1_ref, tb1_ref, tw2_ref, tb2_ref,  # timestep MLP
        c_ref,                                    # conditioning tokens
        # per-layer stacked weights (block index = layer) ----------------
        ln1g_ref, ln1b_ref, wqkv_ref, bqkv_ref, wo_ref, bo_ref,
        ln2g_ref, ln2b_ref, xwq_ref, xbq_ref, xwkv_ref, xbkv_ref,
        xwo_ref, xbo_ref,
        ln3g_ref, ln3b_ref, w1_ref, b1_ref, w2_ref, b2_ref,
        # final layer (constant-index) inputs ----------------------------
        fg_ref, fb_ref, fw_ref, fwb_ref,
        # output ----------------------------------------------------------
        o_ref,
        # VMEM scratch carried across layers ------------------------------
        x_sc, c_sc,
        *, B, L, Lc, n_heads, eps):
    layer = pl.program_id(0)
    D = x_sc.shape[-1]

    # --- layer-0 prologue: patchify(+PE) and time-conditioned context -------
    @pl.when(layer == 0)
    def _prologue():
        # positional encoding add + patchify matmul (Conv2d k=p stride=p)
        xin = xp_ref[...].astype(jnp.float32) + pe_ref[...].astype(jnp.float32)
        x_sc[...] = _mm(xin, pw_ref[...], pb_ref[...])              # (B*L, D)
        # timestep MLP (one matmul for all B rows) and `c = c + temb`
        t = jax.nn.silu(_mm(fr_ref[...].astype(jnp.float32),
                            tw1_ref[...], tb1_ref[...]))
        t = _mm(t, tw2_ref[...], tb2_ref[...])                      # (B, D)
        for b in range(B):                                          # static, tiny
            c_sc[b] = c_ref[b].astype(jnp.float32) + t[b:b + 1, :]

    x = x_sc[...]                                                   # (B*L, D) f32
    cond = c_sc[...].reshape(B * Lc, D)                             # (B*Lc, D)

    # --- self-attention: LN -> fused QKV -> attn (+out-proj fused) + residual
    h = _layernorm(x, ln1g_ref[0], ln1b_ref[0], eps)
    qkv = _mm(h, wqkv_ref[0], bqkv_ref[0])                          # (B*L, 3D)
    attn = _attention_proj(qkv[:, :D], qkv[:, D:2 * D], qkv[:, 2 * D:],
                           wo_ref[0], B, L, L, n_heads)
    x = x + attn + bo_ref[0].astype(jnp.float32)

    # --- cross-attention: LN -> Q from x, fused KV from cond -> proj + residual
    h = _layernorm(x, ln2g_ref[0], ln2b_ref[0], eps)
    q = _mm(h, xwq_ref[0], xbq_ref[0])                              # (B*L, D)
    kv = _mm(cond, xwkv_ref[0], xbkv_ref[0])                        # (B*Lc, 2D)
    attn = _attention_proj(q, kv[:, :D], kv[:, D:],
                           xwo_ref[0], B, L, Lc, n_heads)
    x = x + attn + xbo_ref[0].astype(jnp.float32)

    # --- MLP: LN -> W1 -> GELU -> W2 + residual
    # TODO(synk): tanh-approx GELU; PyTorch nn.GELU defaults to exact erf GELU.
    h = _layernorm(x, ln3g_ref[0], ln3b_ref[0], eps)
    h = jax.nn.gelu(_mm(h, w1_ref[0], b1_ref[0]), approximate=True)
    x = x + _mm(h, w2_ref[0], b2_ref[0])

    x_sc[...] = x                                                   # carry to next layer

    # --- last-layer epilogue: FinalLayer = LayerNorm + Linear(D -> p*p*C)
    # TODO(synk): FinalLayer(x, c) takes `c` in the reference but its submodule
    # definition is not given; implemented as LN + Linear (c unused).
    @pl.when(layer == pl.num_programs(0) - 1)
    def _epilogue():
        hf = _layernorm(x, fg_ref[...], fb_ref[...], eps)
        o_ref[...] = _mm(hf, fw_ref[...], fwb_ref[...]).astype(o_ref.dtype)


def pallas_dit(xp, pe, freq, c, params, *, n_heads, eps=1e-5):
    """Whole DiT forward as one pallas_call.

    xp:(B*L, C*p*p) patch rows, pe:(B*L, C*p*p), freq:(B, D), c:(B, Lc, D).
    Returns (B*L, p*p*C).
    """
    BL, _ = xp.shape
    B, Lc, D = c.shape
    L = BL // B
    NL = params["wqkv"].shape[0]
    P = params["final_w"].shape[-1]

    def const_spec(arr):            # whole array, constant across the layer axis
        nd = arr.ndim
        return pl.BlockSpec(arr.shape, lambda l, _nd=nd: (0,) * _nd)

    def layer_spec(arr):            # stacked per-layer (NL, r, c) -> (1, r, c)
        return pl.BlockSpec((1,) + arr.shape[1:], lambda l: (l, 0, 0))

    head = [xp, pe, params["patch_w"], params["patch_b"],
            freq, params["time_w1"], params["time_b1"],
            params["time_w2"], params["time_b2"],
            c]
    stacked = [params["ln1_g"], params["ln1_b"], params["wqkv"], params["bqkv"],
               params["wo"], params["bo"],
               params["ln2_g"], params["ln2_b"], params["xwq"], params["xbq"],
               params["xwkv"], params["xbkv"], params["xwo"], params["xbo"],
               params["ln3_g"], params["ln3_b"], params["w1"], params["b1"],
               params["w2"], params["b2"]]
    tail = [params["final_g"], params["final_b"],
            params["final_w"], params["final_wb"]]

    inputs = head + stacked + tail
    in_specs = ([const_spec(a) for a in head]
                + [layer_spec(a) for a in stacked]
                + [const_spec(a) for a in tail])

    kernel = functools.partial(_dit_kernel, B=B, L=L, Lc=Lc,
                               n_heads=n_heads, eps=eps)

    # NOTE: at realistic batch sizes, add a leading "parallel" batch-group grid
    # axis so v7x's two TensorCores each carry half the batch through all layers.
    return pl.pallas_call(
        kernel,
        out_shape=jax.ShapeDtypeStruct((BL, P), jnp.float32),
        grid=(NL,),
        in_specs=in_specs,
        out_specs=pl.BlockSpec((BL, P), lambda l: (0, 0)),
        scratch_shapes=[
            pltpu.VMEM((BL, D), jnp.float32),     # activation carry (resident)
            pltpu.VMEM((B, Lc, D), jnp.float32),  # conditioned context (resident)
        ],
        compiler_params=pltpu.CompilerParams(
            dimension_semantics=("arbitrary",),   # sequential layer carry
            vmem_limit_bytes=64 * 1024 * 1024),   # explicit budget (<= v7x VMEM)
    )(*inputs)


# ----------------------------------------------------------------------------
# Host-side glue (pure layout / tiny scalar math; XLA fuses these)
# ----------------------------------------------------------------------------

def positional_encoding_rows(C, H, W, patch):
    """Sinusoidal PE (dim=C) over flattened HW, rearranged to patch-row layout."""
    pos = jnp.arange(H * W, dtype=jnp.float32)[:, None]                  # (HW, 1)
    idx = jnp.arange(C)
    div = jnp.exp(-(2.0 * (idx // 2).astype(jnp.float32) / C) * math.log(10000.0))
    ang = pos * div[None, :]                                             # (HW, C)
    pe = jnp.where((idx % 2 == 0)[None, :], jnp.sin(ang), jnp.cos(ang))  # (HW, C)
    pe = pe.T.reshape(C, H, W)
    Hp, Wp = H // patch, W // patch
    pe = pe.reshape(C, Hp, patch, Wp, patch).transpose(1, 3, 0, 2, 4)
    return pe.reshape(Hp * Wp, C * patch * patch).astype(jnp.float32)


def timestep_freq_embedding(t, D):
    half = D // 2
    freqs = jnp.exp(-math.log(10000.0) * jnp.arange(half, dtype=jnp.float32) / half)
    args = t.astype(jnp.float32)[:, None] * freqs[None, :]
    # TODO(synk): [cos, sin] ordering; the PyTorch TimestepEmbedding is not
    # given, some references use [sin, cos].
    return jnp.concatenate([jnp.cos(args), jnp.sin(args)], axis=-1)      # (B, D)


def dit_forward(params, x, timesteps, c, *, patch, channels, n_heads):
    B, C, H, W = x.shape
    D = c.shape[-1]
    Hp, Wp = H // patch, W // patch
    L = Hp * Wp
    Kp = C * patch * patch

    # patch rows: (B*L, C*p*p), same (c, i, j) flattening as Conv2d weights
    xp = x.reshape(B, C, Hp, patch, Wp, patch)
    xp = xp.transpose(0, 2, 4, 1, 3, 5).reshape(B * L, Kp)
    pe = jnp.tile(positional_encoding_rows(C, H, W, patch), (B, 1))      # (B*L, Kp)
    freq = timestep_freq_embedding(timesteps, D)                         # (B, D)

    out = pallas_dit(xp, pe, freq, c, params, n_heads=n_heads)           # (B*L, p*p*C)

    # rearrange 'b (h w) (p1 p2 c) -> b c (h p1) (w p2)'
    out = out.reshape(B, Hp, Wp, patch, patch, channels)
    out = out.transpose(0, 5, 1, 3, 2, 4).reshape(B, channels, H, W)
    return out


# ----------------------------------------------------------------------------
# Deterministic parameter construction (fused QKV/KV, layer-stacked, bf16 weights)
# ----------------------------------------------------------------------------

def init_params(key, *, patch, channels, num_layers, model_dim, hidden_dim):
    D, Hd, NL = model_dim, hidden_dim, num_layers
    Kp = channels * patch * patch
    P = patch * patch * channels
    wdt = jnp.bfloat16          # host-side weight dtype for MXU operands [R3]

    def nrm(k, shape, scale=0.02):
        return scale * jax.random.normal(k, shape, dtype=jnp.float32)

    ks = iter(jax.random.split(key, 32))

    params = {
        # Patchifier: Conv2d(C, D, k=p, s=p) folded to a (C*p*p, D) matmul
        # (column-major over (c, i, j), i.e. conv_w.reshape(D, -1).T).
        "patch_w": nrm(next(ks), (Kp, D)).astype(wdt),
        "patch_b": jnp.zeros((1, D), jnp.float32),
        # TimestepEmbedding MLP.
        "time_w1": nrm(next(ks), (D, D)).astype(wdt),
        "time_b1": jnp.zeros((1, D), jnp.float32),
        "time_w2": nrm(next(ks), (D, D)).astype(wdt),
        "time_b2": jnp.zeros((1, D), jnp.float32),
        # Transformer layers, stacked on a leading (num_layers,) axis.
        "ln1_g": jnp.ones((NL, 1, D), jnp.float32),
        "ln1_b": jnp.zeros((NL, 1, D), jnp.float32),
        "wqkv": nrm(next(ks), (NL, D, 3 * D)).astype(wdt),
        "bqkv": jnp.zeros((NL, 1, 3 * D), jnp.float32),
        "wo": nrm(next(ks), (NL, D, D)).astype(wdt),
        "bo": jnp.zeros((NL, 1, D), jnp.float32),
        "ln2_g": jnp.ones((NL, 1, D), jnp.float32),
        "ln2_b": jnp.zeros((NL, 1, D), jnp.float32),
        "xwq": nrm(next(ks), (NL, D, D)).astype(wdt),
        "xbq": jnp.zeros((NL, 1, D), jnp.float32),
        "xwkv": nrm(next(ks), (NL, D, 2 * D)).astype(wdt),
        "xbkv": jnp.zeros((NL, 1, 2 * D), jnp.float32),
        "xwo": nrm(next(ks), (NL, D, D)).astype(wdt),
        "xbo": jnp.zeros((NL, 1, D), jnp.float32),
        "ln3_g": jnp.ones((NL, 1, D), jnp.float32),
        "ln3_b": jnp.zeros((NL, 1, D), jnp.float32),
        "w1": nrm(next(ks), (NL, D, Hd)).astype(wdt),
        "b1": jnp.zeros((NL, 1, Hd), jnp.float32),
        "w2": nrm(next(ks), (NL, Hd, D)).astype(wdt),
        "b2": jnp.zeros((NL, 1, D), jnp.float32),
        # FinalLayer.
        "final_g": jnp.ones((1, D), jnp.float32),
        "final_b": jnp.zeros((1, D), jnp.float32),
        "final_w": nrm(next(ks), (D, P)).astype(wdt),
        "final_wb": jnp.zeros((1, P), jnp.float32),
        # embed_proj exists in the PyTorch __init__ but is unused in forward().
        "embed_proj_w": nrm(next(ks), (channels, D)).astype(wdt),
        "embed_proj_b": jnp.zeros((1, D), jnp.float32),
    }
    return params


# ----------------------------------------------------------------------------
# Main
# ----------------------------------------------------------------------------

if __name__ == "__main__":
    patch_size = 4
    channels = 4
    num_layers = 2
    model_dim = 32
    hidden_dim = 64
    n_heads = 4
    B, H, W = 2, 16, 16
    cond_len = 8

    root = jax.random.PRNGKey(0)
    k_params, k_x, k_t, k_c = jax.random.split(root, 4)

    params = init_params(k_params, patch=patch_size, channels=channels,
                         num_layers=num_layers, model_dim=model_dim,
                         hidden_dim=hidden_dim)

    x = jax.random.normal(k_x, (B, channels, H, W), dtype=jnp.float32)
    timesteps = jax.random.randint(k_t, (B,), 0, 1000).astype(jnp.int32)
    c = jax.random.normal(k_c, (B, cond_len, model_dim), dtype=jnp.float32)

    fwd = jax.jit(functools.partial(dit_forward, patch=patch_size,
                                    channels=channels, n_heads=n_heads))
    out = jax.block_until_ready(fwd(params, x, timesteps, c))

    assert out.shape == (B, channels, H, W), out.shape
    assert bool(jnp.all(jnp.isfinite(out)))
    print("KERNEL_OK")
</pallas_src>

<mosaic_0001>
module attributes {stable_mosaic.version = 11 : i64} {
  func.func @_dit_kernel(%arg0: i32, %arg1: memref<32x64xf32, #tpu.memory_space<vmem>>, %arg2: memref<32x64xf32, #tpu.memory_space<vmem>>, %arg3: memref<64x32xbf16, #tpu.memory_space<vmem>>, %arg4: memref<1x32xf32, #tpu.memory_space<vmem>>, %arg5: memref<2x32xf32, #tpu.memory_space<vmem>>, %arg6: memref<32x32xbf16, #tpu.memory_space<vmem>>, %arg7: memref<1x32xf32, #tpu.memory_space<vmem>>, %arg8: memref<32x32xbf16, #tpu.memory_space<vmem>>, %arg9: memref<1x32xf32, #tpu.memory_space<vmem>>, %arg10: memref<2x8x32xf32, #tpu.memory_space<vmem>>, %arg11: memref<1x1x32xf32, #tpu.memory_space<vmem>>, %arg12: memref<1x1x32xf32, #tpu.memory_space<vmem>>, %arg13: memref<1x32x96xbf16, #tpu.memory_space<vmem>>, %arg14: memref<1x1x96xf32, #tpu.memory_space<vmem>>, %arg15: memref<1x32x32xbf16, #tpu.memory_space<vmem>>, %arg16: memref<1x1x32xf32, #tpu.memory_space<vmem>>, %arg17: memref<1x1x32xf32, #tpu.memory_space<vmem>>, %arg18: memref<1x1x32xf32, #tpu.memory_space<vmem>>, %arg19: memref<1x32x32xbf16, #tpu.memory_space<vmem>>, %arg20: memref<1x1x32xf32, #tpu.memory_space<vmem>>, %arg21: memref<1x32x64xbf16, #tpu.memory_space<vmem>>, %arg22: memref<1x1x64xf32, #tpu.memory_space<vmem>>, %arg23: memref<1x32x32xbf16, #tpu.memory_space<vmem>>, %arg24: memref<1x1x32xf32, #tpu.memory_space<vmem>>, %arg25: memref<1x1x32xf32, #tpu.memory_space<vmem>>, %arg26: memref<1x1x32xf32, #tpu.memory_space<vmem>>, %arg27: memref<1x32x64xbf16, #tpu.memory_space<vmem>>, %arg28: memref<1x1x64xf32, #tpu.memory_space<vmem>>, %arg29: memref<1x64x32xbf16, #tpu.memory_space<vmem>>, %arg30: memref<1x1x32xf32, #tpu.memory_space<vmem>>, %arg31: memref<1x32xf32, #tpu.memory_space<vmem>>, %arg32: memref<1x32xf32, #tpu.memory_space<vmem>>, %arg33: memref<32x64xbf16, #tpu.memory_space<vmem>>, %arg34: memref<1x64xf32, #tpu.memory_space<vmem>>, %arg35: memref<32x64xf32, #tpu.memory_space<vmem>>, %arg36: memref<32x32xf32, #tpu.memory_space<vmem>>, %arg37: memref<2x8x32xf32, #tpu.memory_space<vmem>>) attributes {dimension_semantics = [#tpu.dimension_semantics<arbitrary>], iteration_bounds = array<i64: 2>, scalar_prefetch = 0 : i64, scratch_operands = 2 : i64, tpu.core_type = #tpu.core_type<tc>, window_params = [{pipeline_mode = #tpu.pipeline_mode<synchronous>, transform_indices = @transform_0, window_bounds = array<i64: 32, 64>}, {pipeline_mode = #tpu.pipeline_mode<synchronous>, transform_indices = @transform_1, window_bounds = array<i64: 32, 64>}, {pipeline_mode = #tpu.pipeline_mode<synchronous>, transform_indices = @transform_2, window_bounds = array<i64: 64, 32>}, {pipeline_mode = #tpu.pipeline_mode<synchronous>, transform_indices = @transform_3, window_bounds = array<i64: 1, 32>}, {pipeline_mode = #tpu.pipeline_mode<synchronous>, transform_indices = @transform_4, window_bounds = array<i64: 2, 32>}, {pipeline_mode = #tpu.pipeline_mode<synchronous>, transform_indices = @transform_5, window_bounds = array<i64: 32, 32>}, {pipeline_mode = #tpu.pipeline_mode<synchronous>, transform_indices = @transform_6, window_bounds = array<i64: 1, 32>}, {pipeline_mode = #tpu.pipeline_mode<synchronous>, transform_indices = @transform_7, window_bounds = array<i64: 32, 32>}, {pipeline_mode = #tpu.pipeline_mode<synchronous>, transform_indices = @transform_8, window_bounds = array<i64: 1, 32>}, {pipeline_mode = #tpu.pipeline_mode<synchronous>, transform_indices = @transform_9, window_bounds = array<i64: 2, 8, 32>}, {transform_indices = @transform_10, window_bounds = array<i64: 1, 1, 32>}, {transform_indices = @transform_11, window_bounds = array<i64: 1, 1, 32>}, {transform_indices = @transform_12, window_bounds = array<i64: 1, 32, 96>}, {transform_indices = @transform_13, window_bounds = array<i64: 1, 1, 96>}, {transform_indices = @transform_14, window_bounds = array<i64: 1, 32, 32>}, {transform_indices = @transform_15, window_bounds = array<i64: 1, 1, 32>}, {transform_indices = @transform_16, window_bounds = array<i64: 1, 1, 32>}, {transform_indices = @transform_17, window_bounds = array<i64: 1, 1, 32>}, {transform_indices = @transform_18, window_bounds = array<i64: 1, 32, 32>}, {transform_indices = @transform_19, window_bounds = array<i64: 1, 1, 32>}, {transform_indices = @transform_20, window_bounds = array<i64: 1, 32, 64>}, {transform_indices = @transform_21, window_bounds = array<i64: 1, 1, 64>}, {transform_indices = @transform_22, window_bounds = array<i64: 1, 32, 32>}, {transform_indices = @transform_23, window_bounds = array<i64: 1, 1, 32>}, {transform_indices = @transform_24, window_bounds = array<i64: 1, 1, 32>}, {transform_indices = @transform_25, window_bounds = array<i64: 1, 1, 32>}, {transform_indices = @transform_26, window_bounds = array<i64: 1, 32, 64>}, {transform_indices = @transform_27, window_bounds = array<i64: 1, 1, 64>}, {transform_indices = @transform_28, window_bounds = array<i64: 1, 64, 32>}, {transform_indices = @transform_29, window_bounds = array<i64: 1, 1, 32>}, {pipeline_mode = #tpu.pipeline_mode<synchronous>, transform_indices = @transform_30, window_bounds = array<i64: 1, 32>}, {pipeline_mode = #tpu.pipeline_mode<synchronous>, transform_indices = @transform_31, window_bounds = array<i64: 1, 32>}, {pipeline_mode = #tpu.pipeline_mode<synchronous>, transform_indices = @transform_32, window_bounds = array<i64: 32, 64>}, {pipeline_mode = #tpu.pipeline_mode<synchronous>, transform_indices = @transform_33, window_bounds = array<i64: 1, 64>}, {pipeline_mode = #tpu.pipeline_mode<synchronous>, transform_indices = @transform_34, window_bounds = array<i64: 32, 64>}]} {
    %c0_i32 = arith.constant 0 : i32
    %0 = arith.cmpi eq, %arg0, %c0_i32 : i32
    %1 = arith.extui %0 : i1 to i32
    %c0_i32_0 = arith.constant 0 : i32
    %2 = arith.cmpi ne, %1, %c0_i32_0 : i32
    scf.if %2 {
      %c0_139 = arith.constant 0 : index
      %c0_140 = arith.constant 0 : index
      %349 = vector.load %arg1[%c0_139, %c0_140] : memref<32x64xf32, #tpu.memory_space<vmem>>, vector<32x64xf32>
      %c0_141 = arith.constant 0 : index
      %c0_142 = arith.constant 0 : index
      %350 = vector.load %arg2[%c0_141, %c0_142] : memref<32x64xf32, #tpu.memory_space<vmem>>, vector<32x64xf32>
      %351 = arith.addf %349, %350 : vector<32x64xf32>
      %c0_143 = arith.constant 0 : index
      %c0_144 = arith.constant 0 : index
      %352 = vector.load %arg3[%c0_143, %c0_144] : memref<64x32xbf16, #tpu.memory_space<vmem>>, vector<64x32xbf16>
      %c0_145 = arith.constant 0 : index
      %c0_146 = arith.constant 0 : index
      %353 = vector.load %arg4[%c0_145, %c0_146] : memref<1x32xf32, #tpu.memory_space<vmem>>, vector<1x32xf32>
      %354 = arith.truncf %351 : vector<32x64xf32> to vector<32x64xbf16>
      %cst_147 = arith.constant dense<0.000000e+00> : vector<32x32xf32>
      %355 = tpu.matmul %354, %352, %cst_147 {dimension_numbers = #tpu.dot_dimension_numbers<[1], [0], [0], [1], [0, 0, 1, 1], [], []>} : vector<32x64xbf16>, vector<64x32xbf16>, vector<32x32xf32> -> vector<32x32xf32>
      %356 = vector.broadcast %353 : vector<1x32xf32> to vector<32x32xf32>
      %357 = arith.addf %355, %356 : vector<32x32xf32>
      %c0_148 = arith.constant 0 : index
      %c0_149 = arith.constant 0 : index
      %358 = vector.load %arg36[%c0_148, %c0_149] : memref<32x32xf32, #tpu.memory_space<vmem>>, vector<32x32xf32>
      tpu.vector_store %arg36[%c0_148, %c0_149], %357 {strides = array<i32>} : memref<32x32xf32, #tpu.memory_space<vmem>>, vector<32x32xf32>,
      %c0_150 = arith.constant 0 : index
      %c0_151 = arith.constant 0 : index
      %359 = vector.load %arg5[%c0_150, %c0_151] : memref<2x32xf32, #tpu.memory_space<vmem>>, vector<2x32xf32>
      %c0_152 = arith.constant 0 : index
      %c0_153 = arith.constant 0 : index
      %360 = vector.load %arg6[%c0_152, %c0_153] : memref<32x32xbf16, #tpu.memory_space<vmem>>, vector<32x32xbf16>
      %c0_154 = arith.constant 0 : index
      %c0_155 = arith.constant 0 : index
      %361 = vector.load %arg7[%c0_154, %c0_155] : memref<1x32xf32, #tpu.memory_space<vmem>>, vector<1x32xf32>
      %362 = arith.truncf %359 : vector<2x32xf32> to vector<2x32xbf16>
      %cst_156 = arith.constant dense<0.000000e+00> : vector<2x32xf32>
      %363 = tpu.matmul %362, %360, %cst_156 {dimension_numbers = #tpu.dot_dimension_numbers<[1], [0], [0], [1], [0, 0, 1, 1], [], []>} : vector<2x32xbf16>, vector<32x32xbf16>, vector<2x32xf32> -> vector<2x32xf32>
      %364 = vector.broadcast %361 : vector<1x32xf32> to vector<2x32xf32>
      %365 = arith.addf %363, %364 : vector<2x32xf32>
      %366 = arith.negf %365 : vector<2x32xf32>
      %367 = math.exp %366 : vector<2x32xf32>
      %cst_157 = arith.constant 1.000000e+00 : f32
      %368 = vector.broadcast %cst_157 : f32 to vector<2x32xf32>
      %369 = arith.addf %368, %367 : vector<2x32xf32>
      %370 = arith.divf %368, %369 : vector<2x32xf32>
      %371 = arith.mulf %365, %370 : vector<2x32xf32>
      %c0_158 = arith.constant 0 : index
      %c0_159 = arith.constant 0 : index
      %372 = vector.load %arg8[%c0_158, %c0_159] : memref<32x32xbf16, #tpu.memory_space<vmem>>, vector<32x32xbf16>
      %c0_160 = arith.constant 0 : index
      %c0_161 = arith.constant 0 : index
      %373 = vector.load %arg9[%c0_160, %c0_161] : memref<1x32xf32, #tpu.memory_space<vmem>>, vector<1x32xf32>
      %374 = arith.truncf %371 : vector<2x32xf32> to vector<2x32xbf16>
      %cst_162 = arith.constant dense<0.000000e+00> : vector<2x32xf32>
      %375 = tpu.matmul %374, %372, %cst_162 {dimension_numbers = #tpu.dot_dimension_numbers<[1], [0], [0], [1], [0, 0, 1, 1], [], []>} : vector<2x32xbf16>, vector<32x32xbf16>, vector<2x32xf32> -> vector<2x32xf32>
      %376 = vector.broadcast %373 : vector<1x32xf32> to vector<2x32xf32>
      %377 = arith.addf %375, %376 : vector<2x32xf32>
      %c0_163 = arith.constant 0 : index
      %c0_164 = arith.constant 0 : index
      %c0_165 = arith.constant 0 : index
      %378 = vector.load %arg10[%c0_163, %c0_164, %c0_165] : memref<2x8x32xf32, #tpu.memory_space<vmem>>, vector<1x8x32xf32>
      %379 = vector.shape_cast %378 : vector<1x8x32xf32> to vector<8x32xf32>
      %380 = vector.extract_strided_slice %377 {offsets = [0, 0], sizes = [1, 32], strides = [1, 1]} : vector<2x32xf32> to vector<1x32xf32>
      %381 = vector.broadcast %380 : vector<1x32xf32> to vector<8x32xf32>
      %382 = arith.addf %379, %381 : vector<8x32xf32>
      %c0_166 = arith.constant 0 : index
      %c0_167 = arith.constant 0 : index
      %c0_168 = arith.constant 0 : index
      %383 = vector.load %arg37[%c0_166, %c0_167, %c0_168] : memref<2x8x32xf32, #tpu.memory_space<vmem>>, vector<1x8x32xf32>
      %384 = vector.shape_cast %383 : vector<1x8x32xf32> to vector<8x32xf32>
      %385 = vector.shape_cast %382 : vector<8x32xf32> to vector<1x8x32xf32>
      tpu.vector_store %arg37[%c0_166, %c0_167, %c0_168], %385 {strides = array<i32>} : memref<2x8x32xf32, #tpu.memory_space<vmem>>, vector<1x8x32xf32>,
      %c1 = arith.constant 1 : index
      %c0_169 = arith.constant 0 : index
      %c0_170 = arith.constant 0 : index
      %386 = vector.load %arg10[%c1, %c0_169, %c0_170] : memref<2x8x32xf32, #tpu.memory_space<vmem>>, vector<1x8x32xf32>
      %387 = vector.shape_cast %386 : vector<1x8x32xf32> to vector<8x32xf32>
      %388 = vector.extract_strided_slice %377 {offsets = [1, 0], sizes = [1, 32], strides = [1, 1]} : vector<2x32xf32> to vector<1x32xf32>
      %389 = vector.broadcast %388 : vector<1x32xf32> to vector<8x32xf32>
      %390 = arith.addf %387, %389 : vector<8x32xf32>
      %c1_171 = arith.constant 1 : index
      %c0_172 = arith.constant 0 : index
      %c0_173 = arith.constant 0 : index
      %391 = vector.load %arg37[%c1_171, %c0_172, %c0_173] : memref<2x8x32xf32, #tpu.memory_space<vmem>>, vector<1x8x32xf32>
      %392 = vector.shape_cast %391 : vector<1x8x32xf32> to vector<8x32xf32>
      %393 = vector.shape_cast %390 : vector<8x32xf32> to vector<1x8x32xf32>
      tpu.vector_store %arg37[%c1_171, %c0_172, %c0_173], %393 {strides = array<i32>} : memref<2x8x32xf32, #tpu.memory_space<vmem>>, vector<1x8x32xf32>,
    } else {
    }
    %c0 = arith.constant 0 : index
    %c0_1 = arith.constant 0 : index
    %3 = vector.load %arg36[%c0, %c0_1] : memref<32x32xf32, #tpu.memory_space<vmem>>, vector<32x32xf32>
    %c0_2 = arith.constant 0 : index
    %c0_3 = arith.constant 0 : index
    %c0_4 = arith.constant 0 : index
    %4 = vector.load %arg37[%c0_2, %c0_3, %c0_4] : memref<2x8x32xf32, #tpu.memory_space<vmem>>, vector<2x8x32xf32>
    %5 = vector.shape_cast %4 : vector<2x8x32xf32> to vector<16x32xf32>
    %c0_5 = arith.constant 0 : index
    %c0_6 = arith.constant 0 : index
    %c0_7 = arith.constant 0 : index
    %6 = vector.load %arg11[%c0_5, %c0_6, %c0_7] : memref<1x1x32xf32, #tpu.memory_space<vmem>>, vector<1x1x32xf32>
    %7 = vector.shape_cast %6 : vector<1x1x32xf32> to vector<1x32xf32>
    %c0_8 = arith.constant 0 : index
    %c0_9 = arith.constant 0 : index
    %c0_10 = arith.constant 0 : index
    %8 = vector.load %arg12[%c0_8, %c0_9, %c0_10] : memref<1x1x32xf32, #tpu.memory_space<vmem>>, vector<1x1x32xf32>
    %9 = vector.shape_cast %8 : vector<1x1x32xf32> to vector<1x32xf32>
    %cst = arith.constant dense<0.000000e+00> : vector<32xf32>
    %10 = vector.multi_reduction <add>, %3, %cst [1] : vector<32x32xf32> to vector<32xf32>
    %11 = vector.shape_cast %10 : vector<32xf32> to vector<32x1xf32>
    %cst_11 = arith.constant 3.200000e+01 : f32
    %12 = vector.broadcast %cst_11 : f32 to vector<32x1xf32>
    %13 = arith.divf %11, %12 : vector<32x1xf32>
    %14 = vector.broadcast %13 : vector<32x1xf32> to vector<32x32xf32>
    %15 = arith.subf %3, %14 : vector<32x32xf32>
    %16 = arith.mulf %15, %15 : vector<32x32xf32>
    %cst_12 = arith.constant dense<0.000000e+00> : vector<32xf32>
    %17 = vector.multi_reduction <add>, %16, %cst_12 [1] : vector<32x32xf32> to vector<32xf32>
    %18 = vector.shape_cast %17 : vector<32xf32> to vector<32x1xf32>
    %cst_13 = arith.constant 3.200000e+01 : f32
    %19 = vector.broadcast %cst_13 : f32 to vector<32x1xf32>
    %20 = arith.divf %18, %19 : vector<32x1xf32>
    %cst_14 = arith.constant 9.99999974E-6 : f32
    %21 = vector.broadcast %cst_14 : f32 to vector<32x1xf32>
    %22 = arith.addf %20, %21 : vector<32x1xf32>
    %23 = math.rsqrt %22 : vector<32x1xf32>
    %24 = vector.broadcast %23 : vector<32x1xf32> to vector<32x32xf32>
    %25 = arith.mulf %15, %24 : vector<32x32xf32>
    %26 = vector.broadcast %7 : vector<1x32xf32> to vector<32x32xf32>
    %27 = arith.mulf %25, %26 : vector<32x32xf32>
    %28 = vector.broadcast %9 : vector<1x32xf32> to vector<32x32xf32>
    %29 = arith.addf %27, %28 : vector<32x32xf32>
    %c0_15 = arith.constant 0 : index
    %c0_16 = arith.constant 0 : index
    %c0_17 = arith.constant 0 : index
    %30 = vector.load %arg13[%c0_15, %c0_16, %c0_17] : memref<1x32x96xbf16, #tpu.memory_space<vmem>>, vector<1x32x96xbf16>
    %31 = vector.shape_cast %30 : vector<1x32x96xbf16> to vector<32x96xbf16>
    %c0_18 = arith.constant 0 : index
    %c0_19 = arith.constant 0 : index
    %c0_20 = arith.constant 0 : index
    %32 = vector.load %arg14[%c0_18, %c0_19, %c0_20] : memref<1x1x96xf32, #tpu.memory_space<vmem>>, vector<1x1x96xf32>
    %33 = vector.shape_cast %32 : vector<1x1x96xf32> to vector<1x96xf32>
    %34 = arith.truncf %29 : vector<32x32xf32> to vector<32x32xbf16>
    %cst_21 = arith.constant dense<0.000000e+00> : vector<32x96xf32>
    %35 = tpu.matmul %34, %31, %cst_21 {dimension_numbers = #tpu.dot_dimension_numbers<[1], [0], [0], [1], [0, 0, 1, 1], [], []>} : vector<32x32xbf16>, vector<32x96xbf16>, vector<32x96xf32> -> vector<32x96xf32>
    %36 = vector.broadcast %33 : vector<1x96xf32> to vector<32x96xf32>
    %37 = arith.addf %35, %36 : vector<32x96xf32>
    %38 = vector.extract_strided_slice %37 {offsets = [0, 0], sizes = [32, 32], strides = [1, 1]} : vector<32x96xf32> to vector<32x32xf32>
    %39 = vector.extract_strided_slice %37 {offsets = [0, 32], sizes = [32, 32], strides = [1, 1]} : vector<32x96xf32> to vector<32x32xf32>
    %40 = vector.extract_strided_slice %37 {offsets = [0, 64], sizes = [32, 32], strides = [1, 1]} : vector<32x96xf32> to vector<32x32xf32>
    %c0_22 = arith.constant 0 : index
    %c0_23 = arith.constant 0 : index
    %c0_24 = arith.constant 0 : index
    %41 = vector.load %arg15[%c0_22, %c0_23, %c0_24] : memref<1x32x32xbf16, #tpu.memory_space<vmem>>, vector<1x32x32xbf16>
    %42 = vector.shape_cast %41 : vector<1x32x32xbf16> to vector<32x32xbf16>
    %43 = vector.shape_cast %38 : vector<32x32xf32> to vector<2x16x32xf32>
    %44 = arith.truncf %43 : vector<2x16x32xf32> to vector<2x16x32xbf16>
    %45 = vector.shape_cast %39 : vector<32x32xf32> to vector<2x16x32xf32>
    %46 = arith.truncf %45 : vector<2x16x32xf32> to vector<2x16x32xbf16>
    %47 = vector.shape_cast %40 : vector<32x32xf32> to vector<2x16x32xf32>
    %48 = arith.truncf %47 : vector<2x16x32xf32> to vector<2x16x32xbf16>
    %49 = vector.extract_strided_slice %44 {offsets = [0, 0, 0], sizes = [2, 16, 8], strides = [1, 1, 1]} : vector<2x16x32xbf16> to vector<2x16x8xbf16>
    %50 = vector.extract_strided_slice %46 {offsets = [0, 0, 0], sizes = [2, 16, 8], strides = [1, 1, 1]} : vector<2x16x32xbf16> to vector<2x16x8xbf16>
    "tpu.trace_start"() <{level = 10 : i32, message = "bqd,bkd->bqk"}> : () -> ()
    %cst_25 = arith.constant dense<0.000000e+00> : vector<2x16x16xf32>
    %51 = tpu.matmul %49, %50, %cst_25 {dimension_numbers = #tpu.dot_dimension_numbers<[2], [2], [1], [1], [0, 0, 0, 1, 1, 1], [0], [0]>} : vector<2x16x8xbf16>, vector<2x16x8xbf16>, vector<2x16x16xf32> -> vector<2x16x16xf32>
    "tpu.trace_stop"() : () -> ()
    %cst_26 = arith.constant 0.353553385 : f32
    %52 = vector.broadcast %cst_26 : f32 to vector<2x16x16xf32>
    %53 = arith.mulf %51, %52 : vector<2x16x16xf32>
    %cst_27 = arith.constant dense<0xFF800000> : vector<2x16xf32>
    %54 = vector.multi_reduction <maximumf>, %53, %cst_27 [2] : vector<2x16x16xf32> to vector<2x16xf32>
    %55 = vector.shape_cast %54 : vector<2x16xf32> to vector<2x16x1xf32>
    %56 = vector.broadcast %55 : vector<2x16x1xf32> to vector<2x16x16xf32>
    %57 = arith.subf %53, %56 : vector<2x16x16xf32>
    %58 = math.exp %57 : vector<2x16x16xf32>
    %cst_28 = arith.constant dense<0.000000e+00> : vector<2x16xf32>
    %59 = vector.multi_reduction <add>, %58, %cst_28 [2] : vector<2x16x16xf32> to vector<2x16xf32>
    %60 = vector.shape_cast %59 : vector<2x16xf32> to vector<2x16x1xf32>
    %61 = tpu.reciprocal %60 {approx = true} : vector<2x16x1xf32> -> vector<2x16x1xf32>
    %62 = vector.broadcast %61 : vector<2x16x1xf32> to vector<2x16x16xf32>
    %63 = arith.mulf %58, %62 : vector<2x16x16xf32>
    %64 = arith.truncf %63 : vector<2x16x16xf32> to vector<2x16x16xbf16>
    %65 = vector.extract_strided_slice %48 {offsets = [0, 0, 0], sizes = [2, 16, 8], strides = [1, 1, 1]} : vector<2x16x32xbf16> to vector<2x16x8xbf16>
    "tpu.trace_start"() <{level = 10 : i32, message = "bqk,bkd->bqd"}> : () -> ()
    %cst_29 = arith.constant dense<0.000000e+00> : vector<2x16x8xf32>
    %66 = tpu.matmul %64, %65, %cst_29 {dimension_numbers = #tpu.dot_dimension_numbers<[2], [1], [1], [2], [0, 0, 0, 1, 1, 2], [0], [0]>} : vector<2x16x16xbf16>, vector<2x16x8xbf16>, vector<2x16x8xf32> -> vector<2x16x8xf32>
    "tpu.trace_stop"() : () -> ()
    %67 = vector.shape_cast %66 : vector<2x16x8xf32> to vector<32x8xf32>
    %68 = vector.extract_strided_slice %42 {offsets = [0, 0], sizes = [8, 32], strides = [1, 1]} : vector<32x32xbf16> to vector<8x32xbf16>
    %69 = arith.truncf %67 : vector<32x8xf32> to vector<32x8xbf16>
    %cst_30 = arith.constant dense<0.000000e+00> : vector<32x32xf32>
    %70 = tpu.matmul %69, %68, %cst_30 {dimension_numbers = #tpu.dot_dimension_numbers<[1], [0], [0], [1], [0, 0, 1, 1], [], []>} : vector<32x8xbf16>, vector<8x32xbf16>, vector<32x32xf32> -> vector<32x32xf32>
    %71 = vector.extract_strided_slice %44 {offsets = [0, 0, 8], sizes = [2, 16, 8], strides = [1, 1, 1]} : vector<2x16x32xbf16> to vector<2x16x8xbf16>
    %72 = vector.extract_strided_slice %46 {offsets = [0, 0, 8], sizes = [2, 16, 8], strides = [1, 1, 1]} : vector<2x16x32xbf16> to vector<2x16x8xbf16>
    "tpu.trace_start"() <{level = 10 : i32, message = "bqd,bkd->bqk"}> : () -> ()
    %cst_31 = arith.constant dense<0.000000e+00> : vector<2x16x16xf32>
    %73 = tpu.matmul %71, %72, %cst_31 {dimension_numbers = #tpu.dot_dimension_numbers<[2], [2], [1], [1], [0, 0, 0, 1, 1, 1], [0], [0]>} : vector<2x16x8xbf16>, vector<2x16x8xbf16>, vector<2x16x16xf32> -> vector<2x16x16xf32>
    "tpu.trace_stop"() : () -> ()
    %cst_32 = arith.constant 0.353553385 : f32
    %74 = vector.broadcast %cst_32 : f32 to vector<2x16x16xf32>
    %75 = arith.mulf %73, %74 : vector<2x16x16xf32>
    %cst_33 = arith.constant dense<0xFF800000> : vector<2x16xf32>
    %76 = vector.multi_reduction <maximumf>, %75, %cst_33 [2] : vector<2x16x16xf32> to vector<2x16xf32>
    %77 = vector.shape_cast %76 : vector<2x16xf32> to vector<2x16x1xf32>
    %78 = vector.broadcast %77 : vector<2x16x1xf32> to vector<2x16x16xf32>
    %79 = arith.subf %75, %78 : vector<2x16x16xf32>
    %80 = math.exp %79 : vector<2x16x16xf32>
    %cst_34 = arith.constant dense<0.000000e+00> : vector<2x16xf32>
    %81 = vector.multi_reduction <add>, %80, %cst_34 [2] : vector<2x16x16xf32> to vector<2x16xf32>
    %82 = vector.shape_cast %81 : vector<2x16xf32> to vector<2x16x1xf32>
    %83 = tpu.reciprocal %82 {approx = true} : vector<2x16x1xf32> -> vector<2x16x1xf32>
    %84 = vector.broadcast %83 : vector<2x16x1xf32> to vector<2x16x16xf32>
    %85 = arith.mulf %80, %84 : vector<2x16x16xf32>
    %86 = arith.truncf %85 : vector<2x16x16xf32> to vector<2x16x16xbf16>
    %87 = vector.extract_strided_slice %48 {offsets = [0, 0, 8], sizes = [2, 16, 8], strides = [1, 1, 1]} : vector<2x16x32xbf16> to vector<2x16x8xbf16>
    "tpu.trace_start"() <{level = 10 : i32, message = "bqk,bkd->bqd"}> : () -> ()
    %cst_35 = arith.constant dense<0.000000e+00> : vector<2x16x8xf32>
    %88 = tpu.matmul %86, %87, %cst_35 {dimension_numbers = #tpu.dot_dimension_numbers<[2], [1], [1], [2], [0, 0, 0, 1, 1, 2], [0], [0]>} : vector<2x16x16xbf16>, vector<2x16x8xbf16>, vector<2x16x8xf32> -> vector<2x16x8xf32>
    "tpu.trace_stop"() : () -> ()
    %89 = vector.shape_cast %88 : vector<2x16x8xf32> to vector<32x8xf32>
    %90 = vector.extract_strided_slice %42 {offsets = [8, 0], sizes = [8, 32], strides = [1, 1]} : vector<32x32xbf16> to vector<8x32xbf16>
    %91 = arith.truncf %89 : vector<32x8xf32> to vector<32x8xbf16>
    %cst_36 = arith.constant dense<0.000000e+00> : vector<32x32xf32>
    %92 = tpu.matmul %91, %90, %cst_36 {dimension_numbers = #tpu.dot_dimension_numbers<[1], [0], [0], [1], [0, 0, 1, 1], [], []>} : vector<32x8xbf16>, vector<8x32xbf16>, vector<32x32xf32> -> vector<32x32xf32>
    %93 = arith.addf %70, %92 : vector<32x32xf32>
    %94 = vector.extract_strided_slice %44 {offsets = [0, 0, 16], sizes = [2, 16, 8], strides = [1, 1, 1]} : vector<2x16x32xbf16> to vector<2x16x8xbf16>
    %95 = vector.extract_strided_slice %46 {offsets = [0, 0, 16], sizes = [2, 16, 8], strides = [1, 1, 1]} : vector<2x16x32xbf16> to vector<2x16x8xbf16>
    "tpu.trace_start"() <{level = 10 : i32, message = "bqd,bkd->bqk"}> : () -> ()
    %cst_37 = arith.constant dense<0.000000e+00> : vector<2x16x16xf32>
    %96 = tpu.matmul %94, %95, %cst_37 {dimension_numbers = #tpu.dot_dimension_numbers<[2], [2], [1], [1], [0, 0, 0, 1, 1, 1], [0], [0]>} : vector<2x16x8xbf16>, vector<2x16x8xbf16>, vector<2x16x16xf32> -> vector<2x16x16xf32>
    "tpu.trace_stop"() : () -> ()
    %cst_38 = arith.constant 0.353553385 : f32
    %97 = vector.broadcast %cst_38 : f32 to vector<2x16x16xf32>
    %98 = arith.mulf %96, %97 : vector<2x16x16xf32>
    %cst_39 = arith.constant dense<0xFF800000> : vector<2x16xf32>
    %99 = vector.multi_reduction <maximumf>, %98, %cst_39 [2] : vector<2x16x16xf32> to vector<2x16xf32>
    %100 = vector.shape_cast %99 : vector<2x16xf32> to vector<2x16x1xf32>
    %101 = vector.broadcast %100 : vector<2x16x1xf32> to vector<2x16x16xf32>
    %102 = arith.subf %98, %101 : vector<2x16x16xf32>
    %103 = math.exp %102 : vector<2x16x16xf32>
    %cst_40 = arith.constant dense<0.000000e+00> : vector<2x16xf32>
    %104 = vector.multi_reduction <add>, %103, %cst_40 [2] : vector<2x16x16xf32> to vector<2x16xf32>
    %105 = vector.shape_cast %104 : vector<2x16xf32> to vector<2x16x1xf32>
    %106 = tpu.reciprocal %105 {approx = true} : vector<2x16x1xf32> -> vector<2x16x1xf32>
    %107 = vector.broadcast %106 : vector<2x16x1xf32> to vector<2x16x16xf32>
    %108 = arith.mulf %103, %107 : vector<2x16x16xf32>
    %109 = arith.truncf %108 : vector<2x16x16xf32> to vector<2x16x16xbf16>
    %110 = vector.extract_strided_slice %48 {offsets = [0, 0, 16], sizes = [2, 16, 8], strides = [1, 1, 1]} : vector<2x16x32xbf16> to vector<2x16x8xbf16>
    "tpu.trace_start"() <{level = 10 : i32, message = "bqk,bkd->bqd"}> : () -> ()
    %cst_41 = arith.constant dense<0.000000e+00> : vector<2x16x8xf32>
    %111 = tpu.matmul %109, %110, %cst_41 {dimension_numbers = #tpu.dot_dimension_numbers<[2], [1], [1], [2], [0, 0, 0, 1, 1, 2], [0], [0]>} : vector<2x16x16xbf16>, vector<2x16x8xbf16>, vector<2x16x8xf32> -> vector<2x16x8xf32>
    "tpu.trace_stop"() : () -> ()
    %112 = vector.shape_cast %111 : vector<2x16x8xf32> to vector<32x8xf32>
    %113 = vector.extract_strided_slice %42 {offsets = [16, 0], sizes = [8, 32], strides = [1, 1]} : vector<32x32xbf16> to vector<8x32xbf16>
    %114 = arith.truncf %112 : vector<32x8xf32> to vector<32x8xbf16>
    %cst_42 = arith.constant dense<0.000000e+00> : vector<32x32xf32>
    %115 = tpu.matmul %114, %113, %cst_42 {dimension_numbers = #tpu.dot_dimension_numbers<[1], [0], [0], [1], [0, 0, 1, 1], [], []>} : vector<32x8xbf16>, vector<8x32xbf16>, vector<32x32xf32> -> vector<32x32xf32>
    %116 = arith.addf %93, %115 : vector<32x32xf32>
    %117 = vector.extract_strided_slice %44 {offsets = [0, 0, 24], sizes = [2, 16, 8], strides = [1, 1, 1]} : vector<2x16x32xbf16> to vector<2x16x8xbf16>
    %118 = vector.extract_strided_slice %46 {offsets = [0, 0, 24], sizes = [2, 16, 8], strides = [1, 1, 1]} : vector<2x16x32xbf16> to vector<2x16x8xbf16>
    "tpu.trace_start"() <{level = 10 : i32, message = "bqd,bkd->bqk"}> : () -> ()
    %cst_43 = arith.constant dense<0.000000e+00> : vector<2x16x16xf32>
    %119 = tpu.matmul %117, %118, %cst_43 {dimension_numbers = #tpu.dot_dimension_numbers<[2], [2], [1], [1], [0, 0, 0, 1, 1, 1], [0], [0]>} : vector<2x16x8xbf16>, vector<2x16x8xbf16>, vector<2x16x16xf32> -> vector<2x16x16xf32>
    "tpu.trace_stop"() : () -> ()
    %cst_44 = arith.constant 0.353553385 : f32
    %120 = vector.broadcast %cst_44 : f32 to vector<2x16x16xf32>
    %121 = arith.mulf %119, %120 : vector<2x16x16xf32>
    %cst_45 = arith.constant dense<0xFF800000> : vector<2x16xf32>
    %122 = vector.multi_reduction <maximumf>, %121, %cst_45 [2] : vector<2x16x16xf32> to vector<2x16xf32>
    %123 = vector.shape_cast %122 : vector<2x16xf32> to vector<2x16x1xf32>
    %124 = vector.broadcast %123 : vector<2x16x1xf32> to vector<2x16x16xf32>
    %125 = arith.subf %121, %124 : vector<2x16x16xf32>
    %126 = math.exp %125 : vector<2x16x16xf32>
    %cst_46 = arith.constant dense<0.000000e+00> : vector<2x16xf32>
    %127 = vector.multi_reduction <add>, %126, %cst_46 [2] : vector<2x16x16xf32> to vector<2x16xf32>
    %128 = vector.shape_cast %127 : vector<2x16xf32> to vector<2x16x1xf32>
    %129 = tpu.reciprocal %128 {approx = true} : vector<2x16x1xf32> -> vector<2x16x1xf32>
    %130 = vector.broadcast %129 : vector<2x16x1xf32> to vector<2x16x16xf32>
    %131 = arith.mulf %126, %130 : vector<2x16x16xf32>
    %132 = arith.truncf %131 : vector<2x16x16xf32> to vector<2x16x16xbf16>
    %133 = vector.extract_strided_slice %48 {offsets = [0, 0, 24], sizes = [2, 16, 8], strides = [1, 1, 1]} : vector<2x16x32xbf16> to vector<2x16x8xbf16>
    "tpu.trace_start"() <{level = 10 : i32, message = "bqk,bkd->bqd"}> : () -> ()
    %cst_47 = arith.constant dense<0.000000e+00> : vector<2x16x8xf32>
    %134 = tpu.matmul %132, %133, %cst_47 {dimension_numbers = #tpu.dot_dimension_numbers<[2], [1], [1], [2], [0, 0, 0, 1, 1, 2], [0], [0]>} : vector<2x16x16xbf16>, vector<2x16x8xbf16>, vector<2x16x8xf32> -> vector<2x16x8xf32>
    "tpu.trace_stop"() : () -> ()
    %135 = vector.shape_cast %134 : vector<2x16x8xf32> to vector<32x8xf32>
    %136 = vector.extract_strided_slice %42 {offsets = [24, 0], sizes = [8, 32], strides = [1, 1]} : vector<32x32xbf16> to vector<8x32xbf16>
    %137 = arith.truncf %135 : vector<32x8xf32> to vector<32x8xbf16>
    %cst_48 = arith.constant dense<0.000000e+00> : vector<32x32xf32>
    %138 = tpu.matmul %137, %136, %cst_48 {dimension_numbers = #tpu.dot_dimension_numbers<[1], [0], [0], [1], [0, 0, 1, 1], [], []>} : vector<32x8xbf16>, vector<8x32xbf16>, vector<32x32xf32> -> vector<32x32xf32>
    %139 = arith.addf %116, %138 : vector<32x32xf32>
    %140 = arith.addf %3, %139 : vector<32x32xf32>
    %c0_49 = arith.constant 0 : index
    %c0_50 = arith.constant 0 : index
    %c0_51 = arith.constant 0 : index
    %141 = vector.load %arg16[%c0_49, %c0_50, %c0_51] : memref<1x1x32xf32, #tpu.memory_space<vmem>>, vector<1x1x32xf32>
    %142 = vector.shape_cast %141 : vector<1x1x32xf32> to vector<1x32xf32>
    %143 = vector.broadcast %142 : vector<1x32xf32> to vector<32x32xf32>
    %144 = arith.addf %140, %143 : vector<32x32xf32>
    %c0_52 = arith.constant 0 : index
    %c0_53 = arith.constant 0 : index
    %c0_54 = arith.constant 0 : index
    %145 = vector.load %arg17[%c0_52, %c0_53, %c0_54] : memref<1x1x32xf32, #tpu.memory_space<vmem>>, vector<1x1x32xf32>
    %146 = vector.shape_cast %145 : vector<1x1x32xf32> to vector<1x32xf32>
    %c0_55 = arith.constant 0 : index
    %c0_56 = arith.constant 0 : index
    %c0_57 = arith.constant 0 : index
    %147 = vector.load %arg18[%c0_55, %c0_56, %c0_57] : memref<1x1x32xf32, #tpu.memory_space<vmem>>, vector<1x1x32xf32>
    %148 = vector.shape_cast %147 : vector<1x1x32xf32> to vector<1x32xf32>
    %cst_58 = arith.constant dense<0.000000e+00> : vector<32xf32>
    %149 = vector.multi_reduction <add>, %144, %cst_58 [1] : vector<32x32xf32> to vector<32xf32>
    %150 = vector.shape_cast %149 : vector<32xf32> to vector<32x1xf32>
    %cst_59 = arith.constant 3.200000e+01 : f32
    %151 = vector.broadcast %cst_59 : f32 to vector<32x1xf32>
    %152 = arith.divf %150, %151 : vector<32x1xf32>
    %153 = vector.broadcast %152 : vector<32x1xf32> to vector<32x32xf32>
    %154 = arith.subf %144, %153 : vector<32x32xf32>
    %155 = arith.mulf %154, %154 : vector<32x32xf32>
    %cst_60 = arith.constant dense<0.000000e+00> : vector<32xf32>
    %156 = vector.multi_reduction <add>, %155, %cst_60 [1] : vector<32x32xf32> to vector<32xf32>
    %157 = vector.shape_cast %156 : vector<32xf32> to vector<32x1xf32>
    %cst_61 = arith.constant 3.200000e+01 : f32
    %158 = vector.broadcast %cst_61 : f32 to vector<32x1xf32>
    %159 = arith.divf %157, %158 : vector<32x1xf32>
    %cst_62 = arith.constant 9.99999974E-6 : f32
    %160 = vector.broadcast %cst_62 : f32 to vector<32x1xf32>
    %161 = arith.addf %159, %160 : vector<32x1xf32>
    %162 = math.rsqrt %161 : vector<32x1xf32>
    %163 = vector.broadcast %162 : vector<32x1xf32> to vector<32x32xf32>
    %164 = arith.mulf %154, %163 : vector<32x32xf32>
    %165 = vector.broadcast %146 : vector<1x32xf32> to vector<32x32xf32>
    %166 = arith.mulf %164, %165 : vector<32x32xf32>
    %167 = vector.broadcast %148 : vector<1x32xf32> to vector<32x32xf32>
    %168 = arith.addf %166, %167 : vector<32x32xf32>
    %c0_63 = arith.constant 0 : index
    %c0_64 = arith.constant 0 : index
    %c0_65 = arith.constant 0 : index
    %169 = vector.load %arg19[%c0_63, %c0_64, %c0_65] : memref<1x32x32xbf16, #tpu.memory_space<vmem>>, vector<1x32x32xbf16>
    %170 = vector.shape_cast %169 : vector<1x32x32xbf16> to vector<32x32xbf16>
    %c0_66 = arith.constant 0 : index
    %c0_67 = arith.constant 0 : index
    %c0_68 = arith.constant 0 : index
    %171 = vector.load %arg20[%c0_66, %c0_67, %c0_68] : memref<1x1x32xf32, #tpu.memory_space<vmem>>, vector<1x1x32xf32>
    %172 = vector.shape_cast %171 : vector<1x1x32xf32> to vector<1x32xf32>
    %173 = arith.truncf %168 : vector<32x32xf32> to vector<32x32xbf16>
    %cst_69 = arith.constant dense<0.000000e+00> : vector<32x32xf32>
    %174 = tpu.matmul %173, %170, %cst_69 {dimension_numbers = #tpu.dot_dimension_numbers<[1], [0], [0], [1], [0, 0, 1, 1], [], []>} : vector<32x32xbf16>, vector<32x32xbf16>, vector<32x32xf32> -> vector<32x32xf32>
    %175 = vector.broadcast %172 : vector<1x32xf32> to vector<32x32xf32>
    %176 = arith.addf %174, %175 : vector<32x32xf32>
    %c0_70 = arith.constant 0 : index
    %c0_71 = arith.constant 0 : index
    %c0_72 = arith.constant 0 : index
    %177 = vector.load %arg21[%c0_70, %c0_71, %c0_72] : memref<1x32x64xbf16, #tpu.memory_space<vmem>>, vector<1x32x64xbf16>
    %178 = vector.shape_cast %177 : vector<1x32x64xbf16> to vector<32x64xbf16>
    %c0_73 = arith.constant 0 : index
    %c0_74 = arith.constant 0 : index
    %c0_75 = arith.constant 0 : index
    %179 = vector.load %arg22[%c0_73, %c0_74, %c0_75] : memref<1x1x64xf32, #tpu.memory_space<vmem>>, vector<1x1x64xf32>
    %180 = vector.shape_cast %179 : vector<1x1x64xf32> to vector<1x64xf32>
    %181 = arith.truncf %5 : vector<16x32xf32> to vector<16x32xbf16>
    %cst_76 = arith.constant dense<0.000000e+00> : vector<16x64xf32>
    %182 = tpu.matmul %181, %178, %cst_76 {dimension_numbers = #tpu.dot_dimension_numbers<[1], [0], [0], [1], [0, 0, 1, 1], [], []>} : vector<16x32xbf16>, vector<32x64xbf16>, vector<16x64xf32> -> vector<16x64xf32>
    %183 = vector.broadcast %180 : vector<1x64xf32> to vector<16x64xf32>
    %184 = arith.addf %182, %183 : vector<16x64xf32>
    %185 = vector.extract_strided_slice %184 {offsets = [0, 0], sizes = [16, 32], strides = [1, 1]} : vector<16x64xf32> to vector<16x32xf32>
    %186 = vector.extract_strided_slice %184 {offsets = [0, 32], sizes = [16, 32], strides = [1, 1]} : vector<16x64xf32> to vector<16x32xf32>
    %c0_77 = arith.constant 0 : index
    %c0_78 = arith.constant 0 : index
    %c0_79 = arith.constant 0 : index
    %187 = vector.load %arg23[%c0_77, %c0_78, %c0_79] : memref<1x32x32xbf16, #tpu.memory_space<vmem>>, vector<1x32x32xbf16>
    %188 = vector.shape_cast %187 : vector<1x32x32xbf16> to vector<32x32xbf16>
    %189 = vector.shape_cast %176 : vector<32x32xf32> to vector<2x16x32xf32>
    %190 = arith.truncf %189 : vector<2x16x32xf32> to vector<2x16x32xbf16>
    %191 = vector.shape_cast %185 : vector<16x32xf32> to vector<2x8x32xf32>
    %192 = arith.truncf %191 : vector<2x8x32xf32> to vector<2x8x32xbf16>
    %193 = vector.shape_cast %186 : vector<16x32xf32> to vector<2x8x32xf32>
    %194 = arith.truncf %193 : vector<2x8x32xf32> to vector<2x8x32xbf16>
    %195 = vector.extract_strided_slice %190 {offsets = [0, 0, 0], sizes = [2, 16, 8], strides = [1, 1, 1]} : vector<2x16x32xbf16> to vector<2x16x8xbf16>
    %196 = vector.extract_strided_slice %192 {offsets = [0, 0, 0], sizes = [2, 8, 8], strides = [1, 1, 1]} : vector<2x8x32xbf16> to vector<2x8x8xbf16>
    "tpu.trace_start"() <{level = 10 : i32, message = "bqd,bkd->bqk"}> : () -> ()
    %cst_80 = arith.constant dense<0.000000e+00> : vector<2x16x8xf32>
    %197 = tpu.matmul %195, %196, %cst_80 {dimension_numbers = #tpu.dot_dimension_numbers<[2], [2], [1], [1], [0, 0, 0, 1, 1, 1], [0], [0]>} : vector<2x16x8xbf16>, vector<2x8x8xbf16>, vector<2x16x8xf32> -> vector<2x16x8xf32>
    "tpu.trace_stop"() : () -> ()
    %cst_81 = arith.constant 0.353553385 : f32
    %198 = vector.broadcast %cst_81 : f32 to vector<2x16x8xf32>
    %199 = arith.mulf %197, %198 : vector<2x16x8xf32>
    %cst_82 = arith.constant dense<0xFF800000> : vector<2x16xf32>
    %200 = vector.multi_reduction <maximumf>, %199, %cst_82 [2] : vector<2x16x8xf32> to vector<2x16xf32>
    %201 = vector.shape_cast %200 : vector<2x16xf32> to vector<2x16x1xf32>
    %202 = vector.broadcast %201 : vector<2x16x1xf32> to vector<2x16x8xf32>
    %203 = arith.subf %199, %202 : vector<2x16x8xf32>
    %204 = math.exp %203 : vector<2x16x8xf32>
    %cst_83 = arith.constant dense<0.000000e+00> : vector<2x16xf32>
    %205 = vector.multi_reduction <add>, %204, %cst_83 [2] : vector<2x16x8xf32> to vector<2x16xf32>
    %206 = vector.shape_cast %205 : vector<2x16xf32> to vector<2x16x1xf32>
    %207 = tpu.reciprocal %206 {approx = true} : vector<2x16x1xf32> -> vector<2x16x1xf32>
    %208 = vector.broadcast %207 : vector<2x16x1xf32> to vector<2x16x8xf32>
    %209 = arith.mulf %204, %208 : vector<2x16x8xf32>
    %210 = arith.truncf %209 : vector<2x16x8xf32> to vector<2x16x8xbf16>
    %211 = vector.extract_strided_slice %194 {offsets = [0, 0, 0], sizes = [2, 8, 8], strides = [1, 1, 1]} : vector<2x8x32xbf16> to vector<2x8x8xbf16>
    "tpu.trace_start"() <{level = 10 : i32, message = "bqk,bkd->bqd"}> : () -> ()
    %cst_84 = arith.constant dense<0.000000e+00> : vector<2x16x8xf32>
    %212 = tpu.matmul %210, %211, %cst_84 {dimension_numbers = #tpu.dot_dimension_numbers<[2], [1], [1], [2], [0, 0, 0, 1, 1, 2], [0], [0]>} : vector<2x16x8xbf16>, vector<2x8x8xbf16>, vector<2x16x8xf32> -> vector<2x16x8xf32>
    "tpu.trace_stop"() : () -> ()
    %213 = vector.shape_cast %212 : vector<2x16x8xf32> to vector<32x8xf32>
    %214 = vector.extract_strided_slice %188 {offsets = [0, 0], sizes = [8, 32], strides = [1, 1]} : vector<32x32xbf16> to vector<8x32xbf16>
    %215 = arith.truncf %213 : vector<32x8xf32> to vector<32x8xbf16>
    %cst_85 = arith.constant dense<0.000000e+00> : vector<32x32xf32>
    %216 = tpu.matmul %215, %214, %cst_85 {dimension_numbers = #tpu.dot_dimension_numbers<[1], [0], [0], [1], [0, 0, 1, 1], [], []>} : vector<32x8xbf16>, vector<8x32xbf16>, vector<32x32xf32> -> vector<32x32xf32>
    %217 = vector.extract_strided_slice %190 {offsets = [0, 0, 8], sizes = [2, 16, 8], strides = [1, 1, 1]} : vector<2x16x32xbf16> to vector<2x16x8xbf16>
    %218 = vector.extract_strided_slice %192 {offsets = [0, 0, 8], sizes = [2, 8, 8], strides = [1, 1, 1]} : vector<2x8x32xbf16> to vector<2x8x8xbf16>
    "tpu.trace_start"() <{level = 10 : i32, message = "bqd,bkd->bqk"}> : () -> ()
    %cst_86 = arith.constant dense<0.000000e+00> : vector<2x16x8xf32>
    %219 = tpu.matmul %217, %218, %cst_86 {dimension_numbers = #tpu.dot_dimension_numbers<[2], [2], [1], [1], [0, 0, 0, 1, 1, 1], [0], [0]>} : vector<2x16x8xbf16>, vector<2x8x8xbf16>, vector<2x16x8xf32> -> vector<2x16x8xf32>
    "tpu.trace_stop"() : () -> ()
    %cst_87 = arith.constant 0.353553385 : f32
    %220 = vector.broadcast %cst_87 : f32 to vector<2x16x8xf32>
    %221 = arith.mulf %219, %220 : vector<2x16x8xf32>
    %cst_88 = arith.constant dense<0xFF800000> : vector<2x16xf32>
    %222 = vector.multi_reduction <maximumf>, %221, %cst_88 [2] : vector<2x16x8xf32> to vector<2x16xf32>
    %223 = vector.shape_cast %222 : vector<2x16xf32> to vector<2x16x1xf32>
    %224 = vector.broadcast %223 : vector<2x16x1xf32> to vector<2x16x8xf32>
    %225 = arith.subf %221, %224 : vector<2x16x8xf32>
    %226 = math.exp %225 : vector<2x16x8xf32>
    %cst_89 = arith.constant dense<0.000000e+00> : vector<2x16xf32>
    %227 = vector.multi_reduction <add>, %226, %cst_89 [2] : vector<2x16x8xf32> to vector<2x16xf32>
    %228 = vector.shape_cast %227 : vector<2x16xf32> to vector<2x16x1xf32>
    %229 = tpu.reciprocal %228 {approx = true} : vector<2x16x1xf32> -> vector<2x16x1xf32>
    %230 = vector.broadcast %229 : vector<2x16x1xf32> to vector<2x16x8xf32>
    %231 = arith.mulf %226, %230 : vector<2x16x8xf32>
    %232 = arith.truncf %231 : vector<2x16x8xf32> to vector<2x16x8xbf16>
    %233 = vector.extract_strided_slice %194 {offsets = [0, 0, 8], sizes = [2, 8, 8], strides = [1, 1, 1]} : vector<2x8x32xbf16> to vector<2x8x8xbf16>
    "tpu.trace_start"() <{level = 10 : i32, message = "bqk,bkd->bqd"}> : () -> ()
    %cst_90 = arith.constant dense<0.000000e+00> : vector<2x16x8xf32>
    %234 = tpu.matmul %232, %233, %cst_90 {dimension_numbers = #tpu.dot_dimension_numbers<[2], [1], [1], [2], [0, 0, 0, 1, 1, 2], [0], [0]>} : vector<2x16x8xbf16>, vector<2x8x8xbf16>, vector<2x16x8xf32> -> vector<2x16x8xf32>
    "tpu.trace_stop"() : () -> ()
    %235 = vector.shape_cast %234 : vector<2x16x8xf32> to vector<32x8xf32>
    %236 = vector.extract_strided_slice %188 {offsets = [8, 0], sizes = [8, 32], strides = [1, 1]} : vector<32x32xbf16> to vector<8x32xbf16>
    %237 = arith.truncf %235 : vector<32x8xf32> to vector<32x8xbf16>
    %cst_91 = arith.constant dense<0.000000e+00> : vector<32x32xf32>
    %238 = tpu.matmul %237, %236, %cst_91 {dimension_numbers = #tpu.dot_dimension_numbers<[1], [0], [0], [1], [0, 0, 1, 1], [], []>} : vector<32x8xbf16>, vector<8x32xbf16>, vector<32x32xf32> -> vector<32x32xf32>
    %239 = arith.addf %216, %238 : vector<32x32xf32>
    %240 = vector.extract_strided_slice %190 {offsets = [0, 0, 16], sizes = [2, 16, 8], strides = [1, 1, 1]} : vector<2x16x32xbf16> to vector<2x16x8xbf16>
    %241 = vector.extract_strided_slice %192 {offsets = [0, 0, 16], sizes = [2, 8, 8], strides = [1, 1, 1]} : vector<2x8x32xbf16> to vector<2x8x8xbf16>
    "tpu.trace_start"() <{level = 10 : i32, message = "bqd,bkd->bqk"}> : () -> ()
    %cst_92 = arith.constant dense<0.000000e+00> : vector<2x16x8xf32>
    %242 = tpu.matmul %240, %241, %cst_92 {dimension_numbers = #tpu.dot_dimension_numbers<[2], [2], [1], [1], [0, 0, 0, 1, 1, 1], [0], [0]>} : vector<2x16x8xbf16>, vector<2x8x8xbf16>, vector<2x16x8xf32> -> vector<2x16x8xf32>
    "tpu.trace_stop"() : () -> ()
    %cst_93 = arith.constant 0.353553385 : f32
    %243 = vector.broadcast %cst_93 : f32 to vector<2x16x8xf32>
    %244 = arith.mulf %242, %243 : vector<2x16x8xf32>
    %cst_94 = arith.constant dense<0xFF800000> : vector<2x16xf32>
    %245 = vector.multi_reduction <maximumf>, %244, %cst_94 [2] : vector<2x16x8xf32> to vector<2x16xf32>
    %246 = vector.shape_cast %245 : vector<2x16xf32> to vector<2x16x1xf32>
    %247 = vector.broadcast %246 : vector<2x16x1xf32> to vector<2x16x8xf32>
    %248 = arith.subf %244, %247 : vector<2x16x8xf32>
    %249 = math.exp %248 : vector<2x16x8xf32>
    %cst_95 = arith.constant dense<0.000000e+00> : vector<2x16xf32>
    %250 = vector.multi_reduction <add>, %249, %cst_95 [2] : vector<2x16x8xf32> to vector<2x16xf32>
    %251 = vector.shape_cast %250 : vector<2x16xf32> to vector<2x16x1xf32>
    %252 = tpu.reciprocal %251 {approx = true} : vector<2x16x1xf32> -> vector<2x16x1xf32>
    %253 = vector.broadcast %252 : vector<2x16x1xf32> to vector<2x16x8xf32>
    %254 = arith.mulf %249, %253 : vector<2x16x8xf32>
    %255 = arith.truncf %254 : vector<2x16x8xf32> to vector<2x16x8xbf16>
    %256 = vector.extract_strided_slice %194 {offsets = [0, 0, 16], sizes = [2, 8, 8], strides = [1, 1, 1]} : vector<2x8x32xbf16> to vector<2x8x8xbf16>
    "tpu.trace_start"() <{level = 10 : i32, message = "bqk,bkd->bqd"}> : () -> ()
    %cst_96 = arith.constant dense<0.000000e+00> : vector<2x16x8xf32>
    %257 = tpu.matmul %255, %256, %cst_96 {dimension_numbers = #tpu.dot_dimension_numbers<[2], [1], [1], [2], [0, 0, 0, 1, 1, 2], [0], [0]>} : vector<2x16x8xbf16>, vector<2x8x8xbf16>, vector<2x16x8xf32> -> vector<2x16x8xf32>
    "tpu.trace_stop"() : () -> ()
    %258 = vector.shape_cast %257 : vector<2x16x8xf32> to vector<32x8xf32>
    %259 = vector.extract_strided_slice %188 {offsets = [16, 0], sizes = [8, 32], strides = [1, 1]} : vector<32x32xbf16> to vector<8x32xbf16>
    %260 = arith.truncf %258 : vector<32x8xf32> to vector<32x8xbf16>
    %cst_97 = arith.constant dense<0.000000e+00> : vector<32x32xf32>
    %261 = tpu.matmul %260, %259, %cst_97 {dimension_numbers = #tpu.dot_dimension_numbers<[1], [0], [0], [1], [0, 0, 1, 1], [], []>} : vector<32x8xbf16>, vector<8x32xbf16>, vector<32x32xf32> -> vector<32x32xf32>
    %262 = arith.addf %239, %261 : vector<32x32xf32>
    %263 = vector.extract_strided_slice %190 {offsets = [0, 0, 24], sizes = [2, 16, 8], strides = [1, 1, 1]} : vector<2x16x32xbf16> to vector<2x16x8xbf16>
    %264 = vector.extract_strided_slice %192 {offsets = [0, 0, 24], sizes = [2, 8, 8], strides = [1, 1, 1]} : vector<2x8x32xbf16> to vector<2x8x8xbf16>
    "tpu.trace_start"() <{level = 10 : i32, message = "bqd,bkd->bqk"}> : () -> ()
    %cst_98 = arith.constant dense<0.000000e+00> : vector<2x16x8xf32>
    %265 = tpu.matmul %263, %264, %cst_98 {dimension_numbers = #tpu.dot_dimension_numbers<[2], [2], [1], [1], [0, 0, 0, 1, 1, 1], [0], [0]>} : vector<2x16x8xbf16>, vector<2x8x8xbf16>, vector<2x16x8xf32> -> vector<2x16x8xf32>
    "tpu.trace_stop"() : () -> ()
    %cst_99 = arith.constant 0.353553385 : f32
    %266 = vector.broadcast %cst_99 : f32 to vector<2x16x8xf32>
    %267 = arith.mulf %265, %266 : vector<2x16x8xf32>
    %cst_100 = arith.constant dense<0xFF800000> : vector<2x16xf32>
    %268 = vector.multi_reduction <maximumf>, %267, %cst_100 [2] : vector<2x16x8xf32> to vector<2x16xf32>
    %269 = vector.shape_cast %268 : vector<2x16xf32> to vector<2x16x1xf32>
    %270 = vector.broadcast %269 : vector<2x16x1xf32> to vector<2x16x8xf32>
    %271 = arith.subf %267, %270 : vector<2x16x8xf32>
    %272 = math.exp %271 : vector<2x16x8xf32>
    %cst_101 = arith.constant dense<0.000000e+00> : vector<2x16xf32>
    %273 = vector.multi_reduction <add>, %272, %cst_101 [2] : vector<2x16x8xf32> to vector<2x16xf32>
    %274 = vector.shape_cast %273 : vector<2x16xf32> to vector<2x16x1xf32>
    %275 = tpu.reciprocal %274 {approx = true} : vector<2x16x1xf32> -> vector<2x16x1xf32>
    %276 = vector.broadcast %275 : vector<2x16x1xf32> to vector<2x16x8xf32>
    %277 = arith.mulf %272, %276 : vector<2x16x8xf32>
    %278 = arith.truncf %277 : vector<2x16x8xf32> to vector<2x16x8xbf16>
    %279 = vector.extract_strided_slice %194 {offsets = [0, 0, 24], sizes = [2, 8, 8], strides = [1, 1, 1]} : vector<2x8x32xbf16> to vector<2x8x8xbf16>
    "tpu.trace_start"() <{level = 10 : i32, message = "bqk,bkd->bqd"}> : () -> ()
    %cst_102 = arith.constant dense<0.000000e+00> : vector<2x16x8xf32>
    %280 = tpu.matmul %278, %279, %cst_102 {dimension_numbers = #tpu.dot_dimension_numbers<[2], [1], [1], [2], [0, 0, 0, 1, 1, 2], [0], [0]>} : vector<2x16x8xbf16>, vector<2x8x8xbf16>, vector<2x16x8xf32> -> vector<2x16x8xf32>
    "tpu.trace_stop"() : () -> ()
    %281 = vector.shape_cast %280 : vector<2x16x8xf32> to vector<32x8xf32>
    %282 = vector.extract_strided_slice %188 {offsets = [24, 0], sizes = [8, 32], strides = [1, 1]} : vector<32x32xbf16> to vector<8x32xbf16>
    %283 = arith.truncf %281 : vector<32x8xf32> to vector<32x8xbf16>
    %cst_103 = arith.constant dense<0.000000e+00> : vector<32x32xf32>
    %284 = tpu.matmul %283, %282, %cst_103 {dimension_numbers = #tpu.dot_dimension_numbers<[1], [0], [0], [1], [0, 0, 1, 1], [], []>} : vector<32x8xbf16>, vector<8x32xbf16>, vector<32x32xf32> -> vector<32x32xf32>
    %285 = arith.addf %262, %284 : vector<32x32xf32>
    %286 = arith.addf %144, %285 : vector<32x32xf32>
    %c0_104 = arith.constant 0 : index
    %c0_105 = arith.constant 0 : index
    %c0_106 = arith.constant 0 : index
    %287 = vector.load %arg24[%c0_104, %c0_105, %c0_106] : memref<1x1x32xf32, #tpu.memory_space<vmem>>, vector<1x1x32xf32>
    %288 = vector.shape_cast %287 : vector<1x1x32xf32> to vector<1x32xf32>
    %289 = vector.broadcast %288 : vector<1x32xf32> to vector<32x32xf32>
    %290 = arith.addf %286, %289 : vector<32x32xf32>
    %c0_107 = arith.constant 0 : index
    %c0_108 = arith.constant 0 : index
    %c0_109 = arith.constant 0 : index
    %291 = vector.load %arg25[%c0_107, %c0_108, %c0_109] : memref<1x1x32xf32, #tpu.memory_space<vmem>>, vector<1x1x32xf32>
    %292 = vector.shape_cast %291 : vector<1x1x32xf32> to vector<1x32xf32>
    %c0_110 = arith.constant 0 : index
    %c0_111 = arith.constant 0 : index
    %c0_112 = arith.constant 0 : index
    %293 = vector.load %arg26[%c0_110, %c0_111, %c0_112] : memref<1x1x32xf32, #tpu.memory_space<vmem>>, vector<1x1x32xf32>
    %294 = vector.shape_cast %293 : vector<1x1x32xf32> to vector<1x32xf32>
    %cst_113 = arith.constant dense<0.000000e+00> : vector<32xf32>
    %295 = vector.multi_reduction <add>, %290, %cst_113 [1] : vector<32x32xf32> to vector<32xf32>
    %296 = vector.shape_cast %295 : vector<32xf32> to vector<32x1xf32>
    %cst_114 = arith.constant 3.200000e+01 : f32
    %297 = vector.broadcast %cst_114 : f32 to vector<32x1xf32>
    %298 = arith.divf %296, %297 : vector<32x1xf32>
    %299 = vector.broadcast %298 : vector<32x1xf32> to vector<32x32xf32>
    %300 = arith.subf %290, %299 : vector<32x32xf32>
    %301 = arith.mulf %300, %300 : vector<32x32xf32>
    %cst_115 = arith.constant dense<0.000000e+00> : vector<32xf32>
    %302 = vector.multi_reduction <add>, %301, %cst_115 [1] : vector<32x32xf32> to vector<32xf32>
    %303 = vector.shape_cast %302 : vector<32xf32> to vector<32x1xf32>
    %cst_116 = arith.constant 3.200000e+01 : f32
    %304 = vector.broadcast %cst_116 : f32 to vector<32x1xf32>
    %305 = arith.divf %303, %304 : vector<32x1xf32>
    %cst_117 = arith.constant 9.99999974E-6 : f32
    %306 = vector.broadcast %cst_117 : f32 to vector<32x1xf32>
    %307 = arith.addf %305, %306 : vector<32x1xf32>
    %308 = math.rsqrt %307 : vector<32x1xf32>
    %309 = vector.broadcast %308 : vector<32x1xf32> to vector<32x32xf32>
    %310 = arith.mulf %300, %309 : vector<32x32xf32>
    %311 = vector.broadcast %292 : vector<1x32xf32> to vector<32x32xf32>
    %312 = arith.mulf %310, %311 : vector<32x32xf32>
    %313 = vector.broadcast %294 : vector<1x32xf32> to vector<32x32xf32>
    %314 = arith.addf %312, %313 : vector<32x32xf32>
    %c0_118 = arith.constant 0 : index
    %c0_119 = arith.constant 0 : index
    %c0_120 = arith.constant 0 : index
    %315 = vector.load %arg27[%c0_118, %c0_119, %c0_120] : memref<1x32x64xbf16, #tpu.memory_space<vmem>>, vector<1x32x64xbf16>
    %316 = vector.shape_cast %315 : vector<1x32x64xbf16> to vector<32x64xbf16>
    %c0_121 = arith.constant 0 : index
    %c0_122 = arith.constant 0 : index
    %c0_123 = arith.constant 0 : index
    %317 = vector.load %arg28[%c0_121, %c0_122, %c0_123] : memref<1x1x64xf32, #tpu.memory_space<vmem>>, vector<1x1x64xf32>
    %318 = vector.shape_cast %317 : vector<1x1x64xf32> to vector<1x64xf32>
    %319 = arith.truncf %314 : vector<32x32xf32> to vector<32x32xbf16>
    %cst_124 = arith.constant dense<0.000000e+00> : vector<32x64xf32>
    %320 = tpu.matmul %319, %316, %cst_124 {dimension_numbers = #tpu.dot_dimension_numbers<[1], [0], [0], [1], [0, 0, 1, 1], [], []>} : vector<32x32xbf16>, vector<32x64xbf16>, vector<32x64xf32> -> vector<32x64xf32>
    %321 = vector.broadcast %318 : vector<1x64xf32> to vector<32x64xf32>
    %322 = arith.addf %320, %321 : vector<32x64xf32>
    %323 = arith.mulf %322, %322 : vector<32x64xf32>
    %324 = arith.mulf %322, %323 : vector<32x64xf32>
    %cst_125 = arith.constant 4.471500e-02 : f32
    %325 = vector.broadcast %cst_125 : f32 to vector<32x64xf32>
    %326 = arith.mulf %325, %324 : vector<32x64xf32>
    %327 = arith.addf %322, %326 : vector<32x64xf32>
    %cst_126 = arith.constant 0.797884583 : f32
    %328 = vector.broadcast %cst_126 : f32 to vector<32x64xf32>
    %329 = arith.mulf %328, %327 : vector<32x64xf32>
    %330 = math.tanh %329 : vector<32x64xf32>
    %cst_127 = arith.constant 1.000000e+00 : f32
    %331 = vector.broadcast %cst_127 : f32 to vector<32x64xf32>
    %332 = arith.addf %331, %330 : vector<32x64xf32>
    %cst_128 = arith.constant 5.000000e-01 : f32
    %333 = vector.broadcast %cst_128 : f32 to vector<32x64xf32>
    %334 = arith.mulf %333, %332 : vector<32x64xf32>
    %335 = arith.mulf %322, %334 : vector<32x64xf32>
    %c0_129 = arith.constant 0 : index
    %c0_130 = arith.constant 0 : index
    %c0_131 = arith.constant 0 : index
    %336 = vector.load %arg29[%c0_129, %c0_130, %c0_131] : memref<1x64x32xbf16, #tpu.memory_space<vmem>>, vector<1x64x32xbf16>
    %337 = vector.shape_cast %336 : vector<1x64x32xbf16> to vector<64x32xbf16>
    %c0_132 = arith.constant 0 : index
    %c0_133 = arith.constant 0 : index
    %c0_134 = arith.constant 0 : index
    %338 = vector.load %arg30[%c0_132, %c0_133, %c0_134] : memref<1x1x32xf32, #tpu.memory_space<vmem>>, vector<1x1x32xf32>
    %339 = vector.shape_cast %338 : vector<1x1x32xf32> to vector<1x32xf32>
    %340 = arith.truncf %335 : vector<32x64xf32> to vector<32x64xbf16>
    %cst_135 = arith.constant dense<0.000000e+00> : vector<32x32xf32>
    %341 = tpu.matmul %340, %337, %cst_135 {dimension_numbers = #tpu.dot_dimension_numbers<[1], [0], [0], [1], [0, 0, 1, 1], [], []>} : vector<32x64xbf16>, vector<64x32xbf16>, vector<32x32xf32> -> vector<32x32xf32>
    %342 = vector.broadcast %339 : vector<1x32xf32> to vector<32x32xf32>
    %343 = arith.addf %341, %342 : vector<32x32xf32>
    %344 = arith.addf %290, %343 : vector<32x32xf32>
    %c0_136 = arith.constant 0 : index
    %c0_137 = arith.constant 0 : index
    %345 = vector.load %arg36[%c0_136, %c0_137] : memref<32x32xf32, #tpu.memory_space<vmem>>, vector<32x32xf32>
    tpu.vector_store %arg36[%c0_136, %c0_137], %344 {strides = array<i32>} : memref<32x32xf32, #tpu.memory_space<vmem>>, vector<32x32xf32>,
    %c1_i32 = arith.constant 1 : i32
    %346 = arith.cmpi eq, %arg0, %c1_i32 : i32
    %347 = arith.extui %346 : i1 to i32
    %c0_i32_138 = arith.constant 0 : i32
    %348 = arith.cmpi ne, %347, %c0_i32_138 : i32
    scf.if %348 {
      %c0_139 = arith.constant 0 : index
      %c0_140 = arith.constant 0 : index
      %349 = vector.load %arg31[%c0_139, %c0_140] : memref<1x32xf32, #tpu.memory_space<vmem>>, vector<1x32xf32>
      %c0_141 = arith.constant 0 : index
      %c0_142 = arith.constant 0 : index
      %350 = vector.load %arg32[%c0_141, %c0_142] : memref<1x32xf32, #tpu.memory_space<vmem>>, vector<1x32xf32>
      %cst_143 = arith.constant dense<0.000000e+00> : vector<32xf32>
      %351 = vector.multi_reduction <add>, %344, %cst_143 [1] : vector<32x32xf32> to vector<32xf32>
      %352 = vector.shape_cast %351 : vector<32xf32> to vector<32x1xf32>
      %cst_144 = arith.constant 3.200000e+01 : f32
      %353 = vector.broadcast %cst_144 : f32 to vector<32x1xf32>
      %354 = arith.divf %352, %353 : vector<32x1xf32>
      %355 = vector.broadcast %354 : vector<32x1xf32> to vector<32x32xf32>
      %356 = arith.subf %344, %355 : vector<32x32xf32>
      %357 = arith.mulf %356, %356 : vector<32x32xf32>
      %cst_145 = arith.constant dense<0.000000e+00> : vector<32xf32>
      %358 = vector.multi_reduction <add>, %357, %cst_145 [1] : vector<32x32xf32> to vector<32xf32>
      %359 = vector.shape_cast %358 : vector<32xf32> to vector<32x1xf32>
      %cst_146 = arith.constant 3.200000e+01 : f32
      %360 = vector.broadcast %cst_146 : f32 to vector<32x1xf32>
      %361 = arith.divf %359, %360 : vector<32x1xf32>
      %cst_147 = arith.constant 9.99999974E-6 : f32
      %362 = vector.broadcast %cst_147 : f32 to vector<32x1xf32>
      %363 = arith.addf %361, %362 : vector<32x1xf32>
      %364 = math.rsqrt %363 : vector<32x1xf32>
      %365 = vector.broadcast %364 : vector<32x1xf32> to vector<32x32xf32>
      %366 = arith.mulf %356, %365 : vector<32x32xf32>
      %367 = vector.broadcast %349 : vector<1x32xf32> to vector<32x32xf32>
      %368 = arith.mulf %366, %367 : vector<32x32xf32>
      %369 = vector.broadcast %350 : vector<1x32xf32> to vector<32x32xf32>
      %370 = arith.addf %368, %369 : vector<32x32xf32>
      %c0_148 = arith.constant 0 : index
      %c0_149 = arith.constant 0 : index
      %371 = vector.load %arg33[%c0_148, %c0_149] : memref<32x64xbf16, #tpu.memory_space<vmem>>, vector<32x64xbf16>
      %c0_150 = arith.constant 0 : index
      %c0_151 = arith.constant 0 : index
      %372 = vector.load %arg34[%c0_150, %c0_151] : memref<1x64xf32, #tpu.memory_space<vmem>>, vector<1x64xf32>
      %373 = arith.truncf %370 : vector<32x32xf32> to vector<32x32xbf16>
      %cst_152 = arith.constant dense<0.000000e+00> : vector<32x64xf32>
      %374 = tpu.matmul %373, %371, %cst_152 {dimension_numbers = #tpu.dot_dimension_numbers<[1], [0], [0], [1], [0, 0, 1, 1], [], []>} : vector<32x32xbf16>, vector<32x64xbf16>, vector<32x64xf32> -> vector<32x64xf32>
      %375 = vector.broadcast %372 : vector<1x64xf32> to vector<32x64xf32>
      %376 = arith.addf %374, %375 : vector<32x64xf32>
      %c0_153 = arith.constant 0 : index
      %c0_154 = arith.constant 0 : index
      %377 = vector.load %arg35[%c0_153, %c0_154] : memref<32x64xf32, #tpu.memory_space<vmem>>, vector<32x64xf32>
      tpu.vector_store %arg35[%c0_153, %c0_154], %376 {strides = array<i32>} : memref<32x64xf32, #tpu.memory_space<vmem>>, vector<32x64xf32>,
    } else {
    }
    return
  }
  func.func @transform_0(%arg0: i32) -> (i32, i32) {
    %c0_i32 = arith.constant 0 : i32
    %c0_i32_0 = arith.constant 0 : i32
    %c0_i32_1 = arith.constant 0 : i32
    return %c0_i32, %c0_i32_0 : i32, i32
  }
  func.func @transform_1(%arg0: i32) -> (i32, i32) {
    %c0_i32 = arith.constant 0 : i32
    %c0_i32_0 = arith.constant 0 : i32
    %c0_i32_1 = arith.constant 0 : i32
    return %c0_i32, %c0_i32_0 : i32, i32
  }
  func.func @transform_2(%arg0: i32) -> (i32, i32) {
    %c0_i32 = arith.constant 0 : i32
    %c0_i32_0 = arith.constant 0 : i32
    %c0_i32_1 = arith.constant 0 : i32
    return %c0_i32, %c0_i32_0 : i32, i32
  }
  func.func @transform_3(%arg0: i32) -> (i32, i32) {
    %c0_i32 = arith.constant 0 : i32
    %c0_i32_0 = arith.constant 0 : i32
    %c0_i32_1 = arith.constant 0 : i32
    return %c0_i32, %c0_i32_0 : i32, i32
  }
  func.func @transform_4(%arg0: i32) -> (i32, i32) {
    %c0_i32 = arith.constant 0 : i32
    %c0_i32_0 = arith.constant 0 : i32
    %c0_i32_1 = arith.constant 0 : i32
    return %c0_i32, %c0_i32_0 : i32, i32
  }
  func.func @transform_5(%arg0: i32) -> (i32, i32) {
    %c0_i32 = arith.constant 0 : i32
    %c0_i32_0 = arith.constant 0 : i32
    %c0_i32_1 = arith.constant 0 : i32
    return %c0_i32, %c0_i32_0 : i32, i32
  }
  func.func @transform_6(%arg0: i32) -> (i32, i32) {
    %c0_i32 = arith.constant 0 : i32
    %c0_i32_0 = arith.constant 0 : i32
    %c0_i32_1 = arith.constant 0 : i32
    return %c0_i32, %c0_i32_0 : i32, i32
  }
  func.func @transform_7(%arg0: i32) -> (i32, i32) {
    %c0_i32 = arith.constant 0 : i32
    %c0_i32_0 = arith.constant 0 : i32
    %c0_i32_1 = arith.constant 0 : i32
    return %c0_i32, %c0_i32_0 : i32, i32
  }
  func.func @transform_8(%arg0: i32) -> (i32, i32) {
    %c0_i32 = arith.constant 0 : i32
    %c0_i32_0 = arith.constant 0 : i32
    %c0_i32_1 = arith.constant 0 : i32
    return %c0_i32, %c0_i32_0 : i32, i32
  }
  func.func @transform_9(%arg0: i32) -> (i32, i32, i32) {
    %c0_i32 = arith.constant 0 : i32
    %c0_i32_0 = arith.constant 0 : i32
    %c0_i32_1 = arith.constant 0 : i32
    %c0_i32_2 = arith.constant 0 : i32
    return %c0_i32, %c0_i32_0, %c0_i32_1 : i32, i32, i32
  }
  func.func @transform_10(%arg0: i32) -> (i32, i32, i32) {
    %c0_i32 = arith.constant 0 : i32
    %c0_i32_0 = arith.constant 0 : i32
    %c0_i32_1 = arith.constant 0 : i32
    return %arg0, %c0_i32, %c0_i32_0 : i32, i32, i32
  }
  func.func @transform_11(%arg0: i32) -> (i32, i32, i32) {
    %c0_i32 = arith.constant 0 : i32
    %c0_i32_0 = arith.constant 0 : i32
    %c0_i32_1 = arith.constant 0 : i32
    return %arg0, %c0_i32, %c0_i32_0 : i32, i32, i32
  }
  func.func @transform_12(%arg0: i32) -> (i32, i32, i32) {
    %c0_i32 = arith.constant 0 : i32
    %c0_i32_0 = arith.constant 0 : i32
    %c0_i32_1 = arith.constant 0 : i32
    return %arg0, %c0_i32, %c0_i32_0 : i32, i32, i32
  }
  func.func @transform_13(%arg0: i32) -> (i32, i32, i32) {
    %c0_i32 = arith.constant 0 : i32
    %c0_i32_0 = arith.constant 0 : i32
    %c0_i32_1 = arith.constant 0 : i32
    return %arg0, %c0_i32, %c0_i32_0 : i32, i32, i32
  }
  func.func @transform_14(%arg0: i32) -> (i32, i32, i32) {
    %c0_i32 = arith.constant 0 : i32
    %c0_i32_0 = arith.constant 0 : i32
    %c0_i32_1 = arith.constant 0 : i32
    return %arg0, %c0_i32, %c0_i32_0 : i32, i32, i32
  }
  func.func @transform_15(%arg0: i32) -> (i32, i32, i32) {
    %c0_i32 = arith.constant 0 : i32
    %c0_i32_0 = arith.constant 0 : i32
    %c0_i32_1 = arith.constant 0 : i32
    return %arg0, %c0_i32, %c0_i32_0 : i32, i32, i32
  }
  func.func @transform_16(%arg0: i32) -> (i32, i32, i32) {
    %c0_i32 = arith.constant 0 : i32
    %c0_i32_0 = arith.constant 0 : i32
    %c0_i32_1 = arith.constant 0 : i32
    return %arg0, %c0_i32, %c0_i32_0 : i32, i32, i32
  }
  func.func @transform_17(%arg0: i32) -> (i32, i32, i32) {
    %c0_i32 = arith.constant 0 : i32
    %c0_i32_0 = arith.constant 0 : i32
    %c0_i32_1 = arith.constant 0 : i32
    return %arg0, %c0_i32, %c0_i32_0 : i32, i32, i32
  }
  func.func @transform_18(%arg0: i32) -> (i32, i32, i32) {
    %c0_i32 = arith.constant 0 : i32
    %c0_i32_0 = arith.constant 0 : i32
    %c0_i32_1 = arith.constant 0 : i32
    return %arg0, %c0_i32, %c0_i32_0 : i32, i32, i32
  }
  func.func @transform_19(%arg0: i32) -> (i32, i32, i32) {
    %c0_i32 = arith.constant 0 : i32
    %c0_i32_0 = arith.constant 0 : i32
    %c0_i32_1 = arith.constant 0 : i32
    return %arg0, %c0_i32, %c0_i32_0 : i32, i32, i32
  }
  func.func @transform_20(%arg0: i32) -> (i32, i32, i32) {
    %c0_i32 = arith.constant 0 : i32
    %c0_i32_0 = arith.constant 0 : i32
    %c0_i32_1 = arith.constant 0 : i32
    return %arg0, %c0_i32, %c0_i32_0 : i32, i32, i32
  }
  func.func @transform_21(%arg0: i32) -> (i32, i32, i32) {
    %c0_i32 = arith.constant 0 : i32
    %c0_i32_0 = arith.constant 0 : i32
    %c0_i32_1 = arith.constant 0 : i32
    return %arg0, %c0_i32, %c0_i32_0 : i32, i32, i32
  }
  func.func @transform_22(%arg0: i32) -> (i32, i32, i32) {
    %c0_i32 = arith.constant 0 : i32
    %c0_i32_0 = arith.constant 0 : i32
    %c0_i32_1 = arith.constant 0 : i32
    return %arg0, %c0_i32, %c0_i32_0 : i32, i32, i32
  }
  func.func @transform_23(%arg0: i32) -> (i32, i32, i32) {
    %c0_i32 = arith.constant 0 : i32
    %c0_i32_0 = arith.constant 0 : i32
    %c0_i32_1 = arith.constant 0 : i32
    return %arg0, %c0_i32, %c0_i32_0 : i32, i32, i32
  }
  func.func @transform_24(%arg0: i32) -> (i32, i32, i32) {
    %c0_i32 = arith.constant 0 : i32
    %c0_i32_0 = arith.constant 0 : i32
    %c0_i32_1 = arith.constant 0 : i32
    return %arg0, %c0_i32, %c0_i32_0 : i32, i32, i32
  }
  func.func @transform_25(%arg0: i32) -> (i32, i32, i32) {
    %c0_i32 = arith.constant 0 : i32
    %c0_i32_0 = arith.constant 0 : i32
    %c0_i32_1 = arith.constant 0 : i32
    return %arg0, %c0_i32, %c0_i32_0 : i32, i32, i32
  }
  func.func @transform_26(%arg0: i32) -> (i32, i32, i32) {
    %c0_i32 = arith.constant 0 : i32
    %c0_i32_0 = arith.constant 0 : i32
    %c0_i32_1 = arith.constant 0 : i32
    return %arg0, %c0_i32, %c0_i32_0 : i32, i32, i32
  }
  func.func @transform_27(%arg0: i32) -> (i32, i32, i32) {
    %c0_i32 = arith.constant 0 : i32
    %c0_i32_0 = arith.constant 0 : i32
    %c0_i32_1 = arith.constant 0 : i32
    return %arg0, %c0_i32, %c0_i32_0 : i32, i32, i32
  }
  func.func @transform_28(%arg0: i32) -> (i32, i32, i32) {
    %c0_i32 = arith.constant 0 : i32
    %c0_i32_0 = arith.constant 0 : i32
    %c0_i32_1 = arith.constant 0 : i32
    return %arg0, %c0_i32, %c0_i32_0 : i32, i32, i32
  }
  func.func @transform_29(%arg0: i32) -> (i32, i32, i32) {
    %c0_i32 = arith.constant 0 : i32
    %c0_i32_0 = arith.constant 0 : i32
    %c0_i32_1 = arith.constant 0 : i32
    return %arg0, %c0_i32, %c0_i32_0 : i32, i32, i32
  }
  func.func @transform_30(%arg0: i32) -> (i32, i32) {
    %c0_i32 = arith.constant 0 : i32
    %c0_i32_0 = arith.constant 0 : i32
    %c0_i32_1 = arith.constant 0 : i32
    return %c0_i32, %c0_i32_0 : i32, i32
  }
  func.func @transform_31(%arg0: i32) -> (i32, i32) {
    %c0_i32 = arith.constant 0 : i32
    %c0_i32_0 = arith.constant 0 : i32
    %c0_i32_1 = arith.constant 0 : i32
    return %c0_i32, %c0_i32_0 : i32, i32
  }
  func.func @transform_32(%arg0: i32) -> (i32, i32) {
    %c0_i32 = arith.constant 0 : i32
    %c0_i32_0 = arith.constant 0 : i32
    %c0_i32_1 = arith.constant 0 : i32
    return %c0_i32, %c0_i32_0 : i32, i32
  }
  func.func @transform_33(%arg0: i32) -> (i32, i32) {
    %c0_i32 = arith.constant 0 : i32
    %c0_i32_0 = arith.constant 0 : i32
    %c0_i32_1 = arith.constant 0 : i32
    return %c0_i32, %c0_i32_0 : i32, i32
  }
  func.func @transform_34(%arg0: i32) -> (i32, i32) {
    %c0_i32 = arith.constant 0 : i32
    %c0_i32_0 = arith.constant 0 : i32
    %c0_i32_1 = arith.constant 0 : i32
    return %c0_i32, %c0_i32_0 : i32, i32
  }
}

</mosaic_0001>

<bundles_post_ra>
// kernel: dit_forward.1
= control target key start
LH: loop header
LB: loop body
LE: loop exit
PB: predicated region body
PF: predicated region fallthrough
CT: control target
= control target key end

     0   :  { %s8264_s6 = smov 1   ;;  %s8265_s10 = smov 2   ;;  %s9940_s0 = inlined_call_operand.smem [shape: u32[35], index: -1, kind: input, shape index: {}] }
   0x1   :  { %s8364_s5 = sld [smem:[%s9940_s0]]   ;;  %s8266_s14 = smov 3  }
   0x2   :  { %s8369_s9 = sld [smem:[%s9940_s0 + %s8264_s6]]   ;;  %s8267_s18 = smov 4  }
   0x3   :  { %s8374_s13 = sld [smem:[%s9940_s0 + %s8265_s10]]   ;;  %s8268_s22 = smov 5  }
   0x4   :  { %s8379_s17 = sld [smem:[%s9940_s0 + %s8266_s14]]   ;;  %s8269_s26 = smov 6  }
   0x5   :  { %s8384_s21 = sld [smem:[%s9940_s0 + %s8267_s18]]   ;;  %s8270_s30 = smov 7  }
   0x6   :  { %s8389_s25 = sld [smem:[%s9940_s0 + %s8268_s22]]   ;;  %s8271_s4 = smov 8  }
   0x7   :  { %10004 = sst [smem:[#allocation58_spill]] %s8364_s5  ;;  %s8272_s10 = smov 9  }
   0x8   :  { %10005 = sst [smem:[#allocation59_spill]] %s8369_s9  ;;  %s8273_s15 = smov 10  }
   0x9   :  { %10006 = sst [smem:[#allocation60_spill]] %s8374_s13  ;;  %s8274_s20 = smov 11  }
   0xa   :  { %10007 = sst [smem:[#allocation61_spill]] %s8379_s17  ;;  %s8276_s1 = smov 13  }
   0xb   :  { %s8394_s29 = sld [smem:[%s9940_s0 + %s8269_s26]]   ;;  %s8275_s26 = smov 12  }
   0xc   :  { %s8399_s3 = sld [smem:[%s9940_s0 + %s8270_s30]]   ;;  %s8277_s7 = smov 14  }
   0xd   :  { %s8404_s8 = sld [smem:[%s9940_s0 + %s8271_s4]]   ;;  %s8279_s22 = smov 16  }
   0xe   :  { %s8409_s14 = sld [smem:[%s9940_s0 + %s8272_s10]]   ;;  %s8280_s28 = smov 17  }
   0xf   :  { %s8414_s19 = sld [smem:[%s9940_s0 + %s8273_s15]]   ;;  %s8278_s15 = smov 15  }
  0x10   :  { %s8419_s24 = sld [smem:[%s9940_s0 + %s8274_s20]]  }
  0x11   :  { %s8424_s30 = sld [smem:[%s9940_s0 + %s8275_s26]]  }
  0x12   :  { %10008 = sst [smem:[#allocation62_spill]] %s8399_s3 }
  0x13   :  { %10009 = sst [smem:[#allocation63_spill]] %s8404_s8 }
  0x14   :  { %10010 = sst [smem:[#allocation64_spill]] %s8409_s14 }
  0x15   :  { %10011 = sst [smem:[#allocation65_spill]] %s8414_s19 }
  0x16   :  { %s8429_s6 = sld [smem:[%s9940_s0 + %s8276_s1]]  }
  0x17   :  { %s8434_s12 = sld [smem:[%s9940_s0 + %s8277_s7]]   ;;  %s8281_s7 = smov 18  }
  0x18   :  { %s8439_s20 = sld [smem:[%s9940_s0 + %s8278_s15]]   ;;  %s8282_s15 = smov 19  }
  0x19   :  { %s8444_s27 = sld [smem:[%s9940_s0 + %s8279_s22]]   ;;  %s8283_s22 = smov 20  }
  0x1a   :  { %s8449_s4 = sld [smem:[%s9940_s0 + %s8280_s28]]   ;;  %s8284_s28 = smov 21  }
  0x1c   :  { %10012 = sst [smem:[#allocation66_spill]] %s8429_s6 }
  0x1d   :  { %10013 = sst [smem:[#allocation67_spill]] %s8434_s12 }
  0x1e   :  { %10014 = sst [smem:[#allocation68_spill]] %s8439_s20 }
  0x1f   :  { %10015 = sst [smem:[#allocation69_spill]] %s8444_s27 }
  0x20   :  { %10016 = sst [smem:[#allocation70_spill]] %s8449_s4 }
  0x21   :  { %s8454_s12 = sld [smem:[%s9940_s0 + %s8281_s7]]   ;;  %s8285_s7 = smov 22  }
  0x22   :  { %s8459_s20 = sld [smem:[%s9940_s0 + %s8282_s15]]   ;;  %s8286_s15 = smov 23  }
  0x23   :  { %s8464_s27 = sld [smem:[%s9940_s0 + %s8283_s22]]   ;;  %s8287_s22 = smov 24  }
  0x24   :  { %s8469_s4 = sld [smem:[%s9940_s0 + %s8284_s28]]   ;;  %s8288_s28 = smov 25  }
  0x27   :  { %10017 = sst [smem:[#allocation71_spill]] %s8454_s12 }
  0x28   :  { %10018 = sst [smem:[#allocation72_spill]] %s8459_s20 }
  0x29   :  { %10019 = sst [smem:[#allocation73_spill]] %s8464_s27 }
  0x2a   :  { %10020 = sst [smem:[#allocation74_spill]] %s8469_s4 }
  0x2b   :  { %s8474_s12 = sld [smem:[%s9940_s0 + %s8285_s7]]   ;;  %s8289_s7 = smov 26  }
  0x2c   :  { %s8479_s20 = sld [smem:[%s9940_s0 + %s8286_s15]]   ;;  %s8290_s15 = smov 27  }
  0x2d   :  { %s8484_s27 = sld [smem:[%s9940_s0 + %s8287_s22]]   ;;  %s8291_s22 = smov 28  }
  0x2e   :  { %s8489_s4 = sld [smem:[%s9940_s0 + %s8288_s28]]   ;;  %s8292_s28 = smov 29  }
  0x31   :  { %10021 = sst [smem:[#allocation75_spill]] %s8474_s12 }
  0x32   :  { %10022 = sst [smem:[#allocation76_spill]] %s8479_s20 }
  0x33   :  { %10023 = sst [smem:[#allocation77_spill]] %s8484_s27 }
  0x34   :  { %10024 = sst [smem:[#allocation78_spill]] %s8489_s4 }
  0x35   :  { %s8494_s12 = sld [smem:[%s9940_s0 + %s8289_s7]]   ;;  %s8293_s7 = smov 30  }
  0x36   :  { %s8499_s20 = sld [smem:[%s9940_s0 + %s8290_s15]]   ;;  %s8294_s15 = smov 31  }
  0x37   :  { %s8504_s27 = sld [smem:[%s9940_s0 + %s8291_s22]]   ;;  %s8295_s22 = smov 32  }
  0x38   :  { %s8509_s4 = sld [smem:[%s9940_s0 + %s8292_s28]]   ;;  %s8296_s28 = smov 33  }
  0x3b   :  { %10025 = sst [smem:[#allocation79_spill]] %s8494_s12 }
  0x3c   :  { %10026 = sst [smem:[#allocation80_spill]] %s8499_s20 }
  0x3d   :  { %10027 = sst [smem:[#allocation81_spill]] %s8504_s27 }
  0x3e   :  { %10028 = sst [smem:[#allocation82_spill]] %s8509_s4 }
  0x3f   :  { %s8514_s12 = sld [smem:[%s9940_s0 + %s8293_s7]]   ;;  %s8297_s7 = smov 34  }
  0x40   :  { %s8519_s20 = sld [smem:[%s9940_s0 + %s8294_s15]]  }
  0x41   :  { %s8524_s27 = sld [smem:[%s9940_s0 + %s8295_s22]]  }
  0x42   :  { %s8529_s4 = sld [smem:[%s9940_s0 + %s8296_s28]]  }
  0x43   :  { %s8534_s6 = sld [smem:[%s9940_s0 + %s8297_s7]]  }
  0x45   :  { %10029 = sst [smem:[#allocation83_spill]] %s8514_s12 }
  0x46   :  { %10030 = sst [smem:[#allocation84_spill]] %s8519_s20 }
  0x48   :  { %10031 = sst [smem:[#allocation85_spill]] %s8529_s4 }
  0x49   :  { %10032 = sst [smem:[#allocation86_spill]] %s8534_s6 }
  0x4a   :  { %74 = vsyncpa [#allocation5], 0 }
  0x4b   :  { %75 = vsyncpa [#allocation8], 0 }
  0x4c   :  { %76 = vsyncpa [#allocation11], 0 }
  0x4d   :  { %77 = vsyncpa [#allocation14], 0 }
  0x4e   :  { %78 = vsyncpa [#allocation17], 0 }
  0x4f   :  { %79 = vsyncpa [#allocation20], 0 }
  0x50   :  { %80 = vsyncpa [#allocation6], 0  ;;  %s8536_s15 = smov 0   ;;  %s8538_s16 = smov 0  }
  0x51   :  { %s8540_s18 = smov 0   ;;  %s8542_s22 = smov 0  }
  0x52 LB: > { %s10033_s20 = sld [smem:[#allocation84_spill]]  ;;  %s10034_s19 = sld [smem:[#allocation65_spill]]  ;;  %s8258_s18 = sphi %s8540_s18, %s10123_s18   ;;  %s8254_s16 = sphi %s8538_s16, %s10122_s16   ;;  %s8250_s15 = sphi %s8536_s15, %s10120_s15   ;;  %s8262_s22 = sphi %s8542_s22, %s10119_s22  }
  0x53   : > { %s10035_s14 = sld [smem:[#allocation64_spill]]  ;;  %s10036_s13 = sld [smem:[#allocation60_spill]] }
  0x54   : > { %s10037_s12 = sld [smem:[#allocation83_spill]]  ;;  %s10038_s8 = sld [smem:[#allocation63_spill]] }
  0x55   : > { %s10039_s5 = sld [smem:[#allocation58_spill]]  ;;  %s10040_s4 = sld [smem:[#allocation85_spill]] }
  0x56   : > { %s10041_s3 = sld [smem:[#allocation62_spill]]  ;;  %s10042_s17 = sld [smem:[#allocation61_spill]] }
  0x57   : > { %s10043_s9 = sld [smem:[#allocation59_spill]]  ;;  %10044 = sst [smem:[#allocation87_spill]] %s8254_s16 }
  0x58   : > { %s8555_s0 = sadd.s32 4294967295, %s8262_s22   ;;  %s8558_s23 = sadd.s32 1, %s8262_s22  }
  0x59   : > { %10045 = sst [smem:[#allocation88_spill]] %s8558_s23  ;;  %s300_s26 = ssub.s32 %s8262_s22, %s8558_s23 }
  0x5a   : > { %s303_s28 = sadd.s32 1, %s8258_s18  ;;  %p301_p0 = scmp.eq.s32.totalorder %s300_s26, 0 }
  0x5b   : > { %p310_p1 = scmp.ne.s32.totalorder %s8258_s18, %s8254_s16  ;;  %p311_p2 = scmp.eq.s32.totalorder %s8262_s22, 0 }
  0x5c   : > { %p316_p3 = scmp.ne.s32.totalorder %s8254_s16, %s8250_s15  ;;  %p9961_p5 = scmp.eq.s32.totalorder %s8555_s0, 0 }
  0x5d   : > { %s8568_s1 = scalar_select %p301_p0, %s8258_s18, %s303_s28  }
  0x5e   : > { %p8570_p4 = por %p311_p2, %p310_p1  ;;  %p6064_p6 = scmp.ge.s32.totalorder %s8262_s22, 1 }
  0x5f   : > { %10046 = sst [smem:[#allocation89_spill]] %s8568_s1  ;;  %p926_p7 = scmp.lt.s32.totalorder %s8262_s22, 3 }
  0x60   : > { %s10047_s2 = scalar_select %p8570_p4, 1, 0 }
  0x61   : > { %p8579_p8 = por %p9961_p5, %p316_p3  ;;  %p8584_p10 = pnand %p6064_p6, %p926_p7 }
  0x62   : > { %s8298_s11 = smov [#allocation7]   ;;  %s8299_s28 = smov [#allocation10]  }
  0x63   : > { %s10048_s7 = scalar_select %p8579_p8, 1, 0 }
  0x64   : > { %s10050_s10 = scalar_select %p8584_p10, 1, 0 }
  0x65   : > { %10049 = sst [smem:[#allocation90_spill]] %s10048_s7  ;;  %p6831_p11 = pneg %p8584_p10 }
  0x66   : > { %s951_s15 = sshll.u32 %s8298_s11, 4  ;;  %s978_s1 = sshll.u32 %s8299_s28, 4  ;;  %s952_s15 = int_to_ptr.vmem [resolvable:$true] %s951_s15  ;;  %s8596_s1 = int_to_ptr.vmem [resolvable:$true] %s978_s1 }
  0x67   : > { %p8592_p12 = pnand %p6831_p11, %p9961_p5  ;;  %s7206_s23 = scalar_lea.hbm %s10043_s9, 512 }
  0x68   : > { %p7207_p13 = scmp.ne.s32.totalorder %s10043_s9, %s7206_s23  ;;  %p7213_p3 = scmp.lt.u32.totalorder %s7206_s23, %s10043_s9 }
  0x69   : > { %p8602_p0 = pneg %p8592_p12 }
  0x6b   : > { %p7209_p1 = pnand %p8602_p0, %p7207_p13 }
  0x6d   : > { %p7210_p2 = pneg %p7209_p1 }
  0x6f   : > { %p7215_p6 = pnand %p7213_p3, %p7210_p2 }
  0x71   : > { %7218 = shalt.err (!%p7215_p6)
}
  0x72   : > { %s7219_s11 = scalar_lea.vmem %s952_s15, 512  ;;  %p7227_p5 = scmp.lt.s32.totalorder %s952_s15, %s952_s15 }
  0x73   : > { %p7220_p7 = scmp.ne.s32.totalorder %s952_s15, %s7219_s11  ;;  %p7228_p8 = scmp.lt.s32.totalorder %s7219_s11, %s7219_s11 }
  0x75   : > { %p7222_p11 = pnand %p7220_p7, %p8602_p0  ;;  %p7229_p10 = por %p7228_p8, %p7227_p5 }
  0x77   : > { %p7223_p9 = pneg %p7222_p11 }
  0x79   : > { %p7230_p4 = pnand %p7229_p10, %p7223_p9 }
  0x7b   : > { %7233 = shalt.err (!%p7230_p4)
}
  0x7c   : > { %s9968_s28 = smov 128   ;;  %s9970_s23 = smov 8  }
  0x7d   : > { %6837 = dma.hbm_to_vmem [thread:$0]  (!%p8592_p12), %s10043_s9, 512, %s952_s15, [#allocation8], %s9968_s28, %s9968_s28, %s9970_s23  }
  0x7e   : > { %s7234_s7 = scalar_lea.hbm %s10042_s17, 16 }
  0x7f   : > { %p7235_p13 = scmp.ne.s32.totalorder %s10042_s17, %s7234_s7  ;;  %p7241_p8 = scmp.lt.u32.totalorder %s7234_s7, %s10042_s17 }
  0x81   : > { %p7237_p1 = pnand %p7235_p13, %p8602_p0 }
  0x83   : > { %p7238_p5 = pneg %p7237_p1 }
  0x85   : > { %p7243_p4 = pnand %p7241_p8, %p7238_p5 }
  0x87   : > { %7246 = shalt.err (!%p7243_p4)
}
  0x88   : > { %s7247_s11 = scalar_lea.vmem %s8596_s1, 16  ;;  %s7254_s16 = scalar_lea.vmem %s8596_s1, 32 }
  0x89   : > { %p7248_p9 = scmp.ne.s32.totalorder %s8596_s1, %s7247_s11  ;;  %p7255_p3 = scmp.lt.s32.totalorder %s8596_s1, %s8596_s1 }
  0x8a   : > { %p7256_p6 = scmp.lt.s32.totalorder %s7254_s16, %s7247_s11 }
  0x8b   : > { %p7250_p10 = pnand %p7248_p9, %p8602_p0 }
  0x8c   : > { %p7257_p7 = por %p7256_p6, %p7255_p3 }
  0x8d   : > { %p7251_p2 = pneg %p7250_p10 }
  0x8f   : > { %p7258_p11 = pnand %p7257_p7, %p7251_p2 }
  0x91   : > { %7261 = shalt.err (!%p7258_p11)
}
  0x92   : > { %6843 = dma.hbm_to_vmem [thread:$0]  (!%p8592_p12), %s10042_s17, 16, %s8596_s1, [#allocation11]  }
  0x93   : > { %s8302_s7 = smov [#allocation13]   ;;  %s8303_s28 = smov [#allocation16]  }
  0x94   : > { %s999_s15 = sshll.u32 %s8302_s7, 4  ;;  %s1023_s23 = sshll.u32 %s8303_s28, 4  ;;  %s1000_s15 = int_to_ptr.vmem [resolvable:$true] %s999_s15  ;;  %s8633_s23 = int_to_ptr.vmem [resolvable:$true] %s1023_s23 }
  0x95   : > { %s7262_s16 = scalar_lea.hbm %s8389_s25, 256 }
  0x96   : > { %p7263_p13 = scmp.ne.s32.totalorder %s8389_s25, %s7262_s16  ;;  %p7269_p8 = scmp.lt.u32.totalorder %s7262_s16, %s8389_s25 }
  0x98   : > { %p7265_p1 = pnand %p7263_p13, %p8602_p0 }
  0x9a   : > { %p7266_p5 = pneg %p7265_p1 }
  0x9c   : > { %p7271_p4 = pnand %p7269_p8, %p7266_p5 }
  0x9e   : > { %7274 = shalt.err (!%p7271_p4)
}
  0x9f   : > { %s7275_s11 = scalar_lea.vmem %s1000_s15, 256  ;;  %p7283_p3 = scmp.lt.s32.totalorder %s1000_s15, %s1000_s15 }
  0xa0   : > { %p7276_p9 = scmp.ne.s32.totalorder %s1000_s15, %s7275_s11  ;;  %p7284_p6 = scmp.lt.s32.totalorder %s7275_s11, %s7275_s11 }
  0xa2   : > { %p7278_p10 = pnand %p7276_p9, %p8602_p0  ;;  %p7285_p7 = por %p7284_p6, %p7283_p3 }
  0xa4   : > { %p7279_p2 = pneg %p7278_p10 }
  0xa6   : > { %p7286_p11 = pnand %p7285_p7, %p7279_p2 }
  0xa8   : > { %7289 = shalt.err (!%p7286_p11)
}
  0xa9   : > { %s9974_s1 = smov 64   ;;  %s9975_s28 = smov 4  }
  0xaa   : > { %6849 = dma.hbm_to_vmem [thread:$0]  (!%p8592_p12), %s8389_s25, 256, %s1000_s15, [#allocation14], %s9974_s1, %s9974_s1, %s9975_s28  }
  0xab   : > { %s7290_s7 = scalar_lea.hbm %s10041_s3, 256 }
  0xac   : > { %p7291_p13 = scmp.ne.s32.totalorder %s10041_s3, %s7290_s7  ;;  %p7297_p8 = scmp.lt.u32.totalorder %s7290_s7, %s10041_s3 }
  0xae   : > { %p7293_p1 = pnand %p7291_p13, %p8602_p0 }
  0xb0   : > { %p7294_p5 = pneg %p7293_p1 }
  0xb2   : > { %p7299_p4 = pnand %p7297_p8, %p7294_p5 }
  0xb4   : > { %7302 = shalt.err (!%p7299_p4)
}
  0xb5   : > { %s7303_s16 = scalar_lea.vmem %s8633_s23, 256  ;;  %p7311_p3 = scmp.lt.s32.totalorder %s8633_s23, %s8633_s23 }
  0xb6   : > { %p7304_p9 = scmp.ne.s32.totalorder %s8633_s23, %s7303_s16  ;;  %p7312_p6 = scmp.lt.s32.totalorder %s7303_s16, %s7303_s16 }
  0xb8   : > { %p7306_p10 = pnand %p7304_p9, %p8602_p0  ;;  %p7313_p7 = por %p7312_p6, %p7311_p3 }
  0xba   : > { %p7307_p2 = pneg %p7306_p10 }
  0xbc   : > { %p7314_p11 = pnand %p7313_p7, %p7307_p2 }
  0xbe   : > { %7317 = shalt.err (!%p7314_p11)
}
  0xbf   : > { %6855 = dma.hbm_to_vmem [thread:$0]  (!%p8592_p12), %s10041_s3, 256, %s8633_s23, [#allocation17], %s9974_s1, %s9974_s1, %s9975_s28  }
  0xc0   : > { %s8306_s15 = smov [#allocation9]   ;;  %s8307_s7 = smov [#allocation12]  }
  0xc1   : > { %s964_s11 = sshll.u32 %s8306_s15, 4  ;;  %s989_s9 = sshll.u32 %s8307_s7, 4  ;;  %s965_s11 = int_to_ptr.vmem [resolvable:$true] %s964_s11  ;;  %s8666_s9 = int_to_ptr.vmem [resolvable:$true] %s989_s9 }
  0xc2   : > { %s7318_s16 = scalar_lea.hbm %s10036_s13, 512 }
  0xc3   : > { %p7319_p13 = scmp.ne.s32.totalorder %s10036_s13, %s7318_s16  ;;  %p7325_p8 = scmp.lt.u32.totalorder %s7318_s16, %s10036_s13 }
  0xc5   : > { %p7321_p1 = pnand %p7319_p13, %p8602_p0 }
  0xc7   : > { %p7322_p5 = pneg %p7321_p1 }
  0xc9   : > { %p7327_p4 = pnand %p7325_p8, %p7322_p5 }
  0xcb   : > { %7330 = shalt.err (!%p7327_p4)
}
  0xcc   : > { %s7331_s17 = scalar_lea.vmem %s965_s11, 512  ;;  %p7339_p3 = scmp.lt.s32.totalorder %s965_s11, %s965_s11 }
  0xcd   : > { %p7332_p9 = scmp.ne.s32.totalorder %s965_s11, %s7331_s17  ;;  %p7340_p6 = scmp.lt.s32.totalorder %s7331_s17, %s7331_s17 }
  0xcf   : > { %p7334_p10 = pnand %p7332_p9, %p8602_p0  ;;  %p7341_p7 = por %p7340_p6, %p7339_p3 }
  0xd1   : > { %p7335_p2 = pneg %p7334_p10 }
  0xd3   : > { %p7342_p11 = pnand %p7341_p7, %p7335_p2 }
  0xd5   : > { %7345 = shalt.err (!%p7342_p11)
}
  0xd6   : > { %6840 = dma.hbm_to_vmem [thread:$0]  (!%p8592_p12), %s10036_s13, 512, %s965_s11, [#allocation8], %s9974_s1, %s9974_s1, %s9975_s28  }
  0xd7   : > { %s7346_s23 = scalar_lea.hbm %s8384_s21, 32 }
  0xd8   : > { %p7347_p13 = scmp.ne.s32.totalorder %s8384_s21, %s7346_s23  ;;  %p7353_p8 = scmp.lt.u32.totalorder %s7346_s23, %s8384_s21 }
  0xda   : > { %p7349_p1 = pnand %p7347_p13, %p8602_p0 }
  0xdc   : > { %p7350_p5 = pneg %p7349_p1 }
  0xde   : > { %p7355_p4 = pnand %p7353_p8, %p7350_p5 }
  0xe0   : > { %7358 = shalt.err (!%p7355_p4)
}
  0xe1   : > { %s7359_s17 = scalar_lea.vmem %s8666_s9, 32  ;;  %p7367_p3 = scmp.lt.s32.totalorder %s8666_s9, %s8666_s9 }
  0xe2   : > { %p7360_p9 = scmp.ne.s32.totalorder %s8666_s9, %s7359_s17  ;;  %p7368_p6 = scmp.lt.s32.totalorder %s7359_s17, %s7359_s17 }
  0xe4   : > { %p7362_p10 = pnand %p7360_p9, %p8602_p0  ;;  %p7369_p7 = por %p7368_p6, %p7367_p3 }
  0xe6   : > { %p7363_p2 = pneg %p7362_p10 }
  0xe8   : > { %p7370_p11 = pnand %p7369_p7, %p7363_p2 }
  0xea   : > { %7373 = shalt.err (!%p7370_p11)
}
  0xeb   : > { %6846 = dma.hbm_to_vmem [thread:$0]  (!%p8592_p12), %s8384_s21, 32, %s8666_s9, [#allocation11]  }
  0xec   : > { %s8308_s15 = smov [#allocation15]   ;;  %s8309_s7 = smov [#allocation18]  }
  0xed   : > { %s1013_s11 = sshll.u32 %s8308_s15, 4  ;;  %s1037_s16 = sshll.u32 %s8309_s7, 4  ;;  %s1014_s11 = int_to_ptr.vmem [resolvable:$true] %s1013_s11  ;;  %s8696_s16 = int_to_ptr.vmem [resolvable:$true] %s1037_s16 }
  0xee   : > { %s7374_s23 = scalar_lea.hbm %s8394_s29, 16 }
  0xef   : > { %p7375_p13 = scmp.ne.s32.totalorder %s8394_s29, %s7374_s23  ;;  %p7381_p8 = scmp.lt.u32.totalorder %s7374_s23, %s8394_s29 }
  0xf1   : > { %p7377_p1 = pnand %p7375_p13, %p8602_p0 }
  0xf3   : > { %p7378_p5 = pneg %p7377_p1 }
  0xf5   : > { %p7383_p4 = pnand %p7381_p8, %p7378_p5 }
  0xf7   : > { %7386 = shalt.err (!%p7383_p4)
}
  0xf8   : > { %s7387_s17 = scalar_lea.vmem %s1014_s11, 16  ;;  %s7394_s9 = scalar_lea.vmem %s1014_s11, 32 }
  0xf9   : > { %p7388_p9 = scmp.ne.s32.totalorder %s1014_s11, %s7387_s17  ;;  %p7395_p3 = scmp.lt.s32.totalorder %s1014_s11, %s1014_s11 }
  0xfa   : > { %p7396_p6 = scmp.lt.s32.totalorder %s7394_s9, %s7387_s17 }
  0xfb   : > { %p7390_p10 = pnand %p7388_p9, %p8602_p0 }
  0xfc   : > { %p7397_p7 = por %p7396_p6, %p7395_p3 }
  0xfd   : > { %p7391_p2 = pneg %p7390_p10 }
  0xff   : > { %p7398_p11 = pnand %p7397_p7, %p7391_p2 }
 0x101   : > { %7401 = shalt.err (!%p7398_p11)
}
 0x102   : > { %6852 = dma.hbm_to_vmem [thread:$0]  (!%p8592_p12), %s8394_s29, 16, %s1014_s11, [#allocation14]  }
 0x103   : > { %s7402_s15 = scalar_lea.hbm %s10038_s8, 16 }
 0x104   : > { %p7403_p13 = scmp.ne.s32.totalorder %s10038_s8, %s7402_s15  ;;  %p7409_p8 = scmp.lt.u32.totalorder %s7402_s15, %s10038_s8 }
 0x106   : > { %p7405_p1 = pnand %p7403_p13, %p8602_p0 }
 0x108   : > { %p7406_p5 = pneg %p7405_p1 }
 0x10a   : > { %p7411_p4 = pnand %p7409_p8, %p7406_p5 }
 0x10c   : > { %7414 = shalt.err (!%p7411_p4)
}
 0x10d   : > { %s7415_s7 = scalar_lea.vmem %s8696_s16, 16  ;;  %s7422_s23 = scalar_lea.vmem %s8696_s16, 32 }
 0x10e   : > { %p7416_p9 = scmp.ne.s32.totalorder %s8696_s16, %s7415_s7  ;;  %p7423_p3 = scmp.lt.s32.totalorder %s8696_s16, %s8696_s16 }
 0x10f   : > { %p7424_p6 = scmp.lt.s32.totalorder %s7422_s23, %s7415_s7 }
 0x110   : > { %p7418_p10 = pnand %p7416_p9, %p8602_p0 }
 0x111   : > { %p7425_p7 = por %p7424_p6, %p7423_p3 }
 0x112   : > { %p7419_p2 = pneg %p7418_p10 }
 0x114   : > { %p7426_p11 = pnand %p7425_p7, %p7419_p2 }
 0x116   : > { %7429 = shalt.err (!%p7426_p11)
}
 0x117   : > { %6858 = dma.hbm_to_vmem [thread:$0]  (!%p8592_p12), %s10038_s8, 16, %s8696_s16, [#allocation17]  }
 0x118   : > { %s8310_s11 = smov [#allocation4]   ;;  %s8311_s9 = smov [#allocation19]  }
 0x119   : > { %s938_s17 = sshll.u32 %s8310_s11, 4  ;;  %s1047_s15 = sshll.u32 %s8311_s9, 4  ;;  %s939_s17 = int_to_ptr.vmem [resolvable:$true] %s938_s17  ;;  %s8724_s15 = int_to_ptr.vmem [resolvable:$true] %s1047_s15 }
 0x11a   : > { %s7430_s7 = scalar_lea.hbm %s10039_s5, 512 }
 0x11b   : > { %p7431_p13 = scmp.ne.s32.totalorder %s10039_s5, %s7430_s7  ;;  %p7437_p8 = scmp.lt.u32.totalorder %s7430_s7, %s10039_s5 }
 0x11d   : > { %p7433_p1 = pnand %p7431_p13, %p8602_p0 }
 0x11f   : > { %p7434_p5 = pneg %p7433_p1 }
 0x121   : > { %p7439_p4 = pnand %p7437_p8, %p7434_p5 }
 0x123   : > { %7442 = shalt.err (!%p7439_p4)
}
 0x124   : > { %s7443_s23 = scalar_lea.vmem %s939_s17, 512  ;;  %p7451_p3 = scmp.lt.s32.totalorder %s939_s17, %s939_s17 }
 0x125   : > { %p7444_p9 = scmp.ne.s32.totalorder %s939_s17, %s7443_s23  ;;  %p7452_p6 = scmp.lt.s32.totalorder %s7443_s23, %s7443_s23 }
 0x127   : > { %p7446_p10 = pnand %p7444_p9, %p8602_p0  ;;  %p7453_p7 = por %p7452_p6, %p7451_p3 }
 0x129   : > { %p7447_p2 = pneg %p7446_p10 }
 0x12b   : > { %p7454_p11 = pnand %p7453_p7, %p7447_p2 }
 0x12d   : > { %7457 = shalt.err (!%p7454_p11)
}
 0x12e   : > { %s10053_s16 = smov 8   ;;  %s10054_s11 = smov 128  }
 0x12f   : > { %6834 = dma.hbm_to_vmem [thread:$0]  (!%p8592_p12), %s10039_s5, 512, %s939_s17, [#allocation5], %s10054_s11, %s10054_s11, %s10053_s16  }
 0x130   : > { %s7458_s9 = scalar_lea.hbm %s10035_s14, 256 }
 0x131   : > { %p7459_p13 = scmp.ne.s32.totalorder %s10035_s14, %s7458_s9  ;;  %p7465_p8 = scmp.lt.u32.totalorder %s7458_s9, %s10035_s14 }
 0x133   : > { %p7461_p1 = pnand %p7459_p13, %p8602_p0 }
 0x135   : > { %p7462_p5 = pneg %p7461_p1 }
 0x137   : > { %p7467_p4 = pnand %p7465_p8, %p7462_p5 }
 0x139   : > { %7470 = shalt.err (!%p7467_p4)
}
 0x13a   : > { %s7471_s7 = scalar_lea.vmem %s8724_s15, 256  ;;  %p7479_p3 = scmp.lt.s32.totalorder %s8724_s15, %s8724_s15 }
 0x13b   : > { %p7472_p9 = scmp.ne.s32.totalorder %s8724_s15, %s7471_s7  ;;  %p7480_p6 = scmp.lt.s32.totalorder %s7471_s7, %s7471_s7 }
 0x13d   : > { %p7474_p10 = pnand %p7472_p9, %p8602_p0  ;;  %p7481_p7 = por %p7480_p6, %p7479_p3 }
 0x13f   : > { %p7475_p2 = pneg %p7474_p10 }
 0x141   : > { %p7482_p11 = pnand %p7481_p7, %p7475_p2 }
 0x143   : > { %7485 = shalt.err (!%p7482_p11)
}
 0x144   : > { %6861 = dma.hbm_to_vmem [thread:$0]  (!%p8592_p12), %s10035_s14, 256, %s8724_s15, [#allocation20], %s10054_s11, %s10054_s11, %s10053_s16  }
 0x145   : > { %s8312_s17 = smov [#allocation41]   ;;  %s8313_s9 = smov [#allocation42]  }
 0x146   : > { %s1061_s23 = sshll.u32 %s8312_s17, 4  ;;  %s1072_s1 = sshll.u32 %s8313_s9, 4  ;;  %s1062_s23 = int_to_ptr.vmem [resolvable:$true] %s1061_s23  ;;  %s8757_s1 = int_to_ptr.vmem [resolvable:$true] %s1072_s1 }
 0x147   : > { %s7486_s7 = scalar_lea.hbm %s10037_s12, 16 }
 0x148   : > { %p7487_p13 = scmp.ne.s32.totalorder %s10037_s12, %s7486_s7  ;;  %p7493_p8 = scmp.lt.u32.totalorder %s7486_s7, %s10037_s12 }
 0x14a   : > { %p7489_p1 = pnand %p7487_p13, %p8602_p0 }
 0x14c   : > { %p7490_p5 = pneg %p7489_p1 }
 0x14e   : > { %p7495_p4 = pnand %p7493_p8, %p7490_p5 }
 0x150   : > { %7498 = shalt.err (!%p7495_p4)
}
 0x151   : > { %s7499_s28 = scalar_lea.vmem %s1062_s23, 16  ;;  %s7506_s15 = scalar_lea.vmem %s1062_s23, 32 }
 0x152   : > { %p7500_p9 = scmp.ne.s32.totalorder %s1062_s23, %s7499_s28  ;;  %p7507_p3 = scmp.lt.s32.totalorder %s1062_s23, %s1062_s23 }
 0x153   : > { %p7508_p6 = scmp.lt.s32.totalorder %s7506_s15, %s7499_s28 }
 0x154   : > { %p7502_p10 = pnand %p7500_p9, %p8602_p0 }
 0x155   : > { %p7509_p7 = por %p7508_p6, %p7507_p3 }
 0x156   : > { %p7503_p2 = pneg %p7502_p10 }
 0x158   : > { %p7510_p11 = pnand %p7509_p7, %p7503_p2 }
 0x15a   : > { %7513 = shalt.err (!%p7510_p11)
}
 0x15b   : > { %6864 = dma.hbm_to_vmem [thread:$0]  (!%p8592_p12), %s10037_s12, 16, %s1062_s23, [#allocation8]  }
 0x15c   : > { %s7514_s16 = scalar_lea.hbm %s10033_s20, 16 }
 0x15d   : > { %p7515_p13 = scmp.ne.s32.totalorder %s10033_s20, %s7514_s16  ;;  %p7521_p8 = scmp.lt.u32.totalorder %s7514_s16, %s10033_s20 }
 0x15f   : > { %p7517_p1 = pnand %p7515_p13, %p8602_p0 }
 0x161   : > { %p7518_p5 = pneg %p7517_p1 }
 0x163   : > { %p7523_p4 = pnand %p7521_p8, %p7518_p5 }
 0x165   : > { %7526 = shalt.err (!%p7523_p4)
}
 0x166   : > { %s7527_s28 = scalar_lea.vmem %s8757_s1, 16  ;;  %s7534_s11 = scalar_lea.vmem %s8757_s1, 32 }
 0x167   : > { %p7528_p9 = scmp.ne.s32.totalorder %s8757_s1, %s7527_s28  ;;  %p7535_p3 = scmp.lt.s32.totalorder %s8757_s1, %s8757_s1 }
 0x168   : > { %p7536_p6 = scmp.lt.s32.totalorder %s7534_s11, %s7527_s28 }
 0x169   : > { %p7530_p10 = pnand %p7528_p9, %p8602_p0 }
 0x16a   : > { %p7537_p7 = por %p7536_p6, %p7535_p3 }
 0x16b   : > { %p7531_p2 = pneg %p7530_p10 }
 0x16d   : > { %p7538_p11 = pnand %p7537_p7, %p7531_p2 }
 0x16f   : > { %7541 = shalt.err (!%p7538_p11)
}
 0x170   : > { %6867 = dma.hbm_to_vmem [thread:$0]  (!%p8592_p12), %s10033_s20, 16, %s8757_s1, [#allocation11]  }
 0x171   : > { %s8314_s17 = smov [#allocation43]   ;;  %s8315_s9 = smov [#allocation44]  }
 0x172   : > { %s1082_s23 = sshll.u32 %s8314_s17, 4  ;;  %s1096_s7 = sshll.u32 %s8315_s9, 4  ;;  %s1083_s23 = int_to_ptr.vmem [resolvable:$true] %s1082_s23  ;;  %s8785_s7 = int_to_ptr.vmem [resolvable:$true] %s1096_s7 }
 0x173   : > { %s7542_s15 = scalar_lea.hbm %s8524_s27, 256 }
 0x174   : > { %p7543_p13 = scmp.ne.s32.totalorder %s8524_s27, %s7542_s15  ;;  %p7549_p8 = scmp.lt.u32.totalorder %s7542_s15, %s8524_s27 }
 0x176   : > { %p7545_p1 = pnand %p7543_p13, %p8602_p0 }
 0x178   : > { %p7546_p5 = pneg %p7545_p1 }
 0x17a   : > { %p7551_p4 = pnand %p7549_p8, %p7546_p5 }
 0x17c   : > { %7554 = shalt.err (!%p7551_p4)
}
 0x17d   : > { %s7555_s16 = scalar_lea.vmem %s1083_s23, 256  ;;  %p7563_p3 = scmp.lt.s32.totalorder %s1083_s23, %s1083_s23 }
 0x17e   : > { %p7556_p9 = scmp.ne.s32.totalorder %s1083_s23, %s7555_s16  ;;  %p7564_p6 = scmp.lt.s32.totalorder %s7555_s16, %s7555_s16 }
 0x180   : > { %p7558_p10 = pnand %p7556_p9, %p8602_p0  ;;  %p7565_p7 = por %p7564_p6, %p7563_p3 }
 0x182   : > { %p7559_p2 = pneg %p7558_p10 }
 0x184   : > { %p7566_p11 = pnand %p7565_p7, %p7559_p2 }
 0x186   : > { %7569 = shalt.err (!%p7566_p11)
}
 0x187   : > { %s10055_s1 = smov 4   ;;  %s10056_s28 = smov 64  }
 0x188   : > { %6870 = dma.hbm_to_vmem [thread:$0]  (!%p8592_p12), %s8524_s27, 256, %s1083_s23, [#allocation14], %s10056_s28, %s10056_s28, %s10055_s1  }
 0x189   : > { %s7570_s11 = scalar_lea.hbm %s10040_s4, 16 }
 0x18a   : > { %p7571_p13 = scmp.ne.s32.totalorder %s10040_s4, %s7570_s11  ;;  %p7577_p8 = scmp.lt.u32.totalorder %s7570_s11, %s10040_s4 }
 0x18c   : > { %p7573_p1 = pnand %p7571_p13, %p8602_p0 }
 0x18e   : > { %p7574_p5 = pneg %p7573_p1 }
 0x190   : > { %p7579_p4 = pnand %p7577_p8, %p7574_p5 }
 0x192   : > { %7582 = shalt.err (!%p7579_p4)
}
 0x193   : > { %s7583_s17 = scalar_lea.vmem %s8785_s7, 16  ;;  %s7590_s9 = scalar_lea.vmem %s8785_s7, 32 }
 0x194   : > { %p7584_p9 = scmp.ne.s32.totalorder %s8785_s7, %s7583_s17  ;;  %p7591_p3 = scmp.lt.s32.totalorder %s8785_s7, %s8785_s7 }
 0x195   : > { %p7592_p6 = scmp.lt.s32.totalorder %s7590_s9, %s7583_s17 }
 0x196   : > { %p7586_p10 = pnand %p7584_p9, %p8602_p0 }
 0x197   : > { %p7593_p7 = por %p7592_p6, %p7591_p3 }
 0x198   : > { %p7587_p2 = pneg %p7586_p10 }
 0x19a   : > { %p7594_p11 = pnand %p7593_p7, %p7587_p2 }
 0x19c   : > { %7597 = shalt.err (!%p7594_p11)
}
 0x19d   : > { %6873 = dma.hbm_to_vmem [thread:$0]  (!%p8592_p12), %s10040_s4, 16, %s8785_s7, [#allocation17]  }
 0x19e   : > { %p6079_p13 = scmp.ge.s32.totalorder %s8262_s22, 2 }
 0x19f   : > { %s1107_s6 = sand.u32 (!%p6079_p13), 1, %s8262_s22   ;;  %s8819_s23 = sand.u32 (!%p6079_p13), 1, %s8258_s18  }
 0x1a0   : > { %1103 = sbr.rel (%p6079_p13) target bundleno = 898 (0x382), region = 72  ;;  %s8822_s15 = sshll.u32 (!%p6079_p13), %s8262_s22, 4 }
 0x1a1   : > { %s1110_s26 = scalar_lea.vmem (!%p6079_p13), [#allocation21], %s8819_s23  ;;  %s8827_s7 = scalar_lea.hbm (!%p6079_p13), %s10034_s19, %s8822_s15 }
 0x1a2   : > { %s1117_s16 = sshll.u32 (!%p6079_p13), %s1110_s26, 4  ;;  %s8829_s1 = scalar_lea.sflag (!%p6079_p13), [#allocation5], %s1107_s6  ;;  %s1118_s16 = int_to_ptr.vmem [resolvable:$true] %s1117_s16 }
 0x1a3   : > { %s7598_s28 = scalar_lea.hbm (!%p6079_p13), %s8827_s7, 16  ;;  %p10057_p0 = scmp.ne.s32.totalorder (!%p6079_p13), %s10047_s2, 0 }
 0x1a4   : > { %p7599_p12 = scmp.ne.s32.totalorder (!%p6079_p13), %s8827_s7, %s7598_s28  ;;  %s7602_s11 = scalar_lea.hbm (!%p6079_p13), %s10034_s19, 32 }
 0x1a5   : > { %p7603_p8 = scmp.lt.u32.totalorder (!%p6079_p13), %s8827_s7, %s10034_s19  ;;  %p7604_p4 = scmp.lt.u32.totalorder (!%p6079_p13), %s7602_s11, %s7598_s28 }
 0x1a6   : > { %p7600_p1 = pnand (!%p6079_p13), %p7599_p12, %p10057_p0  ;;  %p7606_p10 = scmp.lt.u32.totalorder (!%p6079_p13), %s7598_s28, %s8827_s7 }
 0x1a7   : > { %p7605_p9 = por %p7604_p4, %p7603_p8 }
 0x1a8   : > { %p7601_p5 = pneg %p7600_p1 }
 0x1a9   : > { %p7607_p2 = por %p7606_p10, %p7605_p9 }
 0x1ab   : > { %p7608_p3 = pnand %p7607_p2, %p7601_p5 }
 0x1ad   : > { %7611 = shalt.err (!%p7608_p3)
}
 0x1ae   : > { %s7612_s17 = scalar_lea.vmem %s1118_s16, 16  ;;  %s8316_s9 = smov [#allocation21]  }
 0x1af   : > { %p7613_p6 = scmp.ne.s32.totalorder %s1118_s16, %s7612_s17  ;;  %s7616_s6 = sshll.u32 %s8316_s9, 4  ;;  %s7617_s6 = int_to_ptr.vmem [resolvable:$false] %s7616_s6 }
 0x1b0   : > { %s7618_s26 = scalar_lea.vmem %s7617_s6, 32  ;;  %p7619_p13 = scmp.lt.s32.totalorder %s1118_s16, %s7617_s6 }
 0x1b1   : > { %p7614_p7 = pnand %p7613_p6, %p10057_p0  ;;  %p7620_p12 = scmp.lt.s32.totalorder %s7618_s26, %s7612_s17 }
 0x1b3   : > { %p7615_p11 = pneg %p7614_p7  ;;  %p7621_p1 = por %p7620_p12, %p7619_p13 }
 0x1b5   : > { %p7622_p4 = pnand %p7621_p1, %p7615_p11 }
 0x1b7   : > { %7625 = shalt.err (!%p7622_p4)
}
 0x1b8   : > { %6759 = dma.hbm_to_vmem [thread:$0]  (%p10057_p0), %s8827_s7, 16, %s1118_s16, %s8829_s1  }
 0x1b9   : > { %s8847_s28 = scalar_lea.hbm %s8419_s24, %s8822_s15  ;;  %s1127_s11 = scalar_lea.vmem [#allocation22], %s8819_s23 }
 0x1ba   : > { %s1134_s17 = sshll.u32 %s1127_s11, 4  ;;  %s8851_s9 = sshll.u32 %s8819_s23, 4  ;;  %s1135_s17 = int_to_ptr.vmem [resolvable:$true] %s1134_s17 }
 0x1bb   : > { %s7626_s6 = scalar_lea.hbm %s8847_s28, 16  ;;  %s7630_s26 = scalar_lea.hbm %s8419_s24, 32 }
 0x1bc   : > { %p7627_p5 = scmp.ne.s32.totalorder %s8847_s28, %s7626_s6  ;;  %p7631_p10 = scmp.lt.u32.totalorder %s8847_s28, %s8419_s24 }
 0x1bd   : > { %p7632_p2 = scmp.lt.u32.totalorder %s7630_s26, %s7626_s6  ;;  %p7634_p6 = scmp.lt.u32.totalorder %s7626_s6, %s8847_s28 }
 0x1be   : > { %p7628_p8 = pnand %p7627_p5, %p10057_p0 }
 0x1bf   : > { %p7633_p3 = por %p7632_p2, %p7631_p10 }
 0x1c0   : > { %p7629_p9 = pneg %p7628_p8 }
 0x1c1   : > { %p7635_p7 = por %p7634_p6, %p7633_p3 }
 0x1c3   : > { %p7636_p11 = pnand %p7635_p7, %p7629_p9 }
 0x1c5   : > { %7639 = shalt.err (!%p7636_p11)
}
 0x1c6   : > { %s7640_s16 = scalar_lea.vmem %s1135_s17, 16  ;;  %s8317_s7 = smov [#allocation22]  }
 0x1c7   : > { %p7641_p13 = scmp.ne.s32.totalorder %s1135_s17, %s7640_s16  ;;  %s7644_s11 = sshll.u32 %s8317_s7, 4  ;;  %s7645_s11 = int_to_ptr.vmem [resolvable:$false] %s7644_s11 }
 0x1c8   : > { %s7646_s3 = scalar_lea.vmem %s7645_s11, 32  ;;  %p7647_p4 = scmp.lt.s32.totalorder %s1135_s17, %s7645_s11 }
 0x1c9   : > { %p7642_p12 = pnand %p7641_p13, %p10057_p0  ;;  %p7648_p5 = scmp.lt.s32.totalorder %s7646_s3, %s7640_s16 }
 0x1cb   : > { %p7643_p1 = pneg %p7642_p12  ;;  %p7649_p8 = por %p7648_p5, %p7647_p4 }
 0x1cd   : > { %p7650_p2 = pnand %p7649_p8, %p7643_p1 }
 0x1cf   : > { %7653 = shalt.err (!%p7650_p2)
}
 0x1d0   : > { %6760 = dma.hbm_to_vmem [thread:$0]  (%p10057_p0), %s8847_s28, 16, %s1135_s17, %s8829_s1  }
 0x1d1   : > { %s8868_s6 = sshll.u32 %s8262_s22, 8  ;;  %s1145_s26 = scalar_lea.vmem [#allocation23], %s8851_s9 }
 0x1d2   : > { %s1152_s7 = sshll.u32 %s1145_s26, 4  ;;  %s8873_s3 = scalar_lea.hbm %s8424_s30, %s8868_s6  ;;  %s8875_s7 = int_to_ptr.vmem [resolvable:$true] %s1152_s7 }
 0x1d3   : > { %s7654_s16 = scalar_lea.hbm %s8873_s3, 256  ;;  %s7658_s11 = scalar_lea.hbm %s8424_s30, 512 }
 0x1d4   : > { %p7655_p9 = scmp.ne.s32.totalorder %s8873_s3, %s7654_s16  ;;  %p7659_p6 = scmp.lt.u32.totalorder %s8873_s3, %s8424_s30 }
 0x1d5   : > { %p7660_p7 = scmp.lt.u32.totalorder %s7658_s11, %s7654_s16  ;;  %p7662_p13 = scmp.lt.u32.totalorder %s7654_s16, %s8873_s3 }
 0x1d6   : > { %p7656_p10 = pnand %p7655_p9, %p10057_p0 }
 0x1d7   : > { %p7661_p11 = por %p7660_p7, %p7659_p6 }
 0x1d8   : > { %p7657_p3 = pneg %p7656_p10 }
 0x1d9   : > { %p7663_p12 = por %p7662_p13, %p7661_p11 }
 0x1db   : > { %p7664_p1 = pnand %p7663_p12, %p7657_p3 }
 0x1dd   : > { %7667 = shalt.err (!%p7664_p1)
}
 0x1de   : > { %s7668_s28 = scalar_lea.vmem %s8875_s7, 256  ;;  %s8318_s17 = smov [#allocation23]  }
 0x1df   : > { %p7669_p4 = scmp.ne.s32.totalorder %s8875_s7, %s7668_s28  ;;  %s7672_s26 = sshll.u32 %s8318_s17, 4  ;;  %s7673_s26 = int_to_ptr.vmem [resolvable:$false] %s7672_s26 }
 0x1e0   : > { %s7674_s4 = scalar_lea.vmem %s7673_s26, 512  ;;  %p7675_p2 = scmp.lt.s32.totalorder %s8875_s7, %s7673_s26 }
 0x1e1   : > { %p7670_p5 = pnand %p7669_p4, %p10057_p0  ;;  %p7676_p9 = scmp.lt.s32.totalorder %s7674_s4, %s7668_s28 }
 0x1e3   : > { %p7671_p8 = pneg %p7670_p5  ;;  %p7677_p10 = por %p7676_p9, %p7675_p2 }
 0x1e5   : > { %p7678_p6 = pnand %p7677_p10, %p7671_p8 }
 0x1e7   : > { %7681 = shalt.err (!%p7678_p6)
}
 0x1e8   : > { %s9982_s16 = smov 64   ;;  %s10058_s11 = sld [smem:[#allocation66_spill]] }
 0x1e9   : > { %s10059_s5 = sld [smem:[#allocation67_spill]]  ;;  %s9984_s17 = smov 4  }
 0x1ea   : > { %6761 = dma.hbm_to_vmem [thread:$0]  (%p10057_p0), %s8873_s3, 256, %s8875_s7, %s8829_s1, %s9982_s16, %s9982_s16, %s9984_s17  }
 0x1eb   : > { %s1165_s28 = scalar_lea.vmem [#allocation24], %s8819_s23 }
 0x1ec   : > { %s1172_s26 = sshll.u32 %s1165_s28, 4  ;;  %s1173_s26 = int_to_ptr.vmem [resolvable:$true] %s1172_s26 }
 0x1ee   : > { %s8900_s4 = scalar_lea.hbm %s10058_s11, %s8822_s15  ;;  %s7686_s13 = scalar_lea.hbm %s10058_s11, 32 }
 0x1ef   : > { %s8905_s8 = scalar_lea.hbm %s10059_s5, %s8868_s6  ;;  %s7682_s12 = scalar_lea.hbm %s8900_s4, 16 }
 0x1f0   : > { %p7683_p3 = scmp.ne.s32.totalorder %s8900_s4, %s7682_s12  ;;  %p7687_p13 = scmp.lt.u32.totalorder %s8900_s4, %s10058_s11 }
 0x1f1   : > { %p7688_p12 = scmp.lt.u32.totalorder %s7686_s13, %s7682_s12  ;;  %p7690_p4 = scmp.lt.u32.totalorder %s7682_s12, %s8900_s4 }
 0x1f2   : > { %p7684_p7 = pnand %p7683_p3, %p10057_p0 }
 0x1f3   : > { %p7689_p1 = por %p7688_p12, %p7687_p13 }
 0x1f4   : > { %p7685_p11 = pneg %p7684_p7 }
 0x1f5   : > { %p7691_p5 = por %p7690_p4, %p7689_p1 }
 0x1f7   : > { %p7692_p8 = pnand %p7691_p5, %p7685_p11 }
 0x1f9   : > { %7695 = shalt.err (!%p7692_p8)
}
 0x1fa   : > { %s7696_s7 = scalar_lea.vmem %s1173_s26, 16  ;;  %s8321_s3 = smov [#allocation24]  }
 0x1fb   : > { %p7697_p2 = scmp.ne.s32.totalorder %s1173_s26, %s7696_s7  ;;  %s7700_s28 = sshll.u32 %s8321_s3, 4  ;;  %s7701_s28 = int_to_ptr.vmem [resolvable:$false] %s7700_s28 }
 0x1fc   : > { %s7702_s16 = scalar_lea.vmem %s7701_s28, 32  ;;  %p7703_p6 = scmp.lt.s32.totalorder %s1173_s26, %s7701_s28 }
 0x1fd   : > { %p7698_p9 = pnand %p7697_p2, %p10057_p0  ;;  %p7704_p3 = scmp.lt.s32.totalorder %s7702_s16, %s7696_s7 }
 0x1ff   : > { %p7699_p10 = pneg %p7698_p9  ;;  %p7705_p7 = por %p7704_p3, %p7703_p6 }
 0x201   : > { %p7706_p12 = pnand %p7705_p7, %p7699_p10 }
 0x203   : > { %7709 = shalt.err (!%p7706_p12)
}
 0x204   : > { %s10060_s13 = sld [smem:[#allocation68_spill]]  ;;  %s1183_s12 = scalar_lea.vmem [#allocation25], %s8851_s9 }
 0x205   : > { %6762 = dma.hbm_to_vmem [thread:$0]  (%p10057_p0), %s8900_s4, 16, %s1173_s26, %s8829_s1  }
 0x206   : > { %s1190_s16 = sshll.u32 %s1183_s12, 4  ;;  %s7710_s3 = scalar_lea.hbm %s8905_s8, 256  ;;  %s8922_s16 = int_to_ptr.vmem [resolvable:$true] %s1190_s16 }
 0x207   : > { %p7711_p11 = scmp.ne.s32.totalorder %s8905_s8, %s7710_s3  ;;  %s7714_s28 = scalar_lea.hbm %s10059_s5, 512 }
 0x208   : > { %p7715_p4 = scmp.lt.u32.totalorder %s8905_s8, %s10059_s5  ;;  %p7716_p5 = scmp.lt.u32.totalorder %s7714_s28, %s7710_s3 }
 0x209   : > { %p7712_p13 = pnand %p7711_p11, %p10057_p0  ;;  %p7718_p2 = scmp.lt.u32.totalorder %s7710_s3, %s8905_s8 }
 0x20a   : > { %s8926_s7 = scalar_lea.hbm %s10060_s13, %s8822_s15  ;;  %p7717_p8 = por %p7716_p5, %p7715_p4 }
 0x20b   : > { %p7713_p1 = pneg %p7712_p13 }
 0x20c   : > { %p7719_p9 = por %p7718_p2, %p7717_p8 }
 0x20e   : > { %p7720_p10 = pnand %p7719_p9, %p7713_p1 }
 0x210   : > { %7723 = shalt.err (!%p7720_p10)
}
 0x211   : > { %s7724_s4 = scalar_lea.vmem %s8922_s16, 256  ;;  %s8322_s26 = smov [#allocation25]  }
 0x212   : > { %p7725_p6 = scmp.ne.s32.totalorder %s8922_s16, %s7724_s4  ;;  %s7728_s12 = sshll.u32 %s8322_s26, 4  ;;  %s7729_s12 = int_to_ptr.vmem [resolvable:$false] %s7728_s12 }
 0x213   : > { %s7730_s17 = scalar_lea.vmem %s7729_s12, 512  ;;  %p7731_p12 = scmp.lt.s32.totalorder %s8922_s16, %s7729_s12 }
 0x214   : > { %p7726_p3 = pnand %p7725_p6, %p10057_p0  ;;  %p7732_p11 = scmp.lt.s32.totalorder %s7730_s17, %s7724_s4 }
 0x216   : > { %p7727_p7 = pneg %p7726_p3  ;;  %p7733_p13 = por %p7732_p11, %p7731_p12 }
 0x218   : > { %p7734_p4 = pnand %p7733_p13, %p7727_p7 }
 0x21a   : > { %7737 = shalt.err (!%p7734_p4)
}
 0x21b   : > { %s10061_s3 = smov 4   ;;  %s10062_s28 = smov 64  }
 0x21c   : > { %s10063_s5 = sld [smem:[#allocation69_spill]]  ;;  %s1203_s17 = scalar_lea.vmem [#allocation26], %s8819_s23 }
 0x21d   : > { %6763 = dma.hbm_to_vmem [thread:$0]  (%p10057_p0), %s8905_s8, 256, %s8922_s16, %s8829_s1, %s10062_s28, %s10062_s28, %s10061_s3  }
 0x21e   : > { %s1210_s4 = sshll.u32 %s1203_s17, 4  ;;  %s7738_s12 = scalar_lea.hbm %s8926_s7, 16  ;;  %s1211_s4 = int_to_ptr.vmem [resolvable:$true] %s1210_s4 }
 0x21f   : > { %p7739_p1 = scmp.ne.s32.totalorder %s8926_s7, %s7738_s12  ;;  %s7742_s11 = scalar_lea.hbm %s10060_s13, 32 }
 0x220   : > { %p7743_p2 = scmp.lt.u32.totalorder %s8926_s7, %s10060_s13  ;;  %p7744_p9 = scmp.lt.u32.totalorder %s7742_s11, %s7738_s12 }
 0x221   : > { %p7740_p5 = pnand %p7739_p1, %p10057_p0  ;;  %p7746_p6 = scmp.lt.u32.totalorder %s7738_s12, %s8926_s7 }
 0x222   : > { %s8952_s26 = scalar_lea.hbm %s10063_s5, %s8822_s15  ;;  %p7745_p10 = por %p7744_p9, %p7743_p2 }
 0x223   : > { %p7741_p8 = pneg %p7740_p5 }
 0x224   : > { %p7747_p3 = por %p7746_p6, %p7745_p10 }
 0x226   : > { %p7748_p7 = pnand %p7747_p3, %p7741_p8 }
 0x228   : > { %7751 = shalt.err (!%p7748_p7)
}
 0x229   : > { %s7752_s14 = scalar_lea.vmem %s1211_s4, 16  ;;  %s8323_s8 = smov [#allocation26]  }
 0x22a   : > { %p7753_p12 = scmp.ne.s32.totalorder %s1211_s4, %s7752_s14  ;;  %s7756_s16 = sshll.u32 %s8323_s8, 4  ;;  %s7757_s16 = int_to_ptr.vmem [resolvable:$false] %s7756_s16 }
 0x22b   : > { %s7758_s17 = scalar_lea.vmem %s7757_s16, 32  ;;  %p7759_p4 = scmp.lt.s32.totalorder %s1211_s4, %s7757_s16 }
 0x22c   : > { %p7754_p11 = pnand %p7753_p12, %p10057_p0  ;;  %p7760_p1 = scmp.lt.s32.totalorder %s7758_s17, %s7752_s14 }
 0x22e   : > { %p7755_p13 = pneg %p7754_p11  ;;  %p7761_p5 = por %p7760_p1, %p7759_p4 }
 0x230   : > { %p7762_p2 = pnand %p7761_p5, %p7755_p13 }
 0x232   : > { %7765 = shalt.err (!%p7762_p2)
}
 0x233   : > { %s10064_s11 = sld [smem:[#allocation70_spill]]  ;;  %s1220_s12 = scalar_lea.vmem [#allocation27], %s8819_s23 }
 0x234   : > { %6764 = dma.hbm_to_vmem [thread:$0]  (%p10057_p0), %s8926_s7, 16, %s1211_s4, %s8829_s1  }
 0x235   : > { %s1227_s14 = sshll.u32 %s1220_s12, 4  ;;  %s7766_s16 = scalar_lea.hbm %s8952_s26, 16  ;;  %s1228_s14 = int_to_ptr.vmem [resolvable:$true] %s1227_s14 }
 0x236   : > { %p7767_p8 = scmp.ne.s32.totalorder %s8952_s26, %s7766_s16  ;;  %s7770_s17 = scalar_lea.hbm %s10063_s5, 32 }
 0x237   : > { %p7771_p6 = scmp.lt.u32.totalorder %s8952_s26, %s10063_s5  ;;  %p7772_p3 = scmp.lt.u32.totalorder %s7770_s17, %s7766_s16 }
 0x238   : > { %p7768_p9 = pnand %p7767_p8, %p10057_p0  ;;  %p7774_p12 = scmp.lt.u32.totalorder %s7766_s16, %s8952_s26 }
 0x239   : > { %s8971_s8 = scalar_lea.hbm %s10064_s11, %s8822_s15  ;;  %p7773_p7 = por %p7772_p3, %p7771_p6 }
 0x23a   : > { %p7769_p10 = pneg %p7768_p9 }
 0x23b   : > { %p7775_p11 = por %p7774_p12, %p7773_p7 }
 0x23d   : > { %p7776_p13 = pnand %p7775_p11, %p7769_p10 }
 0x23f   : > { %7779 = shalt.err (!%p7776_p13)
}
 0x240   : > { %s7780_s13 = scalar_lea.vmem %s1228_s14, 16  ;;  %s8324_s7 = smov [#allocation27]  }
 0x241   : > { %p7781_p4 = scmp.ne.s32.totalorder %s1228_s14, %s7780_s13  ;;  %s7784_s4 = sshll.u32 %s8324_s7, 4  ;;  %s7785_s4 = int_to_ptr.vmem [resolvable:$false] %s7784_s4 }
 0x242   : > { %s7786_s12 = scalar_lea.vmem %s7785_s4, 32  ;;  %p7787_p2 = scmp.lt.s32.totalorder %s1228_s14, %s7785_s4 }
 0x243   : > { %p7782_p1 = pnand %p7781_p4, %p10057_p0  ;;  %p7788_p8 = scmp.lt.s32.totalorder %s7786_s12, %s7780_s13 }
 0x245   : > { %p7783_p5 = pneg %p7782_p1  ;;  %p7789_p9 = por %p7788_p8, %p7787_p2 }
 0x247   : > { %p7790_p3 = pnand %p7789_p9, %p7783_p5 }
 0x249   : > { %7793 = shalt.err (!%p7790_p3)
}
 0x24a   : > { %s10065_s16 = sld [smem:[#allocation71_spill]]  ;;  %s1237_s7 = scalar_lea.vmem [#allocation28], %s8819_s23 }
 0x24b   : > { %6765 = dma.hbm_to_vmem [thread:$0]  (%p10057_p0), %s8952_s26, 16, %s1228_s14, %s8829_s1  }
 0x24c   : > { %s1244_s13 = sshll.u32 %s1237_s7, 4  ;;  %s7794_s12 = scalar_lea.hbm %s8971_s8, 16  ;;  %s1245_s13 = int_to_ptr.vmem [resolvable:$true] %s1244_s13 }
 0x24d   : > { %p7795_p10 = scmp.ne.s32.totalorder %s8971_s8, %s7794_s12  ;;  %s7798_s5 = scalar_lea.hbm %s10064_s11, 32 }
 0x24e   : > { %p7799_p12 = scmp.lt.u32.totalorder %s8971_s8, %s10064_s11  ;;  %p7800_p11 = scmp.lt.u32.totalorder %s7798_s5, %s7794_s12 }
 0x24f   : > { %p7796_p6 = pnand %p7795_p10, %p10057_p0  ;;  %p7802_p4 = scmp.lt.u32.totalorder %s7794_s12, %s8971_s8 }
 0x250   : > { %s10066_s17 = smov %s10065_s16  ;;  %s8990_s4 = scalar_lea.hbm %s10065_s16, %s8868_s6 }
 0x251   : > { %p7797_p7 = pneg %p7796_p6  ;;  %p7801_p13 = por %p7800_p11, %p7799_p12 }
 0x253   : > { %p7803_p1 = por %p7802_p4, %p7801_p13 }
 0x255   : > { %p7804_p5 = pnand %p7803_p1, %p7797_p7 }
 0x257   : > { %7807 = shalt.err (!%p7804_p5)
}
 0x258   : > { %s7808_s19 = scalar_lea.vmem %s1245_s13, 16  ;;  %s8325_s26 = smov [#allocation28]  }
 0x259   : > { %p7809_p2 = scmp.ne.s32.totalorder %s1245_s13, %s7808_s19  ;;  %s7812_s14 = sshll.u32 %s8325_s26, 4  ;;  %s7813_s14 = int_to_ptr.vmem [resolvable:$false] %s7812_s14 }
 0x25a   : > { %s7814_s16 = scalar_lea.vmem %s7813_s14, 32  ;;  %p7815_p3 = scmp.lt.s32.totalorder %s1245_s13, %s7813_s14 }
 0x25b   : > { %p7810_p8 = pnand %p7809_p2, %p10057_p0  ;;  %p7816_p10 = scmp.lt.s32.totalorder %s7814_s16, %s7808_s19 }
 0x25d   : > { %p7811_p9 = pneg %p7810_p8  ;;  %p7817_p6 = por %p7816_p10, %p7815_p3 }
 0x25f   : > { %p7818_p11 = pnand %p7817_p6, %p7811_p9 }
 0x261   : > { %7821 = shalt.err (!%p7818_p11)
}
 0x262   : > { %s10067_s5 = sld [smem:[#allocation72_spill]]  ;;  %s1255_s7 = scalar_lea.vmem [#allocation29], %s8851_s9 }
 0x263   : > { %6766 = dma.hbm_to_vmem [thread:$0]  (%p10057_p0), %s8971_s8, 16, %s1245_s13, %s8829_s1  }
 0x264   : > { %s1262_s19 = sshll.u32 %s1255_s7, 4  ;;  %s7822_s26 = scalar_lea.hbm %s8990_s4, 256  ;;  %s9007_s19 = int_to_ptr.vmem [resolvable:$true] %s1262_s19 }
 0x265   : > { %p7823_p7 = scmp.ne.s32.totalorder %s8990_s4, %s7822_s26  ;;  %s7826_s14 = scalar_lea.hbm %s10066_s17, 512 }
 0x266   : > { %p7827_p4 = scmp.lt.u32.totalorder %s8990_s4, %s10066_s17  ;;  %p7828_p1 = scmp.lt.u32.totalorder %s7826_s14, %s7822_s26 }
 0x267   : > { %p7824_p12 = pnand %p7823_p7, %p10057_p0  ;;  %p7830_p2 = scmp.lt.u32.totalorder %s7822_s26, %s8990_s4 }
 0x268   : > { %s9011_s12 = scalar_lea.hbm %s10067_s5, %s8822_s15  ;;  %p7829_p5 = por %p7828_p1, %p7827_p4 }
 0x269   : > { %p7825_p13 = pneg %p7824_p12 }
 0x26a   : > { %p7831_p8 = por %p7830_p2, %p7829_p5 }
 0x26c   : > { %p7832_p9 = pnand %p7831_p8, %p7825_p13 }
 0x26e   : > { %7835 = shalt.err (!%p7832_p9)
}
 0x26f   : > { %s7836_s8 = scalar_lea.vmem %s9007_s19, 256  ;;  %s8326_s13 = smov [#allocation29]  }
 0x270   : > { %p7837_p3 = scmp.ne.s32.totalorder %s9007_s19, %s7836_s8  ;;  %s7840_s16 = sshll.u32 %s8326_s13, 4  ;;  %s7841_s16 = int_to_ptr.vmem [resolvable:$false] %s7840_s16 }
 0x271   : > { %s7842_s7 = scalar_lea.vmem %s7841_s16, 512  ;;  %p7843_p11 = scmp.lt.s32.totalorder %s9007_s19, %s7841_s16 }
 0x272   : > { %p7838_p10 = pnand %p7837_p3, %p10057_p0  ;;  %p7844_p7 = scmp.lt.s32.totalorder %s7842_s7, %s7836_s8 }
 0x274   : > { %p7839_p6 = pneg %p7838_p10  ;;  %p7845_p12 = por %p7844_p7, %p7843_p11 }
 0x276   : > { %p7846_p4 = pnand %p7845_p12, %p7839_p6 }
 0x278   : > { %7849 = shalt.err (!%p7846_p4)
}
 0x279   : > { %s10068_s26 = sld [smem:[#allocation73_spill]]  ;;  %s1275_s14 = scalar_lea.vmem [#allocation30], %s8819_s23 }
 0x27a   : > { %6767 = dma.hbm_to_vmem [thread:$0]  (%p10057_p0), %s8990_s4, 256, %s9007_s19, %s8829_s1, %s10062_s28, %s10062_s28, %s10061_s3  }
 0x27b   : > { %s1282_s8 = sshll.u32 %s1275_s14, 4  ;;  %s7850_s16 = scalar_lea.hbm %s9011_s12, 16  ;;  %s1283_s8 = int_to_ptr.vmem [resolvable:$true] %s1282_s8 }
 0x27c   : > { %p7851_p13 = scmp.ne.s32.totalorder %s9011_s12, %s7850_s16  ;;  %s7854_s7 = scalar_lea.hbm %s10067_s5, 32 }
 0x27d   : > { %p7855_p2 = scmp.lt.u32.totalorder %s9011_s12, %s10067_s5  ;;  %p7856_p8 = scmp.lt.u32.totalorder %s7854_s7, %s7850_s16 }
 0x27e   : > { %p7852_p1 = pnand %p7851_p13, %p10057_p0  ;;  %p7858_p3 = scmp.lt.u32.totalorder %s7850_s16, %s9011_s12 }
 0x27f   : > { %s9037_s13 = scalar_lea.hbm %s10068_s26, %s8868_s6  ;;  %p7857_p9 = por %p7856_p8, %p7855_p2 }
 0x280   : > { %p7853_p5 = pneg %p7852_p1 }
 0x281   : > { %p7859_p10 = por %p7858_p3, %p7857_p9 }
 0x283   : > { %p7860_p6 = pnand %p7859_p10, %p7853_p5 }
 0x285   : > { %7863 = shalt.err (!%p7860_p6)
}
 0x286   : > { %s7864_s11 = scalar_lea.vmem %s1283_s8, 16  ;;  %s8327_s4 = smov [#allocation30]  }
 0x287   : > { %p7865_p11 = scmp.ne.s32.totalorder %s1283_s8, %s7864_s11  ;;  %s7868_s19 = sshll.u32 %s8327_s4, 4  ;;  %s7869_s19 = int_to_ptr.vmem [resolvable:$false] %s7868_s19 }
 0x288   : > { %s7870_s14 = scalar_lea.vmem %s7869_s19, 32  ;;  %p7871_p4 = scmp.lt.s32.totalorder %s1283_s8, %s7869_s19 }
 0x289   : > { %p7866_p7 = pnand %p7865_p11, %p10057_p0  ;;  %p7872_p13 = scmp.lt.s32.totalorder %s7870_s14, %s7864_s11 }
 0x28b   : > { %p7867_p12 = pneg %p7866_p7  ;;  %p7873_p1 = por %p7872_p13, %p7871_p4 }
 0x28d   : > { %p7874_p2 = pnand %p7873_p1, %p7867_p12 }
 0x28f   : > { %7877 = shalt.err (!%p7874_p2)
}
 0x290   : > { %s10069_s16 = sld [smem:[#allocation74_spill]]  ;;  %s1293_s4 = scalar_lea.vmem [#allocation31], %s8851_s9 }
 0x291   : > { %6768 = dma.hbm_to_vmem [thread:$0]  (%p10057_p0), %s9011_s12, 16, %s1283_s8, %s8829_s1  }
 0x292   : > { %s1300_s11 = sshll.u32 %s1293_s4, 4  ;;  %s7878_s14 = scalar_lea.hbm %s9037_s13, 256  ;;  %s9054_s11 = int_to_ptr.vmem [resolvable:$true] %s1300_s11 }
 0x293   : > { %p7879_p5 = scmp.ne.s32.totalorder %s9037_s13, %s7878_s14  ;;  %s7882_s5 = scalar_lea.hbm %s10068_s26, 512 }
 0x294   : > { %p7883_p3 = scmp.lt.u32.totalorder %s9037_s13, %s10068_s26  ;;  %p7884_p10 = scmp.lt.u32.totalorder %s7882_s5, %s7878_s14 }
 0x295   : > { %p7880_p8 = pnand %p7879_p5, %p10057_p0  ;;  %p7886_p11 = scmp.lt.u32.totalorder %s7878_s14, %s9037_s13 }
 0x296   : > { %s10070_s7 = smov %s10069_s16  ;;  %s9058_s19 = scalar_lea.hbm %s10069_s16, %s8822_s15 }
 0x297   : > { %p7881_p9 = pneg %p7880_p8  ;;  %p7885_p6 = por %p7884_p10, %p7883_p3 }
 0x299   : > { %p7887_p7 = por %p7886_p11, %p7885_p6 }
 0x29b   : > { %p7888_p12 = pnand %p7887_p7, %p7881_p9 }
 0x29d   : > { %7891 = shalt.err (!%p7888_p12)
}
 0x29e   : > { %s7892_s12 = scalar_lea.vmem %s9054_s11, 256  ;;  %s8328_s8 = smov [#allocation31]  }
 0x29f   : > { %p7893_p4 = scmp.ne.s32.totalorder %s9054_s11, %s7892_s12  ;;  %s7896_s16 = sshll.u32 %s8328_s8, 4  ;;  %s7897_s16 = int_to_ptr.vmem [resolvable:$false] %s7896_s16 }
 0x2a0   : > { %s7898_s4 = scalar_lea.vmem %s7897_s16, 512  ;;  %p7899_p2 = scmp.lt.s32.totalorder %s9054_s11, %s7897_s16 }
 0x2a1   : > { %p7894_p13 = pnand %p7893_p4, %p10057_p0  ;;  %p7900_p5 = scmp.lt.s32.totalorder %s7898_s4, %s7892_s12 }
 0x2a3   : > { %p7895_p1 = pneg %p7894_p13  ;;  %p7901_p8 = por %p7900_p5, %p7899_p2 }
 0x2a5   : > { %p7902_p3 = pnand %p7901_p8, %p7895_p1 }
 0x2a7   : > { %7905 = shalt.err (!%p7902_p3)
}
 0x2a8   : > { %s10071_s5 = sld [smem:[#allocation75_spill]]  ;;  %s1313_s14 = scalar_lea.vmem [#allocation32], %s8819_s23 }
 0x2a9   : > { %6769 = dma.hbm_to_vmem [thread:$0]  (%p10057_p0), %s9037_s13, 256, %s9054_s11, %s8829_s1, %s10062_s28, %s10062_s28, %s10061_s3  }
 0x2aa   : > { %s1320_s12 = sshll.u32 %s1313_s14, 4  ;;  %s7906_s16 = scalar_lea.hbm %s9058_s19, 16  ;;  %s1321_s12 = int_to_ptr.vmem [resolvable:$true] %s1320_s12 }
 0x2ab   : > { %p7907_p9 = scmp.ne.s32.totalorder %s9058_s19, %s7906_s16  ;;  %s7910_s4 = scalar_lea.hbm %s10070_s7, 32 }
 0x2ac   : > { %p7911_p11 = scmp.lt.u32.totalorder %s9058_s19, %s10070_s7  ;;  %p7912_p7 = scmp.lt.u32.totalorder %s7910_s4, %s7906_s16 }
 0x2ad   : > { %p7908_p10 = pnand %p7907_p9, %p10057_p0  ;;  %p7914_p4 = scmp.lt.u32.totalorder %s7906_s16, %s9058_s19 }
 0x2ae   : > { %s9084_s8 = scalar_lea.hbm %s10071_s5, %s8868_s6  ;;  %p7913_p12 = por %p7912_p7, %p7911_p11 }
 0x2af   : > { %p7909_p6 = pneg %p7908_p10 }
 0x2b0   : > { %p7915_p13 = por %p7914_p4, %p7913_p12 }
 0x2b2   : > { %p7916_p1 = pnand %p7915_p13, %p7909_p6 }
 0x2b4   : > { %7919 = shalt.err (!%p7916_p1)
}
 0x2b5   : > { %s7920_s17 = scalar_lea.vmem %s1321_s12, 16  ;;  %s8329_s13 = smov [#allocation32]  }
 0x2b6   : > { %p7921_p2 = scmp.ne.s32.totalorder %s1321_s12, %s7920_s17  ;;  %s7924_s11 = sshll.u32 %s8329_s13, 4  ;;  %s7925_s11 = int_to_ptr.vmem [resolvable:$false] %s7924_s11 }
 0x2b7   : > { %s7926_s14 = scalar_lea.vmem %s7925_s11, 32  ;;  %p7927_p3 = scmp.lt.s32.totalorder %s1321_s12, %s7925_s11 }
 0x2b8   : > { %p7922_p5 = pnand %p7921_p2, %p10057_p0  ;;  %p7928_p9 = scmp.lt.s32.totalorder %s7926_s14, %s7920_s17 }
 0x2ba   : > { %p7923_p8 = pneg %p7922_p5  ;;  %p7929_p10 = por %p7928_p9, %p7927_p3 }
 0x2bc   : > { %p7930_p7 = pnand %p7929_p10, %p7923_p8 }
 0x2be   : > { %7933 = shalt.err (!%p7930_p7)
}
 0x2bf   : > { %s10072_s16 = sld [smem:[#allocation76_spill]]  ;;  %s1331_s13 = scalar_lea.vmem [#allocation33], %s8851_s9 }
 0x2c0   : > { %6770 = dma.hbm_to_vmem [thread:$0]  (%p10057_p0), %s9058_s19, 16, %s1321_s12, %s8829_s1  }
 0x2c1   : > { %s1338_s17 = sshll.u32 %s1331_s13, 4  ;;  %s7934_s14 = scalar_lea.hbm %s9084_s8, 256  ;;  %s9101_s17 = int_to_ptr.vmem [resolvable:$true] %s1338_s17 }
 0x2c2   : > { %p7935_p6 = scmp.ne.s32.totalorder %s9084_s8, %s7934_s14  ;;  %s7938_s7 = scalar_lea.hbm %s10071_s5, 512 }
 0x2c3   : > { %p7939_p4 = scmp.lt.u32.totalorder %s9084_s8, %s10071_s5  ;;  %p7940_p13 = scmp.lt.u32.totalorder %s7938_s7, %s7934_s14 }
 0x2c4   : > { %p7936_p11 = pnand %p7935_p6, %p10057_p0  ;;  %p7942_p2 = scmp.lt.u32.totalorder %s7934_s14, %s9084_s8 }
 0x2c5   : > { %s10073_s4 = smov %s10072_s16  ;;  %s9105_s11 = scalar_lea.hbm %s10072_s16, %s8822_s15 }
 0x2c6   : > { %p7937_p12 = pneg %p7936_p11  ;;  %p7941_p1 = por %p7940_p13, %p7939_p4 }
 0x2c8   : > { %p7943_p5 = por %p7942_p2, %p7941_p1 }
 0x2ca   : > { %p7944_p8 = pnand %p7943_p5, %p7937_p12 }
 0x2cc   : > { %7947 = shalt.err (!%p7944_p8)
}
 0x2cd   : > { %s7948_s19 = scalar_lea.vmem %s9101_s17, 256  ;;  %s8330_s12 = smov [#allocation33]  }
 0x2ce   : > { %p7949_p3 = scmp.ne.s32.totalorder %s9101_s17, %s7948_s19  ;;  %s7952_s16 = sshll.u32 %s8330_s12, 4  ;;  %s7953_s16 = int_to_ptr.vmem [resolvable:$false] %s7952_s16 }
 0x2cf   : > { %s7954_s13 = scalar_lea.vmem %s7953_s16, 512  ;;  %p7955_p7 = scmp.lt.s32.totalorder %s9101_s17, %s7953_s16 }
 0x2d0   : > { %p7950_p9 = pnand %p7949_p3, %p10057_p0  ;;  %p7956_p6 = scmp.lt.s32.totalorder %s7954_s13, %s7948_s19 }
 0x2d2   : > { %p7951_p10 = pneg %p7950_p9  ;;  %p7957_p11 = por %p7956_p6, %p7955_p7 }
 0x2d4   : > { %p7958_p4 = pnand %p7957_p11, %p7951_p10 }
 0x2d6   : > { %7961 = shalt.err (!%p7958_p4)
}
 0x2d7   : > { %s10074_s7 = sld [smem:[#allocation77_spill]]  ;;  %s1351_s14 = scalar_lea.vmem [#allocation34], %s8819_s23 }
 0x2d8   : > { %6771 = dma.hbm_to_vmem [thread:$0]  (%p10057_p0), %s9084_s8, 256, %s9101_s17, %s8829_s1, %s10062_s28, %s10062_s28, %s10061_s3  }
 0x2d9   : > { %s1358_s19 = sshll.u32 %s1351_s14, 4  ;;  %s7962_s16 = scalar_lea.hbm %s9105_s11, 16  ;;  %s1359_s19 = int_to_ptr.vmem [resolvable:$true] %s1358_s19 }
 0x2da   : > { %p7963_p12 = scmp.ne.s32.totalorder %s9105_s11, %s7962_s16  ;;  %s7966_s13 = scalar_lea.hbm %s10073_s4, 32 }
 0x2db   : > { %p7967_p2 = scmp.lt.u32.totalorder %s9105_s11, %s10073_s4  ;;  %p7968_p5 = scmp.lt.u32.totalorder %s7966_s13, %s7962_s16 }
 0x2dc   : > { %p7964_p13 = pnand %p7963_p12, %p10057_p0  ;;  %p7970_p3 = scmp.lt.u32.totalorder %s7962_s16, %s9105_s11 }
 0x2dd   : > { %s9131_s12 = scalar_lea.hbm %s10074_s7, %s8822_s15  ;;  %p7969_p8 = por %p7968_p5, %p7967_p2 }
 0x2de   : > { %p7965_p1 = pneg %p7964_p13 }
 0x2df   : > { %p7971_p9 = por %p7970_p3, %p7969_p8 }
 0x2e1   : > { %p7972_p10 = pnand %p7971_p9, %p7965_p1 }
 0x2e3   : > { %7975 = shalt.err (!%p7972_p10)
}
 0x2e4   : > { %s7976_s5 = scalar_lea.vmem %s1359_s19, 16  ;;  %s8331_s8 = smov [#allocation34]  }
 0x2e5   : > { %p7977_p7 = scmp.ne.s32.totalorder %s1359_s19, %s7976_s5  ;;  %s7980_s17 = sshll.u32 %s8331_s8, 4  ;;  %s7981_s17 = int_to_ptr.vmem [resolvable:$false] %s7980_s17 }
 0x2e6   : > { %s7982_s14 = scalar_lea.vmem %s7981_s17, 32  ;;  %p7983_p4 = scmp.lt.s32.totalorder %s1359_s19, %s7981_s17 }
 0x2e7   : > { %p7978_p6 = pnand %p7977_p7, %p10057_p0  ;;  %p7984_p12 = scmp.lt.s32.totalorder %s7982_s14, %s7976_s5 }
 0x2e9   : > { %p7979_p11 = pneg %p7978_p6  ;;  %p7985_p13 = por %p7984_p12, %p7983_p4 }
 0x2eb   : > { %p7986_p2 = pnand %p7985_p13, %p7979_p11 }
 0x2ed   : > { %7989 = shalt.err (!%p7986_p2)
}
 0x2ee   : > { %s10075_s16 = sld [smem:[#allocation78_spill]]  ;;  %s1368_s8 = scalar_lea.vmem [#allocation35], %s8819_s23 }
 0x2ef   : > { %6772 = dma.hbm_to_vmem [thread:$0]  (%p10057_p0), %s9105_s11, 16, %s1359_s19, %s8829_s1  }
 0x2f0   : > { %s1375_s5 = sshll.u32 %s1368_s8, 4  ;;  %s7990_s14 = scalar_lea.hbm %s9131_s12, 16  ;;  %s1376_s5 = int_to_ptr.vmem [resolvable:$true] %s1375_s5 }
 0x2f1   : > { %p7991_p1 = scmp.ne.s32.totalorder %s9131_s12, %s7990_s14  ;;  %s7994_s4 = scalar_lea.hbm %s10074_s7, 32 }
 0x2f2   : > { %p7995_p3 = scmp.lt.u32.totalorder %s9131_s12, %s10074_s7  ;;  %p7996_p9 = scmp.lt.u32.totalorder %s7994_s4, %s7990_s14 }
 0x2f3   : > { %p7992_p5 = pnand %p7991_p1, %p10057_p0  ;;  %p7998_p7 = scmp.lt.u32.totalorder %s7990_s14, %s9131_s12 }
 0x2f4   : > { %s10076_s13 = smov %s10075_s16  ;;  %s9150_s17 = scalar_lea.hbm %s10075_s16, %s8822_s15 }
 0x2f5   : > { %p7993_p8 = pneg %p7992_p5  ;;  %p7997_p10 = por %p7996_p9, %p7995_p3 }
 0x2f7   : > { %p7999_p6 = por %p7998_p7, %p7997_p10 }
 0x2f9   : > { %p8000_p11 = pnand %p7999_p6, %p7993_p8 }
 0x2fb   : > { %8003 = shalt.err (!%p8000_p11)
}
 0x2fc   : > { %s8004_s20 = scalar_lea.vmem %s1376_s5, 16  ;;  %s8332_s11 = smov [#allocation35]  }
 0x2fd   : > { %p8005_p4 = scmp.ne.s32.totalorder %s1376_s5, %s8004_s20  ;;  %s8008_s19 = sshll.u32 %s8332_s11, 4  ;;  %s8009_s19 = int_to_ptr.vmem [resolvable:$false] %s8008_s19 }
 0x2fe   : > { %s8010_s16 = scalar_lea.vmem %s8009_s19, 32  ;;  %p8011_p2 = scmp.lt.s32.totalorder %s1376_s5, %s8009_s19 }
 0x2ff   : > { %p8006_p12 = pnand %p8005_p4, %p10057_p0  ;;  %p8012_p1 = scmp.lt.s32.totalorder %s8010_s16, %s8004_s20 }
 0x301   : > { %p8007_p13 = pneg %p8006_p12  ;;  %p8013_p5 = por %p8012_p1, %p8011_p2 }
 0x303   : > { %p8014_p3 = pnand %p8013_p5, %p8007_p13 }
 0x305   : > { %8017 = shalt.err (!%p8014_p3)
}
 0x306   : > { %s10077_s4 = sld [smem:[#allocation79_spill]]  ;;  %s1385_s8 = scalar_lea.vmem [#allocation36], %s8819_s23 }
 0x307   : > { %6773 = dma.hbm_to_vmem [thread:$0]  (%p10057_p0), %s9131_s12, 16, %s1376_s5, %s8829_s1  }
 0x308   : > { %s1392_s20 = sshll.u32 %s1385_s8, 4  ;;  %s8018_s11 = scalar_lea.hbm %s9150_s17, 16  ;;  %s1393_s20 = int_to_ptr.vmem [resolvable:$true] %s1392_s20 }
 0x309   : > { %p8019_p8 = scmp.ne.s32.totalorder %s9150_s17, %s8018_s11  ;;  %s8022_s19 = scalar_lea.hbm %s10076_s13, 32 }
 0x30a   : > { %p8023_p7 = scmp.lt.u32.totalorder %s9150_s17, %s10076_s13  ;;  %p8024_p6 = scmp.lt.u32.totalorder %s8022_s19, %s8018_s11 }
 0x30b   : > { %p8020_p9 = pnand %p8019_p8, %p10057_p0  ;;  %p8026_p4 = scmp.lt.u32.totalorder %s8018_s11, %s9150_s17 }
 0x30c   : > { %s9169_s14 = scalar_lea.hbm %s10077_s4, %s8868_s6  ;;  %p8025_p11 = por %p8024_p6, %p8023_p7 }
 0x30d   : > { %p8021_p10 = pneg %p8020_p9 }
 0x30e   : > { %p8027_p12 = por %p8026_p4, %p8025_p11 }
 0x310   : > { %p8028_p13 = pnand %p8027_p12, %p8021_p10 }
 0x312   : > { %8031 = shalt.err (!%p8028_p13)
}
 0x313   : > { %s8032_s16 = scalar_lea.vmem %s1393_s20, 16  ;;  %s8333_s6 = smov [#allocation36]  }
 0x314   : > { %p8033_p2 = scmp.ne.s32.totalorder %s1393_s20, %s8032_s16  ;;  %s8036_s12 = sshll.u32 %s8333_s6, 4  ;;  %s8037_s12 = int_to_ptr.vmem [resolvable:$false] %s8036_s12 }
 0x315   : > { %s8038_s5 = scalar_lea.vmem %s8037_s12, 32  ;;  %p8039_p3 = scmp.lt.s32.totalorder %s1393_s20, %s8037_s12 }
 0x316   : > { %p8034_p1 = pnand %p8033_p2, %p10057_p0  ;;  %p8040_p8 = scmp.lt.s32.totalorder %s8038_s5, %s8032_s16 }
 0x318   : > { %p8035_p5 = pneg %p8034_p1  ;;  %p8041_p9 = por %p8040_p8, %p8039_p3 }
 0x31a   : > { %p8042_p6 = pnand %p8041_p9, %p8035_p5 }
 0x31c   : > { %8045 = shalt.err (!%p8042_p6)
}
 0x31d   : > { %s10078_s8 = sld [smem:[#allocation80_spill]]  ;;  %s1403_s11 = scalar_lea.vmem [#allocation37], %s8851_s9 }
 0x31e   : > { %6774 = dma.hbm_to_vmem [thread:$0]  (%p10057_p0), %s9150_s17, 16, %s1393_s20, %s8829_s1  }
 0x31f   : > { %s1410_s19 = sshll.u32 %s1403_s11, 4  ;;  %s8046_s6 = scalar_lea.hbm %s9169_s14, 256  ;;  %s9186_s19 = int_to_ptr.vmem [resolvable:$true] %s1410_s19 }
 0x320   : > { %p8047_p10 = scmp.ne.s32.totalorder %s9169_s14, %s8046_s6  ;;  %s8050_s12 = scalar_lea.hbm %s10077_s4, 512 }
 0x321   : > { %p8051_p4 = scmp.lt.u32.totalorder %s9169_s14, %s10077_s4  ;;  %p8052_p12 = scmp.lt.u32.totalorder %s8050_s12, %s8046_s6 }
 0x322   : > { %p8048_p7 = pnand %p8047_p10, %p10057_p0  ;;  %p8054_p2 = scmp.lt.u32.totalorder %s8046_s6, %s9169_s14 }
 0x323   : > { %s9190_s16 = scalar_lea.hbm %s10078_s8, %s8822_s15  ;;  %p8053_p13 = por %p8052_p12, %p8051_p4 }
 0x324   : > { %p8049_p11 = pneg %p8048_p7 }
 0x325   : > { %p8055_p1 = por %p8054_p2, %p8053_p13 }
 0x327   : > { %p8056_p5 = pnand %p8055_p1, %p8049_p11 }
 0x329   : > { %8059 = shalt.err (!%p8056_p5)
}
 0x32a   : > { %s8060_s9 = scalar_lea.vmem %s9186_s19, 256  ;;  %s8334_s17 = smov [#allocation37]  }
 0x32b   : > { %p8061_p3 = scmp.ne.s32.totalorder %s9186_s19, %s8060_s9  ;;  %s8064_s20 = sshll.u32 %s8334_s17, 4  ;;  %s8065_s20 = int_to_ptr.vmem [resolvable:$false] %s8064_s20 }
 0x32c   : > { %s8066_s5 = scalar_lea.vmem %s8065_s20, 512  ;;  %p8067_p6 = scmp.lt.s32.totalorder %s9186_s19, %s8065_s20 }
 0x32d   : > { %p8062_p8 = pnand %p8061_p3, %p10057_p0  ;;  %p8068_p10 = scmp.lt.s32.totalorder %s8066_s5, %s8060_s9 }
 0x32f   : > { %p8063_p9 = pneg %p8062_p8  ;;  %p8069_p7 = por %p8068_p10, %p8067_p6 }
 0x331   : > { %p8070_p4 = pnand %p8069_p7, %p8063_p9 }
 0x333   : > { %8073 = shalt.err (!%p8070_p4)
}
 0x334   : > { %6775 = dma.hbm_to_vmem [thread:$0]  (%p10057_p0), %s9169_s14, 256, %s9186_s19, %s8829_s1, %s10062_s28, %s10062_s28, %s10061_s3  }
 0x335   : > { %s1423_s11 = scalar_lea.vmem [#allocation38], %s8819_s23  ;;  %s6110_s12 = sshll.u32 %s8819_s23, 5 }
 0x336   : > { %s1430_s6 = sshll.u32 %s1423_s11, 4  ;;  %s8074_s9 = scalar_lea.hbm %s9190_s16, 16  ;;  %s1431_s6 = int_to_ptr.vmem [resolvable:$true] %s1430_s6 }
 0x337   : > { %p8075_p11 = scmp.ne.s32.totalorder %s9190_s16, %s8074_s9  ;;  %s8078_s17 = scalar_lea.hbm %s10078_s8, 32 }
 0x338   : > { %p8079_p2 = scmp.lt.u32.totalorder %s9190_s16, %s10078_s8  ;;  %p8080_p1 = scmp.lt.u32.totalorder %s8078_s17, %s8074_s9 }
 0x339   : > { %p8076_p12 = pnand %p8075_p11, %p10057_p0  ;;  %p8082_p3 = scmp.lt.u32.totalorder %s8074_s9, %s9190_s16 }
 0x33a   : > { %p8081_p5 = por %p8080_p1, %p8079_p2 }
 0x33b   : > { %p8077_p13 = pneg %p8076_p12 }
 0x33c   : > { %p8083_p8 = por %p8082_p3, %p8081_p5 }
 0x33e   : > { %p8084_p9 = pnand %p8083_p8, %p8077_p13 }
 0x340   : > { %8087 = shalt.err (!%p8084_p9)
}
 0x341   : > { %s8088_s20 = scalar_lea.vmem %s1431_s6, 16  ;;  %s8335_s14 = smov [#allocation38]  }
 0x342   : > { %p8089_p6 = scmp.ne.s32.totalorder %s1431_s6, %s8088_s20  ;;  %s8092_s19 = sshll.u32 %s8335_s14, 4  ;;  %s8093_s19 = int_to_ptr.vmem [resolvable:$false] %s8092_s19 }
 0x343   : > { %s8094_s5 = scalar_lea.vmem %s8093_s19, 32  ;;  %p8095_p4 = scmp.lt.s32.totalorder %s1431_s6, %s8093_s19 }
 0x344   : > { %p8090_p10 = pnand %p8089_p6, %p10057_p0  ;;  %p8096_p11 = scmp.lt.s32.totalorder %s8094_s5, %s8088_s20 }
 0x346   : > { %p8091_p7 = pneg %p8090_p10  ;;  %p8097_p12 = por %p8096_p11, %p8095_p4 }
 0x348   : > { %p8098_p1 = pnand %p8097_p12, %p8091_p7 }
 0x34a   : > { %8101 = shalt.err (!%p8098_p1)
}
 0x34b   : > { %s10079_s11 = sld [smem:[#allocation81_spill]]  ;;  %s6253_s9 = sshll.u32 %s8262_s22, 9 }
 0x34c   : > { %6776 = dma.hbm_to_vmem [thread:$0]  (%p10057_p0), %s9190_s16, 16, %s1431_s6, %s8829_s1  }
 0x34d   : > { %s1441_s17 = scalar_lea.vmem [#allocation39], %s6110_s12 }
 0x34e   : > { %s1448_s14 = sshll.u32 %s1441_s17, 4  ;;  %s9235_s14 = int_to_ptr.vmem [resolvable:$true] %s1448_s14 }
 0x351   : > { %s9233_s19 = scalar_lea.hbm %s10079_s11, %s6253_s9  ;;  %s8106_s5 = scalar_lea.hbm %s10079_s11, 1024 }
 0x352   : > { %s8102_s20 = scalar_lea.hbm %s9233_s19, 512  ;;  %p8107_p3 = scmp.lt.u32.totalorder %s9233_s19, %s10079_s11 }
 0x353   : > { %p8103_p13 = scmp.ne.s32.totalorder %s9233_s19, %s8102_s20  ;;  %p8108_p8 = scmp.lt.u32.totalorder %s8106_s5, %s8102_s20 }
 0x354   : > { %p8110_p6 = scmp.lt.u32.totalorder %s8102_s20, %s9233_s19 }
 0x355   : > { %p8104_p2 = pnand %p8103_p13, %p10057_p0  ;;  %p8109_p9 = por %p8108_p8, %p8107_p3 }
 0x357   : > { %p8105_p5 = pneg %p8104_p2  ;;  %p8111_p10 = por %p8110_p6, %p8109_p9 }
 0x359   : > { %p8112_p7 = pnand %p8111_p10, %p8105_p5 }
 0x35b   : > { %8115 = shalt.err (!%p8112_p7)
}
 0x35c   : > { %s8116_s22 = scalar_lea.vmem %s9235_s14, 512  ;;  %s8336_s16 = smov [#allocation39]  }
 0x35d   : > { %p8117_p4 = scmp.ne.s32.totalorder %s9235_s14, %s8116_s22  ;;  %s8120_s6 = sshll.u32 %s8336_s16, 4  ;;  %s8121_s6 = int_to_ptr.vmem [resolvable:$false] %s8120_s6 }
 0x35e   : > { %s8122_s12 = scalar_lea.vmem %s8121_s6, 1024  ;;  %p8123_p1 = scmp.lt.s32.totalorder %s9235_s14, %s8121_s6 }
 0x35f   : > { %p8118_p11 = pnand %p8117_p4, %p10057_p0  ;;  %p8124_p13 = scmp.lt.s32.totalorder %s8122_s12, %s8116_s22 }
 0x361   : > { %p8119_p12 = pneg %p8118_p11  ;;  %p8125_p2 = por %p8124_p13, %p8123_p1 }
 0x363   : > { %p8126_p3 = pnand %p8125_p2, %p8119_p12 }
 0x365   : > { %8129 = shalt.err (!%p8126_p3)
}
 0x366   : > { %s10080_s9 = sld [smem:[#allocation82_spill]]  ;;  %s1461_s20 = scalar_lea.vmem [#allocation40], %s8819_s23 }
 0x367   : > { %6777 = dma.hbm_to_vmem [thread:$0]  (%p10057_p0), %s9233_s19, 512, %s9235_s14, %s8829_s1, %s10062_s28, %s10062_s28, %s10061_s3  }
 0x368   : > { %s1468_s5 = sshll.u32 %s1461_s20, 4  ;;  %s1469_s5 = int_to_ptr.vmem [resolvable:$true] %s1468_s5 }
 0x36c   : > { %s9260_s17 = scalar_lea.hbm %s10080_s9, %s8822_s15  ;;  %s8134_s16 = scalar_lea.hbm %s10080_s9, 32 }
 0x36d   : > { %s8130_s22 = scalar_lea.hbm %s9260_s17, 16  ;;  %p8135_p6 = scmp.lt.u32.totalorder %s9260_s17, %s10080_s9 }
 0x36e   : > { %p8131_p5 = scmp.ne.s32.totalorder %s9260_s17, %s8130_s22  ;;  %p8136_p10 = scmp.lt.u32.totalorder %s8134_s16, %s8130_s22 }
 0x36f   : > { %p8138_p4 = scmp.lt.u32.totalorder %s8130_s22, %s9260_s17 }
 0x370   : > { %p8132_p8 = pnand %p8131_p5, %p10057_p0  ;;  %p8137_p7 = por %p8136_p10, %p8135_p6 }
 0x372   : > { %p8133_p9 = pneg %p8132_p8  ;;  %p8139_p11 = por %p8138_p4, %p8137_p7 }
 0x374   : > { %p8140_p12 = pnand %p8139_p11, %p8133_p9 }
 0x376   : > { %8143 = shalt.err (!%p8140_p12)
}
 0x377   : > { %s8144_s15 = scalar_lea.vmem %s1469_s5, 16  ;;  %s8337_s23 = smov [#allocation40]  }
 0x378   : > { %p8145_p1 = scmp.ne.s32.totalorder %s1469_s5, %s8144_s15  ;;  %s8148_s3 = sshll.u32 %s8337_s23, 4  ;;  %s8149_s3 = int_to_ptr.vmem [resolvable:$false] %s8148_s3 }
 0x379   : > { %s8150_s28 = scalar_lea.vmem %s8149_s3, 32  ;;  %p8151_p3 = scmp.lt.s32.totalorder %s1469_s5, %s8149_s3 }
 0x37a   : > { %p8146_p13 = pnand %p8145_p1, %p10057_p0  ;;  %p8152_p5 = scmp.lt.s32.totalorder %s8150_s28, %s8144_s15 }
 0x37c   : > { %p8147_p2 = pneg %p8146_p13  ;;  %p8153_p8 = por %p8152_p5, %p8151_p3 }
 0x37e   : > { %p8154_p6 = pnand %p8153_p8, %p8147_p2 }
 0x380   : > { %8157 = shalt.err (!%p8154_p6)
}
 0x381   : > { %6778 = dma.hbm_to_vmem [thread:$0]  (%p10057_p0), %s9260_s17, 16, %s1469_s5, %s8829_s1  }
 0x382 PF: > { %p10081_p9 = scmp.ne.s32.totalorder %s10050_s10, 0 }
 0x383   : > { %p10082_p10 = scmp.eq.s32.totalorder (!%p10081_p9), %s8555_s0, 0 }
 0x384   : > { %1477 = sbr.rel (%p10081_p9) target bundleno = 9676 (0x25cc), region = 156 }
 0x38b   : > { %8201 = dma.done.wait (%p10082_p10), [#allocation5], 512   ;;  %p10083_p7 = pmov %p10082_p10 }
 0x38d   : > { %8203 = vsyncadd (%p10083_p7), [#allocation5], 4294966784  ;;  %p10084_p4 = pmov %p10083_p7 }
 0x38f   : > { %8205 = dma.done.wait (%p10084_p4), [#allocation8], 1024   ;;  %p10085_p11 = pmov %p10084_p4 }
 0x390   : > { %p10086_p12 = pmov %p10084_p4 }
 0x391   : > { %8207 = vsyncadd (%p10085_p11), [#allocation8], 4294966272 }
 0x392   : > { %8209 = dma.done.wait (%p10086_p12), [#allocation11], 48   ;;  %p10087_p0 = pmov %p10084_p4 }
 0x394   : > { %8211 = vsyncadd (%p10087_p0), [#allocation11], 4294967248  ;;  %p10088_p1 = pmov %p10087_p0 }
 0x395   : > { %p10089_p13 = pmov %p10087_p0 }
 0x396   : > { %8213 = dma.done.wait (%p10088_p1), [#allocation14], 272  }
 0x397   : > { %8215 = vsyncadd (%p10089_p13), [#allocation14], 4294967024  ;;  %p10090_p2 = pmov %p10087_p0 }
 0x398   : > { %p10091_p3 = pmov %p10087_p0 }
 0x399   : > { %8217 = dma.done.wait (%p10090_p2), [#allocation17], 272  }
 0x39a   : > { %8219 = vsyncadd (%p10091_p3), [#allocation17], 4294967024  ;;  %p10092_p5 = pmov %p10087_p0 }
 0x39b   : > { %p10093_p8 = pmov %p10087_p0 }
 0x39c   : > { %8221 = dma.done.wait (%p10092_p5), [#allocation20], 256  }
 0x39d   : > { %8223 = vsyncadd (%p10093_p8), [#allocation20], 4294967040  ;;  %s10094_s2 = sld [smem:[#allocation87_spill]]  ;;  %s10095_s10 = sld [smem:[#allocation90_spill]] }
 0x39e   : > { %s1519_s1 = sand.u32 1, %s8555_s0  }
 0x39f   : > { %s1520_s19 = scalar_lea.sflag [#allocation5], %s1519_s1 }
 0x3a3   : > { %s9305_s14 = sand.u32 1, %s10094_s2   ;;  %p10096_p6 = scmp.ne.s32.totalorder %s10095_s10, 0 }
 0x3a5   : > { %8225 = dma.done.wait (%p10096_p6), %s1520_s19, 2256  }
 0x3a6   : > { %8227 = vsyncadd (%p10096_p6), %s1520_s19, 4294965040  ;;  %s9313_s12 = sshll.u32 %s9305_s14, 4  ;;  %s6131_s17 = sshll.u32 %s9305_s14, 5 }
 0x3a7   : > { %s9320_s16 = scalar_lea.vmem [#allocation25], %s9313_s12  ;;  %s1564_s15 = scalar_lea.vmem [#allocation26], %s9305_s14 }
 0x3a8   : > { %s1572_s23 = scalar_lea.vmem [#allocation27], %s9305_s14  ;;  %s1580_s3 = scalar_lea.vmem [#allocation28], %s9305_s14 }
 0x3a9   : > { %s1589_s28 = scalar_lea.vmem [#allocation29], %s9313_s12  ;;  %s1597_s2 = scalar_lea.vmem [#allocation30], %s9305_s14 }
 0x3aa   : > { %s1606_s10 = scalar_lea.vmem [#allocation31], %s9313_s12  ;;  %s1614_s1 = scalar_lea.vmem [#allocation32], %s9305_s14 }
 0x3ab   : > { %s9330_s19 = scalar_lea.vmem [#allocation33], %s9313_s12  ;;  %s9337_s5 = scalar_lea.vmem [#allocation39], %s6131_s17 }
 0x3ac   : > { %p10097_p9 = pmov %p10087_p0 }
 0x3ad   : > { %p10098_p10 = pmov %p10087_p0 }
 0x3ae   : > { %8229 = dma.done.wait (%p10097_p9), [#allocation8], 16  }
 0x3af   : > { %8231 = vsyncadd (%p10098_p10), [#allocation8], 4294967280  ;;  %p10099_p7 = pmov %p10087_p0 }
 0x3b0   : > { %p10100_p4 = pmov %p10087_p0 }
 0x3b1   : > { %8233 = dma.done.wait (%p10099_p7), [#allocation11], 16  }
 0x3b2   : > { %8235 = vsyncadd (%p10100_p4), [#allocation11], 4294967280  ;;  %p10101_p11 = pmov %p10087_p0 }
 0x3b3   : > { %p10102_p12 = pmov %p10087_p0 }
 0x3b4   : > { %8237 = dma.done.wait (%p10101_p11), [#allocation14], 256  }
 0x3b5   : > { %8239 = vsyncadd (%p10102_p12), [#allocation14], 4294967040 }
 0x3b6   : > { %8241 = dma.done.wait (%p10087_p0), [#allocation17], 16   ;;  %p10103_p1 = pmov %p10087_p0 }
 0x3b7   : > { %p10104_p13 = scmp.ne.s32.totalorder %s8555_s0, 0 }
 0x3b8   : > { %8243 = vsyncadd (%p10103_p1), [#allocation17], 4294967280  ;;  %v7008_v0 = vld [vmem:[#allocation13] sm:$0xff] (!%p10104_p13)   ;;  %v8338_v1 = vmov (!%p10104_p13), 0.0   ;;  %v7009_v2 = vld [vmem:[#allocation13 + $0x8] sm:$0xff] (!%p10104_p13)   ;;  %vm8339_vm0 = vmmov (!%p10104_p13), 0   ;;  %v2121_v46 = vlaneseq (!%p10104_p13) }
 0x3b9   : > { %1863 = sbr.rel (%p10104_p13) target bundleno = 1424 (0x590), region = 296  ;;  %6391 = vmatprep.subr.bf16.mxu1 (!%p10104_p13), %v8338_v1  ;;  %6395 = vmatprep.mubr.msk.bf16.mxu1 (!%p10104_p13), %vm8339_vm0, %v8338_v1  ;;  %vm1973_vm1 = vcmask (!%p10104_p13), 261120   ;;  %v1978_v3 = vld [vmem:[#allocation12] sm:$0x3] (!%p10104_p13)  ;;  %v7011_v6 = vld [vmem:[#allocation9 + $0x8] sm:$0xff] (!%p10104_p13)   ;;  %v7012_v7 = vld [vmem:[#allocation9 + $0x10] sm:$0xff] (!%p10104_p13)  }
 0x3ba   : > { %6392 = vmatpush3.bf16.msra.mxu1 (!%p10104_p13), %v7008_v0  ;;  %v1984_v4 = vpack.c.bf16 (!%p10104_p13), %v1978_v3, %v1978_v3  ;;  %v7010_v5 = vld [vmem:[#allocation9] sm:$0xff] (!%p10104_p13)   ;;  %v7013_v8 = vld [vmem:[#allocation16] sm:$0xff] (!%p10104_p13)   ;;  %v1865_v11 = vld [vmem:[#allocation4 + $0x8] sm:$0xff] (!%p10104_p13)  ;;  %vm1917_vm2 = vcmask (!%p10104_p13), 523264   ;;  %v2122_v47 = vshrl.u32 (!%p10104_p13), %v2121_v46, 7 }
 0x3bb   : > { %6393 = vmatprep.subr.bf16.mxu1 (!%p10104_p13), %v8338_v1  ;;  %6379 = vmatprep.subr.bf16.mxu0 (!%p10104_p13), %v7010_v5  ;;  %v7014_v9 = vld [vmem:[#allocation9 + $0x18] sm:$0xff] (!%p10104_p13)   ;;  %v1864_v10 = vld [vmem:[#allocation4] sm:$0xff] (!%p10104_p13)  ;;  %v1869_v13 = vld [vmem:[#allocation7 + $0x8] sm:$0xff] (!%p10104_p13) }
 0x3bc   : > { %6380 = vmatpush3.bf16.msra.mxu0 (!%p10104_p13), %v7010_v5  ;;  %v1868_v12 = vld [vmem:[#allocation7] sm:$0xff] (!%p10104_p13)  ;;  %v1866_v14 = vld [vmem:[#allocation4 + $0x10] sm:$0xff] (!%p10104_p13)  ;;  %v1873_v16 = vadd.f32 (!%p10104_p13), %v1869_v13, %v1865_v11  ;;  %v1867_v17 = vld [vmem:[#allocation4 + $0x18] sm:$0xff] (!%p10104_p13)  ;;  %v2123_v49 = vsub.s32 (!%p10104_p13), 0, %v2122_v47  ;;  %v2131_v50 = vsub.s32 (!%p10104_p13), 1, %v2122_v47 }
 0x3bd   : > { %6381 = vmatprep.subr.bf16.mxu0 (!%p10104_p13), %v7011_v6  ;;  %v1872_v15 = vadd.f32 (!%p10104_p13), %v1868_v12, %v1864_v10  ;;  %v1870_v18 = vld [vmem:[#allocation7 + $0x10] sm:$0xff] (!%p10104_p13)  ;;  %v1871_v19 = vld [vmem:[#allocation7 + $0x18] sm:$0xff] (!%p10104_p13)  ;;  %v6137_v37 = vld [vmem:[#allocation10] ss:$0 sm:$0xff] (!%p10104_p13) }
 0x3be   : > { %6394 = vmatpush3.bf16.msra.mxu1 (!%p10104_p13), %v7009_v2  ;;  %v7015_v20 = vld [vmem:[#allocation16 + $0x8] sm:$0xff] (!%p10104_p13)   ;;  %v1874_v21 = vadd.f32 (!%p10104_p13), %v1870_v18, %v1866_v14  ;;  %v1875_v22 = vadd.f32 (!%p10104_p13), %v1871_v19, %v1867_v17  ;;  %v6144_v25 = vld [vmem:[#allocation15] ss:$0 sm:$0xff] (!%p10104_p13)  ;;  %v6149_v48 = vld [vmem:[#allocation18] ss:$0 sm:$0xff] (!%p10104_p13) }
 0x3bf   : > { %6399 = vmatprep.subr.bf16.mxu1 (!%p10104_p13), %v8338_v1  ;;  %v1885_v23 = vpack.c.bf16 (!%p10104_p13), %v1873_v16, %v1872_v15  ;;  %v2120_v54 = vld [vmem:[#allocation19] sm:$0xff] (!%p10104_p13)  ;;  %v2128_v55 = vld [vmem:[#allocation19 + $0x8] sm:$0xff] (!%p10104_p13) }
 0x3c0   : > { %6382 = vmatpush3.bf16.msra.mxu0 %v7011_v6  ;;  %v1886_v24 = vpack.c.bf16 %v1875_v22, %v1874_v21 }
 0x3c1   : > { %6396 = vmatmul.mubr.msk.bf16.vlgmr.msra.gmra.mrb[0].mxu1 %vm1973_vm1, %v1984_v4  ;;  %6383 = vmatprep.subr.bf16.mxu0 %v7012_v7 }
 0x3c2   : > { %6403 = vmatprep.mubr.msk.bf16.mxu1 %vm8339_vm0, %v8338_v1  ;;  %6400 = vmatpush3.bf16.msra.mxu1 %v7013_v8 }
 0x3c3   : > { %6401 = vmatprep.subr.bf16.mxu1 %v8338_v1  ;;  %6387 = vmatprep.mubr.msk.bf16.mxu0 %vm1917_vm2, %v1885_v23 }
 0x3c4   : > { %6384 = vmatpush3.bf16.msra.mxu0 %v7012_v7 }
 0x3c5   : > { %6385 = vmatprep.subr.bf16.mxu0 %v7014_v9 }
 0x3c6   : > { %6402 = vmatpush3.bf16.msra.mxu1 %v7015_v20 }
 0x3c8   : > { %6386 = vmatpush3.bf16.msra.mxu0 %v7014_v9 }
 0x3cb   : > { %6388 = vmatmul.mubr.msk.bf16.vlgmr.msra.gmra.mrb[0].mxu0 %vm1917_vm2, %v1886_v24 }
 0x494   : > { %v2040_v26 = vpop.f32.mrb[0].mxu1 }
 0x495   : > { %v2041_v27 = vadd.f32 %v6144_v25, %v2040_v26  ;;  %v6397_v28 = vpop.f32.mrb[1].mxu1 }
 0x496   : > { %v2043_v29 = vpop.f32.mrb[2].mxu1 }
 0x497   : > { %v6148_v30 = vmul.f32 -1.442695, %v2041_v27  ;;  %v6398_v31 = vpop.f32.mrb[3].mxu1 }
 0x499   : > { %7016 = vpow2.f32 %v6148_v30 }
 0x49e   : > { %v6389_v38 = vpop.f32.mrb[0].mxu0 }
 0x49f   : > { %v1967_v39 = vadd.f32 %v6389_v38, %v6137_v37  ;;  %v1958_v40 = vpop.f32.mrb[1].mxu0 }
 0x4a0   : > { %v1959_v41 = vadd.f32 %v6137_v37, %v1958_v40  ;;  %v6390_v42 = vpop.f32.mrb[2].mxu0 }
 0x4a1   : > { %1976 = vst.msk [vmem:[#allocation2 + $0x10] sm:$0xff] %vm1973_vm1, %v1967_v39  ;;  %v1970_v43 = vadd.f32 %v6390_v42, %v6137_v37  ;;  %v1961_v44 = vpop.f32.mrb[3].mxu0 }
 0x4a2   : > { %1974 = vst.msk [vmem:[#allocation2] sm:$0xff] %vm1973_vm1, %v1959_v41  ;;  %v1962_v45 = vadd.f32 %v6137_v37, %v1961_v44 }
 0x4a3   : > { %v7017_v32 = vpop.eup %7016  ;;  %1977 = vst.msk [vmem:[#allocation2 + $0x18] sm:$0xff] %vm1973_vm1, %v1970_v43 }
 0x4a4   : > { %v2049_v33 = vadd.f32 1.0, %v7017_v32  ;;  %1975 = vst.msk [vmem:[#allocation2 + $0x8] sm:$0xff] %vm1973_vm1, %v1962_v45 }
 0x4a6   : > { %7018 = vrcp.f32 %v2049_v33 }
 0x4b0   : > { %v7019_v34 = vpop.eup %7018 }
 0x4b1   : > { %v2052_v35 = vmul.f32 %v7019_v34, %v2041_v27 }
 0x4b3   : > { %v2058_v36 = vpack.c.bf16 %v2052_v35, %v2052_v35 }
 0x4b5   : > { %6404 = vmatmul.mubr.msk.bf16.vlgmr.msra.gmra.mrb[4].mxu1 %vm1973_vm1, %v2058_v36 }
 0x588   : > { %v2114_v51 = vpop.f32.mrb[4].mxu1 }
 0x589   : > { %v2115_v52 = vadd.f32 %v6149_v48, %v2114_v51  ;;  %v6405_v53 = vpop.f32.mrb[5].mxu1 }
 0x58a   : > { %v2117_v56 = vpop.f32.mrb[6].mxu1 }
 0x58b   : > { %v2124_v57 = vrot.slane %v2115_v52, %v2123_v49  ;;  %v2132_v58 = vrot.slane %v2115_v52, %v2131_v50  ;;  %v6406_v59 = vpop.f32.mrb[7].mxu1 }
 0x58d   : > { %v2125_v60 = vadd.f32 %v2124_v57, %v2120_v54  ;;  %v2133_v61 = vadd.f32 %v2132_v58, %v2128_v55 }
 0x58f   : > { %2126 = vst.msk [vmem:[#allocation3] sm:$0xff] %vm1973_vm1, %v2125_v60  ;;  %2135 = vst.msk [vmem:[#allocation3 + $0x8] sm:$0xff] %vm1973_vm1, %v2133_v61 }
 0x590 PF: > { %v2136_v62 = vld [vmem:[#allocation2] sm:$0xff]  ;;  %vm2144_vm3 = vcmask 261120   ;;  %v2138_v63 = vld [vmem:[#allocation2 + $0x10] sm:$0xff]  ;;  %v2137_v0 = vld [vmem:[#allocation2 + $0x8] sm:$0xff]  ;;  %s10105_s17 = scalar_lea.vmem [#allocation23], %s9313_s12  ;;  %v8340_v60 = vmov 0.0  }
 0x591   : > { %v2145_v1 = vsel %vm2144_vm3, %v2136_v62, 0.0  ;;  %v2151_v2 = vsel %vm2144_vm3, %v2138_v63, 0.0  ;;  %v2139_v3 = vld [vmem:[#allocation2 + $0x18] sm:$0xff]  ;;  %v2148_v4 = vsel %vm2144_vm3, %v2137_v0, 0.0  ;;  %s10106_s22 = smov %s10105_s17  ;;  %6421 = vmatprep.subr.bf16.mxu0 %v8340_v60  ;;  %vm8341_vm4 = vmmov 0   ;;  %s8344_s8 = smov 64  }
 0x592   : > { %2146 = vadd.xlane.f32.xlu0 %v2145_v1  ;;  %2152 = vadd.xlane.f32.xlu1 %v2151_v2  ;;  %v2154_v5 = vsel %vm2144_vm3, %v2139_v3, 0.0  ;;  %v7020_v26 = vld [vmem:[%s10105_s17] sm:$0xff]   ;;  %s10108_s17 = scalar_lea.vmem [#allocation22], %s9305_s14  ;;  %vm2307_vm5 = vcmask 64512   ;;  %vm2409_vm6 = vcmask 130048   ;;  %s8345_s7 = smov 120  }
 0x593   : > { %v7021_v27 = vld [vmem:[%s10106_s22 + $0x8] sm:$0xff]   ;;  %6407 = vmatprep.subr.bf16.mxu1 %v7020_v26  ;;  %s10107_s22 = scalar_lea.vmem [#allocation21], %s9305_s14  ;;  %v6154_v47 = vld [vmem:[%s10108_s17] ss:$0 sm:$0xff]  ;;  %6423 = vmatprep.mubr.msk.bf16.mxu0 %vm8341_vm4, %v8340_v60  ;;  %s8342_s17 = smov 96   ;;  %vm2806_vm7 = vcmask 1043456  }
 0x594   : > { %6408 = vmatpush3.bf16.msra.mxu1 %v7020_v26  ;;  %v6153_v42 = vld [vmem:[%s10107_s22] ss:$0 sm:$0xff]  ;;  %s10109_s22 = scalar_lea.vmem [#allocation24], %s9305_s14  ;;  %s8347_s4 = smov 112   ;;  %vm5272_vm8 = vcmask 523264  }
 0x595   : > { %6409 = vmatprep.subr.bf16.mxu1 %v7021_v27  ;;  %s8348_s20 = smov 56   ;;  %s8350_s6 = smov 72  }
 0x596   : > { %2149 = vadd.xlane.f32.xlu0 %v2148_v4  ;;  %2155 = vadd.xlane.f32.xlu1 %v2154_v5  ;;  %p6235_p2 = scmp.ne.s32.totalorder %s8555_s0, 1 }
 0x598   : > { %6410 = vmatpush3.bf16.msra.mxu1 %v7021_v27 }
 0x599   : > { %6415 = vmatprep.subr.bf16.mxu1 %v8340_v60 }
 0x61f   : > { %v2147_v6 = vpop.xlane.xlu0 %2146  ;;  %v2153_v7 = vpop.xlane.xlu1 %2152 }
 0x620   : > { %v2158_v8 = vmul.f32 0.03125, %v2147_v6  ;;  %v2160_v9 = vmul.f32 0.03125, %v2153_v7 }
 0x622   : > { %v2162_v10 = vsub.f32 %v2136_v62, %v2158_v8  ;;  %v2164_v11 = vsub.f32 %v2138_v63, %v2160_v9  ;;  %v6155_v62 = vld [vmem:[%s10109_s22] ss:$0 sm:$0xff]  ;;  %s8343_s22 = smov 88  }
 0x623   : > { %v2150_v12 = vpop.xlane.xlu0 %2149  ;;  %v2156_v13 = vpop.xlane.xlu1 %2155 }
 0x624   : > { %v2159_v14 = vmul.f32 0.03125, %v2150_v12  ;;  %v2161_v15 = vmul.f32 0.03125, %v2156_v13  ;;  %v2166_v16 = vmul.f32 %v2162_v10, %v2162_v10  ;;  %v2168_v17 = vmul.f32 %v2164_v11, %v2164_v11 }
 0x626   : > { %v2163_v18 = vsub.f32 %v2137_v0, %v2159_v14  ;;  %v2165_v19 = vsub.f32 %v2139_v3, %v2161_v15  ;;  %v2170_v20 = vsel %vm2144_vm3, %v2166_v16, 0.0  ;;  %v2176_v21 = vsel %vm2144_vm3, %v2168_v17, 0.0 }
 0x627   : > { %2171 = vadd.xlane.f32.xlu0 %v2170_v20 }
 0x628   : > { %v2167_v22 = vmul.f32 %v2163_v18, %v2163_v18  ;;  %v2169_v23 = vmul.f32 %v2165_v19, %v2165_v19 }
 0x62a   : > { %v2173_v24 = vsel %vm2144_vm3, %v2167_v22, 0.0  ;;  %v2179_v25 = vsel %vm2144_vm3, %v2169_v23, 0.0 }
 0x62b   : > { %2177 = vadd.xlane.f32.xlu0 %v2176_v21  ;;  %2174 = vadd.xlane.f32.xlu1 %v2173_v24 }
 0x62f   : > { %2180 = vadd.xlane.f32.xlu1 %v2179_v25 }
 0x6b4   : > { %v2172_v28 = vpop.xlane.xlu0 %2171 }
 0x6b5   : > { %v2182_v29 = vmul.f32 0.03125, %v2172_v28 }
 0x6b7   : > { %v2186_v30 = vadd.f32 1e-05, %v2182_v29 }
 0x6b8   : > { %v2175_v31 = vpop.xlane.xlu1 %2174  ;;  %v2178_v32 = vpop.xlane.xlu0 %2177 }
 0x6b9   : > { %7032 = vrsqrt.f32 %v2186_v30  ;;  %v2183_v33 = vmul.f32 0.03125, %v2175_v31  ;;  %v2184_v34 = vmul.f32 0.03125, %v2178_v32 }
 0x6bb   : > { %v2187_v35 = vadd.f32 1e-05, %v2183_v33  ;;  %v2188_v36 = vadd.f32 1e-05, %v2184_v34 }
 0x6bc   : > { %v2181_v37 = vpop.xlane.xlu1 %2180 }
 0x6bd   : > { %7034 = vrsqrt.f32 %v2187_v35  ;;  %v2185_v38 = vmul.f32 0.03125, %v2181_v37 }
 0x6be   : > { %7036 = vrsqrt.f32 %v2188_v36 }
 0x6bf   : > { %v2189_v39 = vadd.f32 1e-05, %v2185_v38 }
 0x6c1   : > { %7038 = vrsqrt.f32 %v2189_v39 }
 0x6c3   : > { %v7033_v40 = vpop.eup %7032 }
 0x6c4   : > { %v2194_v41 = vmul.f32 %v7033_v40, %v2162_v10 }
 0x6c6   : > { %v2204_v46 = vmul.f32 %v6153_v42, %v2194_v41 }
 0x6c7   : > { %v7035_v43 = vpop.eup %7034 }
 0x6c8   : > { %v7037_v44 = vpop.eup %7036  ;;  %v2195_v45 = vmul.f32 %v7035_v43, %v2163_v18  ;;  %v2214_v51 = vadd.f32 %v6154_v47, %v2204_v46 }
 0x6c9   : > { %v2196_v48 = vmul.f32 %v7037_v44, %v2164_v11 }
 0x6ca   : > { %v2205_v49 = vmul.f32 %v6153_v42, %v2195_v45 }
 0x6cb   : > { %v7039_v50 = vpop.eup %7038  ;;  %v2206_v54 = vmul.f32 %v6153_v42, %v2196_v48 }
 0x6cc   : > { %v2215_v52 = vadd.f32 %v6154_v47, %v2205_v49  ;;  %v2197_v53 = vmul.f32 %v7039_v50, %v2165_v19 }
 0x6cd   : > { %v2216_v57 = vadd.f32 %v6154_v47, %v2206_v54 }
 0x6ce   : > { %v2223_v55 = vpack.c.bf16 %v2215_v52, %v2214_v51  ;;  %v2207_v56 = vmul.f32 %v6153_v42, %v2197_v53 }
 0x6d0   : > { %6411 = vmatprep.mubr.msk.bf16.mxu1 %vm2144_vm3, %v2223_v55  ;;  %v2217_v58 = vadd.f32 %v6154_v47, %v2207_v56 }
 0x6d2   : > { %v2224_v59 = vpack.c.bf16 %v2217_v58, %v2216_v57 }
 0x6d4   : > { %6412 = vmatmul.mubr.msk.bf16.vlgmr.msra.gmra.mrb[0].mxu1 %vm2144_vm3, %v2224_v59 }
 0x6d5   : > { %6417 = vmatprep.mubr.msk.bf16.mxu1 %vm8341_vm4, %v8340_v60 }
 0x7a7   : > { %v6413_v61 = vpop.f32.mrb[0].mxu1 }
 0x7a8   : > { %v2283_v63 = vpop.f32.mrb[1].mxu1  ;;  %v2292_v1 = vadd.f32 %v6413_v61, %v6155_v62 }
 0x7a9   : > { %v6414_v0 = vpop.f32.mrb[2].mxu1  ;;  %v2284_v4 = vadd.f32 %v6155_v62, %v2283_v63 }
 0x7aa   : > { %v2295_v2 = vadd.f32 %v6414_v0, %v6155_v62  ;;  %v2286_v3 = vpop.f32.mrb[3].mxu1 }
 0x7ab   : > { %v2287_v5 = vadd.f32 %v6155_v62, %v2286_v3 }
 0x7ac   : > { %v9392_v6 = vpack.c.bf16 %v2295_v2, %v2292_v1 }
 0x7ad   : > { %v9394_v7 = vpack.c.bf16 %v2287_v5, %v2284_v4 }
 0x7ae   : > { %2356 = vrot.lane.b32.xlu0 %v9392_v6, %s8342_s17 }
 0x7af   : > { %2305 = vrot.lane.b32.xlu1 %v9394_v7, %s8342_s17 }
 0x820   : > { %v2357_v8 = vpop.permute.xlu0 %2356 }
 0x821   : > { %v2306_v9 = vpop.permute.xlu1 %2305  ;;  %v2362_v10 = vsel %vm2307_vm5, %v2357_v8, 0 }
 0x822   : > { %v2312_v11 = vsel %vm2307_vm5, %v2306_v9, 0  ;;  %6422 = vmatpush3.bf16.xpose.msra.mxu0 %v2362_v10 }
 0x823   : > { %6416 = vmatpush3.bf16.xpose.msra.mxu1 %v2312_v11  ;;  %6433 = vmatprep.subr.bf16.mxu0 %v8340_v60 }
 0x824   : > { %6427 = vmatprep.subr.bf16.mxu1 %v8340_v60 }
 0x829   : > { %6424 = vmatmul.mubr.msk.bf16.vlgmr.msra.gmra.mrb[0].mxu0 %vm2307_vm5, %v9392_v6 }
 0x82a   : > { %6418 = vmatmul.mubr.msk.bf16.vlgmr.msra.gmra.mrb[4].mxu1 %vm2307_vm5, %v9394_v7  ;;  %6435 = vmatprep.mubr.msk.bf16.mxu0 %vm8341_vm4, %v8340_v60 }
 0x82b   : > { %6429 = vmatprep.mubr.msk.bf16.mxu1 %vm8341_vm4, %v8340_v60 }
 0x8fc   : > { %v2398_v12 = vpop.f32.mrb[0].mxu0 }
 0x8fd   : > { %v2407_v13 = vmul.f32 0.35355338, %v2398_v12  ;;  %v2348_v14 = vpop.f32.mrb[4].mxu1  ;;  %v6425_v15 = vpop.f32.mrb[1].mxu0 }
 0x8fe   : > { %v6419_v16 = vpop.f32.mrb[5].mxu1  ;;  %v2401_v17 = vpop.f32.mrb[2].mxu0  ;;  %v2405_v36 = vmul.f32 0.35355338, %v2348_v14 }
 0x8ff   : > { %v2408_v18 = vmul.f32 0.35355338, %v2401_v17  ;;  %v2351_v19 = vpop.f32.mrb[6].mxu1  ;;  %v6426_v20 = vpop.f32.mrb[3].mxu0  ;;  %v2416_v21 = vsel %vm2409_vm6, %v2407_v13, -inf }
 0x900   : > { %2417 = vmax.xlane.f32.xlu1 %v2416_v21  ;;  %v6420_v22 = vpop.f32.mrb[7].mxu1  ;;  %v2406_v34 = vmul.f32 0.35355338, %v2351_v19  ;;  %v2410_v37 = vsel %vm2409_vm6, %v2405_v36, -inf }
 0x901   : > { %v2419_v23 = vsel %vm2409_vm6, %v2408_v18, -inf }
 0x902   : > { %2420 = vmax.xlane.f32.xlu0 %v2419_v23  ;;  %v2413_v35 = vsel %vm2409_vm6, %v2406_v34, -inf }
 0x98d   : > { %v2418_v24 = vpop.xlane.xlu1 %2417 }
 0x98e   : > { %v2424_v25 = vsub.f32 %v2407_v13, %v2418_v24 }
 0x98f   : > { %v2421_v26 = vpop.xlane.xlu0 %2420 }
 0x990   : > { %v2430_v27 = vmul.f32 1.442695, %v2424_v25  ;;  %v2425_v28 = vsub.f32 %v2408_v18, %v2421_v26 }
 0x992   : > { %7040 = vpow2.f32 %v2430_v27  ;;  %v2432_v29 = vmul.f32 1.442695, %v2425_v28 }
 0x994   : > { %7042 = vpow2.f32 %v2432_v29 }
 0x99c   : > { %v7041_v30 = vpop.eup %7040 }
 0x99d   : > { %v2440_v31 = vsel %vm2409_vm6, %v7041_v30, 0.0 }
 0x99e   : > { %v7043_v32 = vpop.eup %7042  ;;  %2441 = vadd.xlane.f32.xlu0 %v2440_v31 }
 0x99f   : > { %v2443_v33 = vsel %vm2409_vm6, %v7043_v32, 0.0 }
 0x9a0   : > { %2444 = vadd.xlane.f32.xlu1 %v2443_v33 }
 0x9b1   : > { %2605 = vrot.lane.b32.xlu1 %v9392_v6, %s8343_s22 }
 0x9b4   : > { %2503 = vrot.lane.b32.xlu0 %v9392_v6, %s8344_s8 }
 0x9b5   : > { %2603 = vrot.lane.b32.xlu1 %v9392_v6, %s8345_s7 }
 0x9d3   : > { %2414 = vmax.xlane.f32.xlu0 %v2413_v35 }
 0x9d9   : > { %2411 = vmax.xlane.f32.xlu1 %v2410_v37 }
 0x9ea   : > { %2456 = vrot.lane.b32.xlu1 %v9394_v7, %s8344_s8  ;;  %s10002_s8 = smov 80  }
 0x9ee   : > { %2552 = vrot.lane.b32.xlu1 %v9394_v7, %s8345_s7 }
 0xa2b   : > { %v2442_v38 = vpop.xlane.xlu0 %2441 }
 0xa2c   : > { %7044 = vrcp.f32 %v2442_v38 }
 0xa2d   : > { %v2445_v39 = vpop.xlane.xlu1 %2444 }
 0xa2e   : > { %7046 = vrcp.f32 %v2445_v39 }
 0xa2f   : > { %v2504_v40 = vpop.permute.xlu0 %2503 }
 0xa30   : > { %6434 = vmatpush3.bf16.msra.mxu0 %v2504_v40 }
 0xa31   : > { %6445 = vmatprep.subr.bf16.mxu0 %v8340_v60  ;;  %v2606_v45 = vpop.permute.xlu1 %2605 }
 0xa32   : > { %v2611_v47 = vsel %vm2307_vm5, %v2606_v45, 0 }
 0xa35   : > { %v2604_v48 = vpop.permute.xlu1 %2603 }
 0xa36   : > { %v7045_v41 = vpop.eup %7044 }
 0xa37   : > { %v2452_v43 = vmul.f32 %v7045_v41, %v7041_v30 }
 0xa38   : > { %v7047_v42 = vpop.eup %7046 }
 0xa39   : > { %v2453_v44 = vmul.f32 %v7047_v42, %v7043_v32 }
 0xa3b   : > { %v2455_v46 = vpack.c.bf16 %v2453_v44, %v2452_v43 }
 0xa3d   : > { %6436 = vmatmul.mubr.msk.bf16.vlgmr.msra.gmra.mrb[4].mxu0 %vm2409_vm6, %v2455_v46 }
 0xa3e   : > { %6446 = vmatpush3.bf16.xpose.msra.mxu0 %v2611_v47  ;;  %6447 = vmatprep.mubr.msk.bf16.mxu0 %vm8341_vm4, %v8340_v60 }
 0xa3f   : > { %6457 = vmatprep.subr.bf16.mxu0 %v8340_v60 }
 0xa45   : > { %6448 = vmatmul.mubr.msk.bf16.vlgmr.msra.gmra.mrb[8].mxu0 %vm2307_vm5, %v2604_v48 }
 0xa46   : > { %6459 = vmatprep.mubr.msk.bf16.mxu0 %vm8341_vm4, %v8340_v60 }
 0xa60   : > { %v2415_v49 = vpop.xlane.xlu0 %2414 }
 0xa61   : > { %v2423_v50 = vsub.f32 %v2406_v34, %v2415_v49 }
 0xa63   : > { %v2428_v53 = vmul.f32 1.442695, %v2423_v50 }
 0xa66   : > { %v2412_v51 = vpop.xlane.xlu1 %2411 }
 0xa67   : > { %v2422_v52 = vsub.f32 %v2405_v36, %v2412_v51 }
 0xa69   : > { %v2426_v54 = vmul.f32 1.442695, %v2422_v52 }
 0xa6a   : > { %v2457_v55 = vpop.permute.xlu1 %2456 }
 0xa6b   : > { %7048 = vpow2.f32 %v2426_v54  ;;  %6428 = vmatpush3.bf16.msra.mxu1 %v2457_v55 }
 0xa6c   : > { %6439 = vmatprep.subr.bf16.mxu1 %v8340_v60  ;;  %7050 = vpow2.f32 %v2428_v53 }
 0xa6e   : > { %v2553_v21 = vpop.permute.xlu1 %2552 }
 0xa75   : > { %v7049_v56 = vpop.eup %7048 }
 0xa76   : > { %v2434_v57 = vsel %vm2409_vm6, %v7049_v56, 0.0  ;;  %v7051_v58 = vpop.eup %7050 }
 0xa77   : > { %2435 = vadd.xlane.f32.xlu0 %v2434_v57  ;;  %v2437_v59 = vsel %vm2409_vm6, %v7051_v58, 0.0 }
 0xa7b   : > { %2438 = vadd.xlane.f32.xlu0 %v2437_v59 }
 0xa91   : > { %2554 = vrot.lane.b32.xlu0 %v9394_v7, %s8343_s22 }
 0xb04   : > { %v2436_v61 = vpop.xlane.xlu0 %2435 }
 0xb05   : > { %7052 = vrcp.f32 %v2436_v61 }
 0xb08   : > { %v2439_v62 = vpop.xlane.xlu0 %2438 }
 0xb09   : > { %7054 = vrcp.f32 %v2439_v62 }
 0xb0c   : > { %v2555_v10 = vpop.permute.xlu0 %2554 }
 0xb0d   : > { %v2560_v12 = vsel %vm2307_vm5, %v2555_v10, 0 }
 0xb0f   : > { %v7053_v0 = vpop.eup %7052 }
 0xb10   : > { %v9440_v63 = vpop.f32.mrb[4].mxu0  ;;  %v2450_v8 = vmul.f32 %v7053_v0, %v7049_v56 }
 0xb11   : > { %v6437_v1 = vpop.f32.mrb[5].mxu0 }
 0xb12   : > { %v9442_v2 = vpop.f32.mrb[6].mxu0 }
 0xb13   : > { %v7055_v3 = vpop.eup %7054  ;;  %v2551_v4 = vpack.c.bf16 %v9442_v2, %v9440_v63  ;;  %v6438_v5 = vpop.f32.mrb[7].mxu0 }
 0xb14   : > { %v2451_v9 = vmul.f32 %v7055_v3, %v7051_v58 }
 0xb16   : > { %v2454_v11 = vpack.c.bf16 %v2451_v9, %v2450_v8 }
 0xb18   : > { %6430 = vmatmul.mubr.msk.bf16.vlgmr.msra.gmra.mrb[8].mxu1 %vm2409_vm6, %v2454_v11  ;;  %v2647_v13 = vpop.f32.mrb[8].mxu0 }
 0xb19   : > { %6440 = vmatpush3.bf16.xpose.msra.mxu1 %v2560_v12  ;;  %v2656_v14 = vmul.f32 0.35355338, %v2647_v13  ;;  %v6449_v15 = vpop.f32.mrb[9].mxu0  ;;  %6441 = vmatprep.mubr.msk.bf16.mxu1 %vm8341_vm4, %v8340_v60 }
 0xb1a   : > { %v2650_v16 = vpop.f32.mrb[10].mxu0  ;;  %6451 = vmatprep.subr.bf16.mxu1 %v8340_v60 }
 0xb1b   : > { %v2657_v17 = vmul.f32 0.35355338, %v2650_v16  ;;  %v6450_v18 = vpop.f32.mrb[11].mxu0  ;;  %v2664_v19 = vsel %vm2409_vm6, %v2656_v14, -inf }
 0xb1c   : > { %2665 = vmax.xlane.f32.xlu1 %v2664_v19 }
 0xb1d   : > { %v2667_v20 = vsel %vm2409_vm6, %v2657_v17, -inf }
 0xb1e   : > { %2668 = vmax.xlane.f32.xlu0 %v2667_v20 }
 0xb20   : > { %6442 = vmatmul.mubr.msk.bf16.vlgmr.msra.gmra.mrb[12].mxu1 %vm2307_vm5, %v2553_v21 }
 0xb21   : > { %6453 = vmatprep.mubr.msk.bf16.mxu1 %vm8341_vm4, %v8340_v60 }
 0xb2d   : > { %2919 = vrot.lane.b32.xlu1 %v9394_v7, %s10002_s8 }
 0xba9   : > { %v2666_v22 = vpop.xlane.xlu1 %2665 }
 0xbaa   : > { %v2672_v23 = vsub.f32 %v2656_v14, %v2666_v22 }
 0xbab   : > { %v2669_v24 = vpop.xlane.xlu0 %2668 }
 0xbac   : > { %v2678_v25 = vmul.f32 1.442695, %v2672_v23  ;;  %v2673_v26 = vsub.f32 %v2657_v17, %v2669_v24 }
 0xbad   : > { %v2920_v45 = vpop.permute.xlu1 %2919 }
 0xbae   : > { %7056 = vpow2.f32 %v2678_v25  ;;  %v2680_v27 = vmul.f32 1.442695, %v2673_v26  ;;  %v2925_v55 = vsel %vm2307_vm5, %v2920_v45, 0  ;;  %v2298_v45 = vld [vmem:[%s9320_s16] sm:$0xf] }
 0xbb0   : > { %7058 = vpow2.f32 %v2680_v27 }
 0xbb8   : > { %v7057_v28 = vpop.eup %7056 }
 0xbb9   : > { %v2688_v29 = vsel %vm2409_vm6, %v7057_v28, 0.0 }
 0xbba   : > { %v7059_v30 = vpop.eup %7058  ;;  %2689 = vadd.xlane.f32.xlu0 %v2688_v29 }
 0xbbb   : > { %v2691_v31 = vsel %vm2409_vm6, %v7059_v30, 0.0 }
 0xbbc   : > { %2692 = vadd.xlane.f32.xlu1 %v2691_v31 }
 0xbcd   : > { %2917 = vrot.lane.b32.xlu1 %v9394_v7, %s8347_s4 }
 0xbd0   : > { %2751 = vrot.lane.b32.xlu0 %v9392_v6, %s8348_s20 }
 0xbd1   : > { %2970 = vrot.lane.b32.xlu1 %v9392_v6, %s10002_s8  ;;  %s8351_s8 = smov 104  }
 0xbd4   : > { %2968 = vrot.lane.b32.xlu0 %v9392_v6, %s8347_s4 }
 0xbeb   : > { %v9467_v32 = vpop.f32.mrb[8].mxu1 }
 0xbec   : > { %v6431_v33 = vpop.f32.mrb[9].mxu1 }
 0xbed   : > { %v9469_v34 = vpop.f32.mrb[10].mxu1 }
 0xbee   : > { %v2550_v35 = vpack.c.bf16 %v9469_v34, %v9467_v32  ;;  %v6432_v36 = vpop.f32.mrb[11].mxu1 }
 0xbf3   : > { %v2596_v37 = vpop.f32.mrb[12].mxu1 }
 0xbf4   : > { %v2654_v38 = vmul.f32 0.35355338, %v2596_v37  ;;  %v6443_v39 = vpop.f32.mrb[13].mxu1 }
 0xbf5   : > { %v2599_v40 = vpop.f32.mrb[14].mxu1 }
 0xbf6   : > { %v2655_v41 = vmul.f32 0.35355338, %v2599_v40  ;;  %v6444_v42 = vpop.f32.mrb[15].mxu1  ;;  %v2658_v43 = vsel %vm2409_vm6, %v2654_v38, -inf }
 0xbf7   : > { %2659 = vmax.xlane.f32.xlu1 %v2658_v43  ;;  %v2299_v43 = vld [vmem:[%s9320_s16 + $0x4] sm:$0xf] }
 0xbf8   : > { %v2661_v44 = vsel %vm2409_vm6, %v2655_v41, -inf }
 0xbf9   : > { %2662 = vmax.xlane.f32.xlu0 %v2661_v44  ;;  %v2808_v44 = vsel %vm2806_vm7, %v2299_v43, 0 }
 0xc08   : > { %2704 = vrot.lane.b32.xlu1 %v9394_v7, %s8348_s20  ;;  %s8349_s20 = smov 48  }
 0xc47   : > { %v2690_v46 = vpop.xlane.xlu0 %2689 }
 0xc48   : > { %7060 = vrcp.f32 %v2690_v46 }
 0xc49   : > { %v2693_v47 = vpop.xlane.xlu1 %2692 }
 0xc4a   : > { %7062 = vrcp.f32 %v2693_v47 }
 0xc4b   : > { %v2752_v48 = vpop.permute.xlu0 %2751 }
 0xc4c   : > { %6458 = vmatpush3.bf16.msra.mxu0 %v2752_v48 }
 0xc4d   : > { %6475 = vmatprep.subr.bf16.mxu0 %v8340_v60  ;;  %v2918_v54 = vpop.permute.xlu1 %2917 }
 0xc4f   : > { %v2969_v58 = vpop.permute.xlu0 %2968 }
 0xc51   : > { %v2971_v56 = vpop.permute.xlu1 %2970 }
 0xc52   : > { %v7061_v49 = vpop.eup %7060  ;;  %v2976_v57 = vsel %vm2307_vm5, %v2971_v56, 0 }
 0xc53   : > { %v2700_v51 = vmul.f32 %v7061_v49, %v7057_v28 }
 0xc54   : > { %v7063_v50 = vpop.eup %7062 }
 0xc55   : > { %v2701_v52 = vmul.f32 %v7063_v50, %v7059_v30 }
 0xc57   : > { %v2703_v53 = vpack.c.bf16 %v2701_v52, %v2700_v51 }
 0xc59   : > { %6460 = vmatmul.mubr.msk.bf16.vlgmr.msra.gmra.mrb[12].mxu0 %vm2409_vm6, %v2703_v53 }
 0xc5a   : > { %6476 = vmatpush3.bf16.xpose.msra.mxu0 %v2925_v55  ;;  %6477 = vmatprep.mubr.msk.bf16.mxu0 %vm8341_vm4, %v8340_v60 }
 0xc5b   : > { %6481 = vmatprep.subr.bf16.mxu0 %v8340_v60 }
 0xc61   : > { %6478 = vmatmul.mubr.msk.bf16.vlgmr.msra.gmra.mrb[16].mxu0 %vm2307_vm5, %v2918_v54 }
 0xc62   : > { %6482 = vmatpush3.bf16.xpose.msra.mxu0 %v2976_v57  ;;  %6483 = vmatprep.mubr.msk.bf16.mxu0 %vm8341_vm4, %v8340_v60 }
 0xc63   : > { %6493 = vmatprep.subr.bf16.mxu0 %v8340_v60 }
 0xc69   : > { %6484 = vmatmul.mubr.msk.bf16.vlgmr.msra.gmra.mrb[20].mxu0 %vm2307_vm5, %v2969_v58 }
 0xc6a   : > { %6495 = vmatprep.mubr.msk.bf16.mxu0 %vm8341_vm4, %v8340_v60 }
 0xc84   : > { %v2660_v59 = vpop.xlane.xlu1 %2659 }
 0xc85   : > { %v2670_v61 = vsub.f32 %v2654_v38, %v2660_v59 }
 0xc86   : > { %v2663_v62 = vpop.xlane.xlu0 %2662 }
 0xc87   : > { %v2674_v0 = vmul.f32 1.442695, %v2670_v61  ;;  %v2671_v1 = vsub.f32 %v2655_v41, %v2663_v62 }
 0xc88   : > { %v2705_v3 = vpop.permute.xlu1 %2704 }
 0xc89   : > { %7064 = vpow2.f32 %v2674_v0  ;;  %v2676_v5 = vmul.f32 1.442695, %v2671_v1  ;;  %6452 = vmatpush3.bf16.msra.mxu1 %v2705_v3 }
 0xc8a   : > { %6723 = vmatprep.subr.msk.bf16.mxu1 %vm2806_vm7, %v2299_v43 }
 0xc8b   : > { %7066 = vpow2.f32 %v2676_v5 }
 0xc93   : > { %v7065_v8 = vpop.eup %7064 }
 0xc94   : > { %v2682_v9 = vsel %vm2409_vm6, %v7065_v8, 0.0 }
 0xc95   : > { %v7067_v10 = vpop.eup %7066  ;;  %2683 = vadd.xlane.f32.xlu0 %v2682_v9 }
 0xc96   : > { %v2685_v11 = vsel %vm2409_vm6, %v7067_v10, 0.0 }
 0xc99   : > { %2686 = vadd.xlane.f32.xlu0 %v2685_v11 }
 0xd22   : > { %v2684_v12 = vpop.xlane.xlu0 %2683 }
 0xd23   : > { %7068 = vrcp.f32 %v2684_v12 }
 0xd26   : > { %v2687_v13 = vpop.xlane.xlu0 %2686 }
 0xd27   : > { %7070 = vrcp.f32 %v2687_v13  ;;  %v2866_v13 = vsel %vm2806_vm7, %v2298_v45, 0 }
 0xd2c   : > { %v9492_v14 = vpop.f32.mrb[12].mxu0 }
 0xd2d   : > { %v6461_v15 = vpop.f32.mrb[13].mxu0  ;;  %v7069_v17 = vpop.eup %7068 }
 0xd2e   : > { %v9494_v16 = vpop.f32.mrb[14].mxu0  ;;  %v2698_v21 = vmul.f32 %v7069_v17, %v7065_v8 }
 0xd2f   : > { %v2799_v18 = vpack.c.bf16 %v9494_v16, %v9492_v14  ;;  %v6462_v19 = vpop.f32.mrb[15].mxu0 }
 0xd31   : > { %v7071_v20 = vpop.eup %7070 }
 0xd32   : > { %v2699_v22 = vmul.f32 %v7071_v20, %v7067_v10 }
 0xd34   : > { %v2961_v23 = vpop.f32.mrb[16].mxu0  ;;  %v2702_v24 = vpack.c.bf16 %v2699_v22, %v2698_v21 }
 0xd35   : > { %v3019_v25 = vmul.f32 0.35355338, %v2961_v23  ;;  %v6479_v26 = vpop.f32.mrb[17].mxu0 }
 0xd36   : > { %6454 = vmatmul.mubr.msk.bf16.vlgmr.msra.gmra.mrb[16].mxu1 %vm2409_vm6, %v2702_v24  ;;  %v2964_v27 = vpop.f32.mrb[18].mxu0 }
 0xd37   : > { %v3020_v28 = vmul.f32 0.35355338, %v2964_v27  ;;  %v6480_v29 = vpop.f32.mrb[19].mxu0  ;;  %v3023_v30 = vsel %vm2409_vm6, %v3019_v25, -inf  ;;  %6464 = vmatpush3.bf16.msra.mxu1 %v2808_v44 }
 0xd38   : > { %3024 = vmax.xlane.f32.xlu0 %v3023_v30  ;;  %6724 = vmatprep.subr.msk.bf16.mxu1 %vm2806_vm7, %v2298_v45 }
 0xd39   : > { %v3026_v31 = vsel %vm2409_vm6, %v3020_v28, -inf }
 0xd3c   : > { %v3012_v33 = vpop.f32.mrb[20].mxu0  ;;  %3027 = vmax.xlane.f32.xlu0 %v3026_v31 }
 0xd3d   : > { %v3021_v36 = vmul.f32 0.35355338, %v3012_v33  ;;  %v6485_v37 = vpop.f32.mrb[21].mxu0 }
 0xd3e   : > { %v3015_v38 = vpop.f32.mrb[22].mxu0 }
 0xd3f   : > { %v3022_v39 = vmul.f32 0.35355338, %v3015_v38  ;;  %v6486_v40 = vpop.f32.mrb[23].mxu0  ;;  %v3029_v41 = vsel %vm2409_vm6, %v3021_v36, -inf }
 0xd40   : > { %3030 = vmax.xlane.f32.xlu0 %v3029_v41 }
 0xd41   : > { %v3032_v42 = vsel %vm2409_vm6, %v3022_v39, -inf }
 0xd44   : > { %3033 = vmax.xlane.f32.xlu0 %v3032_v42 }
 0xdc5   : > { %v3025_v46 = vpop.xlane.xlu0 %3024 }
 0xdc6   : > { %v3035_v47 = vsub.f32 %v3019_v25, %v3025_v46 }
 0xdc8   : > { %v3039_v48 = vmul.f32 1.442695, %v3035_v47 }
 0xdc9   : > { %v3028_v49 = vpop.xlane.xlu0 %3027 }
 0xdca   : > { %7072 = vpow2.f32 %v3039_v48  ;;  %v3036_v50 = vsub.f32 %v3020_v28, %v3028_v49  ;;  %v2300_v28 = vld [vmem:[%s9320_s16 + $0x8] sm:$0xf] }
 0xdcb   : > { %v3172_v29 = vsel %vm2806_vm7, %v2300_v28, 0 }
 0xdcc   : > { %v3041_v51 = vmul.f32 1.442695, %v3036_v50 }
 0xdcd   : > { %v3031_v52 = vpop.xlane.xlu0 %3030 }
 0xdce   : > { %7074 = vpow2.f32 %v3041_v51  ;;  %v3037_v53 = vsub.f32 %v3021_v36, %v3031_v52 }
 0xdd0   : > { %v3043_v54 = vmul.f32 1.442695, %v3037_v53 }
 0xdd1   : > { %v3034_v55 = vpop.xlane.xlu0 %3033 }
 0xdd2   : > { %7076 = vpow2.f32 %v3043_v54  ;;  %v3038_v56 = vsub.f32 %v3022_v39, %v3034_v55 }
 0xdd4   : > { %v7073_v57 = vpop.eup %7072  ;;  %v3045_v58 = vmul.f32 1.442695, %v3038_v56 }
 0xdd5   : > { %v3047_v59 = vsel %vm2409_vm6, %v7073_v57, 0.0 }
 0xdd6   : > { %7078 = vpow2.f32 %v3045_v58  ;;  %3048 = vadd.xlane.f32.xlu1 %v3047_v59 }
 0xdd8   : > { %v7075_v61 = vpop.eup %7074 }
 0xdd9   : > { %v3050_v62 = vsel %vm2409_vm6, %v7075_v61, 0.0 }
 0xdda   : > { %3051 = vadd.xlane.f32.xlu0 %v3050_v62 }
 0xddc   : > { %v7077_v0 = vpop.eup %7076 }
 0xddd   : > { %v3053_v1 = vsel %vm2409_vm6, %v7077_v0, 0.0 }
 0xdde   : > { %3054 = vadd.xlane.f32.xlu0 %v3053_v1 }
 0xde0   : > { %v7079_v3 = vpop.eup %7078 }
 0xde1   : > { %v3056_v5 = vsel %vm2409_vm6, %v7079_v3, 0.0 }
 0xde2   : > { %3057 = vadd.xlane.f32.xlu0 %v3056_v5 }
 0xde7   : > { %3116 = vrot.lane.b32.xlu1 %v9392_v6, %s8349_s20 }
 0xdf8   : > { %3069 = vrot.lane.b32.xlu0 %v9394_v7, %s8349_s20  ;;  %s8352_s20 = smov 40  }
 0xdfc   : > { %3229 = vrot.lane.b32.xlu0 %v9394_v7, %s8350_s6 }
 0xe00   : > { %3280 = vrot.lane.b32.xlu0 %v9392_v6, %s8350_s6 }
 0xe04   : > { %3227 = vrot.lane.b32.xlu0 %v9394_v7, %s8351_s8 }
 0xe08   : > { %3278 = vrot.lane.b32.xlu0 %v9392_v6, %s8351_s8 }
 0xe09   : > { %v2744_v8 = vpop.f32.mrb[16].mxu1 }
 0xe0a   : > { %v6455_v9 = vpop.f32.mrb[17].mxu1 }
 0xe0b   : > { %v2747_v10 = vpop.f32.mrb[18].mxu1 }
 0xe0c   : > { %v2798_v11 = vpack.c.bf16 %v2747_v10, %v2744_v8  ;;  %v6456_v12 = vpop.f32.mrb[19].mxu1 }
 0xe0e   : > { %6465 = vmatprep.mubr.msk.bf16.mxu1 %vm2307_vm5, %v2798_v11 }
 0xe0f   : > { %6466 = vmatmul.mubr.msk.bf16.vlgmr.msra.gmra.mrb[20].mxu1 %vm2307_vm5, %v2799_v18 }
 0xe10   : > { %6471 = vmatprep.mubr.msk.bf16.mxu1 %vm2307_vm5, %v2550_v35  ;;  %6470 = vmatpush3.bf16.msra.mxu1 %v2866_v13 }
 0xe11   : > { %6487 = vmatprep.subr.bf16.mxu1 %v8340_v60 }
 0xe1b   : > { %6472 = vmatmul.mubr.msk.bf16.vlgmr.msra.gmra.mrb[20].mxu1 %vm2307_vm5, %v2551_v4 }
 0xe1c   : > { %6489 = vmatprep.mubr.msk.bf16.mxu1 %vm8341_vm4, %v8340_v60 }
 0xe63   : > { %v3049_v15 = vpop.xlane.xlu1 %3048 }
 0xe64   : > { %7080 = vrcp.f32 %v3049_v15 }
 0xe67   : > { %v3052_v14 = vpop.xlane.xlu0 %3051  ;;  %v3117_v16 = vpop.permute.xlu1 %3116 }
 0xe68   : > { %7082 = vrcp.f32 %v3052_v14  ;;  %6494 = vmatpush3.bf16.msra.mxu0 %v3117_v16 }
 0xe69   : > { %6505 = vmatprep.subr.bf16.mxu0 %v8340_v60 }
 0xe6b   : > { %v3055_v32 = vpop.xlane.xlu0 %3054 }
 0xe6c   : > { %7084 = vrcp.f32 %v3055_v32 }
 0xe6e   : > { %v7081_v35 = vpop.eup %7080 }
 0xe6f   : > { %v3058_v34 = vpop.xlane.xlu0 %3057  ;;  %v3063_v63 = vmul.f32 %v7081_v35, %v7073_v57 }
 0xe70   : > { %7086 = vrcp.f32 %v3058_v34 }
 0xe72   : > { %v7083_v17 = vpop.eup %7082 }
 0xe73   : > { %v3064_v2 = vmul.f32 %v7083_v17, %v7075_v61  ;;  %v3070_v4 = vpop.permute.xlu0 %3069 }
 0xe74   : > { %6488 = vmatpush3.bf16.msra.mxu1 %v3070_v4 }
 0xe75   : > { %v3067_v18 = vpack.c.bf16 %v3064_v2, %v3063_v63  ;;  %6725 = vmatprep.subr.msk.bf16.mxu1 %vm2806_vm7, %v2300_v28 }
 0xe76   : > { %v7085_v19 = vpop.eup %7084 }
 0xe77   : > { %6490 = vmatmul.mubr.msk.bf16.vlgmr.msra.gmra.mrb[24].mxu1 %vm2409_vm6, %v3067_v18  ;;  %v3230_v21 = vpop.permute.xlu0 %3229  ;;  %v3065_v22 = vmul.f32 %v7085_v19, %v7077_v0 }
 0xe78   : > { %v3235_v25 = vsel %vm2307_vm5, %v3230_v21, 0  ;;  %6500 = vmatpush3.bf16.msra.mxu1 %v3172_v29 }
 0xe79   : > { %6511 = vmatprep.subr.bf16.mxu1 %v8340_v60 }
 0xe7a   : > { %v7087_v20 = vpop.eup %7086 }
 0xe7b   : > { %v3066_v23 = vmul.f32 %v7087_v20, %v7079_v3  ;;  %v3281_v26 = vpop.permute.xlu0 %3280 }
 0xe7c   : > { %v3286_v43 = vsel %vm2307_vm5, %v3281_v26, 0 }
 0xe7d   : > { %v3068_v24 = vpack.c.bf16 %v3066_v23, %v3065_v22 }
 0xe7f   : > { %6496 = vmatmul.mubr.msk.bf16.vlgmr.msra.gmra.mrb[24].mxu0 %vm2409_vm6, %v3068_v24  ;;  %v3228_v27 = vpop.permute.xlu0 %3227 }
 0xe80   : > { %6506 = vmatpush3.bf16.xpose.msra.mxu0 %v3235_v25  ;;  %6507 = vmatprep.mubr.msk.bf16.mxu0 %vm8341_vm4, %v8340_v60 }
 0xe81   : > { %6517 = vmatprep.subr.bf16.mxu0 %v8340_v60 }
 0xe83   : > { %v3279_v51 = vpop.permute.xlu0 %3278 }
 0xe87   : > { %6508 = vmatmul.mubr.msk.bf16.vlgmr.msra.gmra.mrb[28].mxu0 %vm2307_vm5, %v3228_v27 }
 0xe88   : > { %6519 = vmatprep.mubr.msk.bf16.mxu0 %vm8341_vm4, %v8340_v60 }
 0xf4a   : > { %v3109_v30 = vpop.f32.mrb[24].mxu1 }
 0xf4b   : > { %v6491_v31 = vpop.f32.mrb[25].mxu1 }
 0xf4c   : > { %v3112_v33 = vpop.f32.mrb[26].mxu1  ;;  %v2301_v31 = vld [vmem:[%s9320_s16 + $0xc] sm:$0xf] }
 0xf4d   : > { %v3163_v36 = vpack.c.bf16 %v3112_v33, %v3109_v30  ;;  %v6492_v37 = vpop.f32.mrb[27].mxu1  ;;  %v3482_v33 = vsel %vm2806_vm7, %v2301_v31, 0 }
 0xf4f   : > { %6501 = vmatprep.mubr.msk.bf16.mxu1 %vm2307_vm5, %v3163_v36 }
 0xf52   : > { %v3156_v38 = vpop.f32.mrb[24].mxu0 }
 0xf53   : > { %v6497_v39 = vpop.f32.mrb[25].mxu0 }
 0xf54   : > { %v3159_v40 = vpop.f32.mrb[26].mxu0 }
 0xf55   : > { %v3164_v41 = vpack.c.bf16 %v3159_v40, %v3156_v38  ;;  %v6498_v42 = vpop.f32.mrb[27].mxu0 }
 0xf57   : > { %6502 = vmatmul.mubr.msk.bf16.vlgmr.msra.gmra.mrb[20].mxu1 %vm2307_vm5, %v3164_v41 }
 0xf58   : > { %6512 = vmatpush3.bf16.xpose.msra.mxu1 %v3286_v43  ;;  %6513 = vmatprep.mubr.msk.bf16.mxu1 %vm8341_vm4, %v8340_v60 }
 0xf59   : > { %6523 = vmatprep.subr.bf16.mxu1 %v8340_v60 }
 0xf5a   : > { %v3271_v44 = vpop.f32.mrb[28].mxu0 }
 0xf5b   : > { %v3329_v45 = vmul.f32 0.35355338, %v3271_v44  ;;  %v6509_v46 = vpop.f32.mrb[29].mxu0 }
 0xf5c   : > { %v3274_v47 = vpop.f32.mrb[30].mxu0 }
 0xf5d   : > { %v3330_v48 = vmul.f32 0.35355338, %v3274_v47  ;;  %v6510_v49 = vpop.f32.mrb[31].mxu0  ;;  %v3333_v50 = vsel %vm2409_vm6, %v3329_v45, -inf  ;;  %v6184_v47 = vld [vmem:[%s1564_s15] ss:$0 sm:$0xff] }
 0xf5e   : > { %3334 = vmax.xlane.f32.xlu0 %v3333_v50  ;;  %v7192_v49 = vld [vmem:[#allocation2 + $0x10] sm:$0xff]  ;;  %s10115_s15 = scalar_lea.vmem [#allocation36], %s9305_s14 }
 0xf5f   : > { %6514 = vmatmul.mubr.msk.bf16.vlgmr.msra.gmra.mrb[28].mxu1 %vm2307_vm5, %v3279_v51  ;;  %v3336_v52 = vsel %vm2409_vm6, %v3330_v48, -inf  ;;  %v7193_v51 = vld [vmem:[#allocation2] sm:$0xff] }
 0xf60   : > { %3337 = vmax.xlane.f32.xlu1 %v3336_v52  ;;  %6525 = vmatprep.mubr.msk.bf16.mxu1 %vm8341_vm4, %v8340_v60 }
 0xfeb   : > { %v3335_v53 = vpop.xlane.xlu0 %3334 }
 0xfec   : > { %v3345_v54 = vsub.f32 %v3329_v45, %v3335_v53 }
 0xfed   : > { %v3338_v58 = vpop.xlane.xlu1 %3337 }
 0xfee   : > { %v3349_v55 = vmul.f32 1.442695, %v3345_v54  ;;  %v3346_v59 = vsub.f32 %v3330_v48, %v3338_v58  ;;  %v7195_v58 = vld [vmem:[#allocation2 + $0x8] sm:$0xff] }
 0xff0   : > { %7088 = vpow2.f32 %v3349_v55  ;;  %v3351_v61 = vmul.f32 1.442695, %v3346_v59 }
 0xff2   : > { %7090 = vpow2.f32 %v3351_v61 }
 0xffa   : > { %v7089_v56 = vpop.eup %7088 }
 0xffb   : > { %v3357_v57 = vsel %vm2409_vm6, %v7089_v56, 0.0 }
 0xffc   : > { %3358 = vadd.xlane.f32.xlu1 %v3357_v57  ;;  %v7091_v11 = vpop.eup %7090 }
 0xffd   : > { %v3360_v12 = vsel %vm2409_vm6, %v7091_v11, 0.0 }
0x1032   : > { %v3322_v62 = vpop.f32.mrb[28].mxu1 }
0x1033   : > { %v3331_v0 = vmul.f32 0.35355338, %v3322_v62  ;;  %v6515_v1 = vpop.f32.mrb[29].mxu1 }
0x1034   : > { %v3325_v3 = vpop.f32.mrb[30].mxu1 }
0x1035   : > { %v3332_v5 = vmul.f32 0.35355338, %v3325_v3  ;;  %v6516_v8 = vpop.f32.mrb[31].mxu1  ;;  %v3339_v9 = vsel %vm2409_vm6, %v3331_v0, -inf }
0x1036   : > { %3340 = vmax.xlane.f32.xlu0 %v3339_v9 }
0x1037   : > { %v3342_v10 = vsel %vm2409_vm6, %v3332_v5, -inf }
0x103a   : > { %3343 = vmax.xlane.f32.xlu0 %v3342_v10 }
0x103e   : > { %3361 = vadd.xlane.f32.xlu0 %v3360_v12 }
0x1089   : > { %v3359_v18 = vpop.xlane.xlu1 %3358 }
0x10c3   : > { %v3341_v13 = vpop.xlane.xlu0 %3340 }
0x10c4   : > { %v3347_v15 = vsub.f32 %v3331_v0, %v3341_v13 }
0x10c6   : > { %v3353_v14 = vmul.f32 1.442695, %v3347_v15 }
0x10c7   : > { %v3344_v16 = vpop.xlane.xlu0 %3343 }
0x10c8   : > { %7092 = vpow2.f32 %v3353_v14  ;;  %v3348_v32 = vsub.f32 %v3332_v5, %v3344_v16 }
0x10ca   : > { %v3355_v34 = vmul.f32 1.442695, %v3348_v32 }
0x10cb   : > { %v3362_v4 = vpop.xlane.xlu0 %3361 }
0x10cc   : > { %7094 = vpow2.f32 %v3355_v34 }
0x10cd   : > { %7096 = vrcp.f32 %v3362_v4 }
0x10ce   : > { %7098 = vrcp.f32 %v3359_v18 }
0x10d2   : > { %v7093_v35 = vpop.eup %7092 }
0x10d3   : > { %v3363_v17 = vsel %vm2409_vm6, %v7093_v35, 0.0 }
0x10d4   : > { %3364 = vadd.xlane.f32.xlu1 %v3363_v17 }
0x10d6   : > { %v7095_v63 = vpop.eup %7094 }
0x10d7   : > { %v3366_v2 = vsel %vm2409_vm6, %v7095_v63, 0.0  ;;  %v7097_v19 = vpop.eup %7096 }
0x10d8   : > { %3367 = vadd.xlane.f32.xlu0 %v3366_v2  ;;  %v7099_v21 = vpop.eup %7098  ;;  %v3374_v22 = vmul.f32 %v7097_v19, %v7091_v11 }
0x10d9   : > { %v3373_v23 = vmul.f32 %v7099_v21, %v7089_v56  ;;  %v7194_v56 = vld [vmem:[#allocation2 + $0x18] sm:$0xff] }
0x10db   : > { %v3377_v26 = vpack.c.bf16 %v3374_v22, %v3373_v23  ;;  %v7022_v23 = vld [vmem:[%s1589_s28] sm:$0xff]  }
0x10e5   : > { %3379 = vrot.lane.b32.xlu1 %v9394_v7, %s8352_s20 }
0x10ee   : > { %3426 = vrot.lane.b32.xlu0 %v9392_v6, %s8352_s20 }
0x1161   : > { %v3365_v20 = vpop.xlane.xlu1 %3364 }
0x1162   : > { %7100 = vrcp.f32 %v3365_v20 }
0x1165   : > { %v3368_v24 = vpop.xlane.xlu0 %3367  ;;  %v3380_v25 = vpop.permute.xlu1 %3379 }
0x1166   : > { %7102 = vrcp.f32 %v3368_v24  ;;  %6518 = vmatpush3.bf16.msra.mxu0 %v3380_v25  ;;  %v7023_v24 = vld [vmem:[%s1589_s28 + $0x8] sm:$0xff]  }
0x1167   : > { %6535 = vmatprep.subr.bf16.mxu0 %v7022_v23 }
0x1169   : > { %v3427_v27 = vpop.permute.xlu0 %3426  ;;  %6520 = vmatmul.mubr.msk.bf16.vlgmr.msra.gmra.mrb[32].mxu0 %vm2409_vm6, %v3377_v26 }
0x116a   : > { %6524 = vmatpush3.bf16.msra.mxu1 %v3427_v27  ;;  %6536 = vmatpush3.bf16.msra.mxu0 %v7022_v23 }
0x116b   : > { %6726 = vmatprep.subr.msk.bf16.mxu1 %vm2806_vm7, %v2301_v31  ;;  %6537 = vmatprep.subr.bf16.mxu0 %v7023_v24 }
0x116c   : > { %v7101_v6 = vpop.eup %7100 }
0x116d   : > { %v3375_v28 = vmul.f32 %v7101_v6, %v7093_v35 }
0x116e   : > { %6538 = vmatpush3.bf16.msra.mxu0 %v7023_v24 }
0x116f   : > { %6543 = vmatprep.subr.bf16.mxu0 %v8340_v60 }
0x1170   : > { %v7103_v7 = vpop.eup %7102 }
0x1171   : > { %v3376_v29 = vmul.f32 %v7103_v7, %v7095_v63 }
0x1173   : > { %v3378_v30 = vpack.c.bf16 %v3376_v29, %v3375_v28 }
0x1175   : > { %6526 = vmatmul.mubr.msk.bf16.vlgmr.msra.gmra.mrb[32].mxu1 %vm2409_vm6, %v3378_v30 }
0x1176   : > { %6530 = vmatpush3.bf16.msra.mxu1 %v3482_v33 }
0x1177   : > { %6551 = vmatprep.subr.bf16.mxu1 %v8340_v60 }
0x123c   : > { %v3419_v36 = vpop.f32.mrb[32].mxu0 }
0x123d   : > { %v6521_v37 = vpop.f32.mrb[33].mxu0 }
0x123e   : > { %v3422_v38 = vpop.f32.mrb[34].mxu0 }
0x123f   : > { %v3473_v39 = vpack.c.bf16 %v3422_v38, %v3419_v36  ;;  %v6522_v40 = vpop.f32.mrb[35].mxu0 }
0x1241   : > { %6531 = vmatprep.mubr.msk.bf16.mxu1 %vm2307_vm5, %v3473_v39  ;;  %v6185_v39 = vld [vmem:[%s1572_s23] ss:$0 sm:$0xff]  ;;  %s10116_s23 = scalar_lea.vmem [#allocation38], %s9305_s14 }
0x1248   : > { %v3466_v41 = vpop.f32.mrb[32].mxu1 }
0x1249   : > { %v6527_v42 = vpop.f32.mrb[33].mxu1 }
0x124a   : > { %v3469_v43 = vpop.f32.mrb[34].mxu1 }
0x124b   : > { %v3474_v44 = vpack.c.bf16 %v3469_v43, %v3466_v41  ;;  %v6528_v45 = vpop.f32.mrb[35].mxu1 }
0x124c   : > { %v6186_v45 = vld [vmem:[%s1580_s3] ss:$0 sm:$0xff] }
0x124d   : > { %6532 = vmatmul.mubr.msk.bf16.vlgmr.msra.gmra.mrb[20].mxu1 %vm2307_vm5, %v3474_v44 }
0x124e   : > { %6553 = vmatprep.mubr.msk.bf16.mxu1 %vm8341_vm4, %v8340_v60 }
0x1320   : > { %v6533_v46 = vpop.f32.mrb[20].mxu1 }
0x1321   : > { %v3518_v48 = vpop.f32.mrb[21].mxu1  ;;  %v3539_v50 = vadd.f32 %v7192_v49, %v6533_v46 }
0x1322   : > { %v3537_v52 = vadd.f32 %v7193_v51, %v3518_v48  ;;  %v6534_v53 = vpop.f32.mrb[22].mxu1 }
0x1323   : > { %v3521_v54 = vpop.f32.mrb[23].mxu1  ;;  %v3540_v57 = vadd.f32 %v7194_v56, %v6534_v53  ;;  %v9586_v61 = vadd.f32 %v6184_v47, %v3539_v50 }
0x1324   : > { %v9584_v55 = vadd.f32 %v6184_v47, %v3537_v52  ;;  %v3538_v59 = vadd.f32 %v7195_v58, %v3521_v54  ;;  %v7024_v58 = vld [vmem:[%s1606_s10] sm:$0xff]  }
0x1325   : > { %v9592_v1 = vadd.f32 %v6184_v47, %v3540_v57  ;;  %v3560_v5 = vsel %vm2144_vm3, %v9586_v61, 0.0 }
0x1326   : > { %v9588_v62 = vadd.f32 %v6184_v47, %v3538_v59  ;;  %v3554_v0 = vsel %vm2144_vm3, %v9584_v55, 0.0 }
0x1327   : > { %3555 = vadd.xlane.f32.xlu1 %v3554_v0  ;;  %v3563_v8 = vsel %vm2144_vm3, %v9592_v1, 0.0  ;;  %v7025_v0 = vld [vmem:[%s1606_s10 + $0x8] sm:$0xff]  }
0x1328   : > { %v3557_v3 = vsel %vm2144_vm3, %v9588_v62, 0.0 }
0x1329   : > { %3558 = vadd.xlane.f32.xlu0 %v3557_v3  ;;  %v2140_v3 = vld [vmem:[#allocation3] sm:$0xff] }
0x132b   : > { %3561 = vadd.xlane.f32.xlu1 %v3560_v5  ;;  %v2141_v5 = vld [vmem:[#allocation3 + $0x8] sm:$0xff] }
0x132d   : > { %3564 = vadd.xlane.f32.xlu0 %v3563_v8  ;;  %v3711_v8 = vpack.c.bf16 %v2141_v5, %v2140_v3 }
0x13b4   : > { %v3556_v9 = vpop.xlane.xlu1 %3555 }
0x13b5   : > { %v3566_v10 = vmul.f32 0.03125, %v3556_v9 }
0x13b6   : > { %v3559_v11 = vpop.xlane.xlu0 %3558 }
0x13b7   : > { %v3570_v12 = vsub.f32 %v9584_v55, %v3566_v10  ;;  %v3567_v13 = vmul.f32 0.03125, %v3559_v11  ;;  %v6187_v10 = vld [vmem:[%s1597_s2] ss:$0 sm:$0xff] }
0x13b8   : > { %v3562_v15 = vpop.xlane.xlu1 %3561 }
0x13b9   : > { %v3571_v14 = vsub.f32 %v9588_v62, %v3567_v13  ;;  %v3568_v16 = vmul.f32 0.03125, %v3562_v15  ;;  %v3574_v32 = vmul.f32 %v3570_v12, %v3570_v12 }
0x13ba   : > { %v3565_v34 = vpop.xlane.xlu0 %3564 }
0x13bb   : > { %v3572_v35 = vsub.f32 %v9586_v61, %v3568_v16  ;;  %v3569_v17 = vmul.f32 0.03125, %v3565_v34  ;;  %v3578_v63 = vsel %vm2144_vm3, %v3574_v32, 0.0  ;;  %v3575_v2 = vmul.f32 %v3571_v14, %v3571_v14 }
0x13bc   : > { %3579 = vadd.xlane.f32.xlu1 %v3578_v63 }
0x13bd   : > { %v3573_v4 = vsub.f32 %v9592_v1, %v3569_v17  ;;  %v3581_v18 = vsel %vm2144_vm3, %v3575_v2, 0.0  ;;  %v3576_v19 = vmul.f32 %v3572_v35, %v3572_v35  ;;  %v6192_v17 = vld [vmem:[%s1614_s1] ss:$0 sm:$0xff] }
0x13be   : > { %3582 = vadd.xlane.f32.xlu0 %v3581_v18 }
0x13bf   : > { %v3584_v20 = vsel %vm2144_vm3, %v3576_v19, 0.0  ;;  %v3577_v21 = vmul.f32 %v3573_v4, %v3573_v4 }
0x13c0   : > { %3585 = vadd.xlane.f32.xlu1 %v3584_v20 }
0x13c1   : > { %v3587_v22 = vsel %vm2144_vm3, %v3577_v21, 0.0 }
0x13c2   : > { %3588 = vadd.xlane.f32.xlu0 %v3587_v22 }
0x1449   : > { %v3580_v25 = vpop.xlane.xlu1 %3579 }
0x144a   : > { %v3590_v26 = vmul.f32 0.03125, %v3580_v25 }
0x144b   : > { %v3583_v27 = vpop.xlane.xlu0 %3582 }
0x144c   : > { %v3594_v6 = vadd.f32 1e-05, %v3590_v26  ;;  %v3591_v7 = vmul.f32 0.03125, %v3583_v27 }
0x144d   : > { %v3586_v28 = vpop.xlane.xlu1 %3585 }
0x144e   : > { %7104 = vrsqrt.f32 %v3594_v6  ;;  %v3595_v29 = vadd.f32 1e-05, %v3591_v7  ;;  %v3592_v30 = vmul.f32 0.03125, %v3586_v28 }
0x144f   : > { %v3589_v31 = vpop.xlane.xlu0 %3588 }
0x1450   : > { %7106 = vrsqrt.f32 %v3595_v29  ;;  %v3596_v33 = vadd.f32 1e-05, %v3592_v30  ;;  %v3593_v36 = vmul.f32 0.03125, %v3589_v31 }
0x1452   : > { %7108 = vrsqrt.f32 %v3596_v33  ;;  %v3597_v37 = vadd.f32 1e-05, %v3593_v36 }
0x1454   : > { %7110 = vrsqrt.f32 %v3597_v37 }
0x1458   : > { %v7105_v38 = vpop.eup %7104 }
0x1459   : > { %v3602_v40 = vmul.f32 %v7105_v38, %v3570_v12 }
0x145a   : > { %v7107_v41 = vpop.eup %7106 }
0x145b   : > { %v3603_v42 = vmul.f32 %v7107_v41, %v3571_v14  ;;  %v3612_v43 = vmul.f32 %v6185_v39, %v3602_v40 }
0x145c   : > { %v7109_v44 = vpop.eup %7108 }
0x145d   : > { %v3604_v46 = vmul.f32 %v7109_v44, %v3572_v35  ;;  %v3613_v47 = vmul.f32 %v6185_v39, %v3603_v42  ;;  %v3622_v51 = vadd.f32 %v6186_v45, %v3612_v43 }
0x145e   : > { %v7111_v48 = vpop.eup %7110 }
0x145f   : > { %v3614_v49 = vmul.f32 %v6185_v39, %v3604_v46  ;;  %v3605_v50 = vmul.f32 %v7111_v48, %v3573_v4  ;;  %v3623_v52 = vadd.f32 %v6186_v45, %v3613_v47 }
0x1461   : > { %v3615_v53 = vmul.f32 %v6185_v39, %v3605_v50  ;;  %v3631_v54 = vpack.c.bf16 %v3623_v52, %v3622_v51  ;;  %v3624_v56 = vadd.f32 %v6186_v45, %v3614_v49 }
0x1463   : > { %6539 = vmatprep.mubr.msk.bf16.mxu0 %vm2144_vm3, %v3631_v54  ;;  %v3625_v57 = vadd.f32 %v6186_v45, %v3615_v53 }
0x1465   : > { %v3632_v59 = vpack.c.bf16 %v3625_v57, %v3624_v56 }
0x1467   : > { %6540 = vmatmul.mubr.msk.bf16.vlgmr.msra.gmra.mrb[36].mxu0 %vm2144_vm3, %v3632_v59 }
0x1468   : > { %6544 = vmatpush3.bf16.msra.mxu0 %v7024_v58  ;;  %6547 = vmatprep.mubr.msk.bf16.mxu0 %vm8341_vm4, %v8340_v60 }
0x1469   : > { %6545 = vmatprep.subr.bf16.mxu0 %v8340_v60 }
0x146c   : > { %6546 = vmatpush3.bf16.msra.mxu0 %v7025_v0 }
0x146d   : > { %6557 = vmatprep.subr.bf16.mxu0 %v8340_v60 }
0x146f   : > { %6548 = vmatmul.mubr.msk.bf16.vlgmr.msra.gmra.mrb[40].mxu0 %vm2144_vm3, %v3711_v8 }
0x1470   : > { %6559 = vmatprep.mubr.msk.bf16.mxu0 %vm8341_vm4, %v8340_v60 }
0x153a   : > { %v6541_v9 = vpop.f32.mrb[36].mxu0 }
0x153b   : > { %v3691_v11 = vpop.f32.mrb[37].mxu0  ;;  %v3700_v13 = vadd.f32 %v6541_v9, %v6187_v10 }
0x153c   : > { %v6542_v12 = vpop.f32.mrb[38].mxu0  ;;  %v3692_v16 = vadd.f32 %v6187_v10, %v3691_v11 }
0x153d   : > { %v3703_v15 = vadd.f32 %v6542_v12, %v6187_v10  ;;  %v3694_v14 = vpop.f32.mrb[39].mxu0 }
0x153e   : > { %v3695_v32 = vadd.f32 %v6187_v10, %v3694_v14 }
0x153f   : > { %v9632_v34 = vpack.c.bf16 %v3703_v15, %v3700_v13 }
0x1540   : > { %v9634_v35 = vpack.c.bf16 %v3695_v32, %v3692_v16 }
0x1542   : > { %v3767_v63 = vpop.f32.mrb[40].mxu0 }
0x1543   : > { %v3768_v2 = vadd.f32 %v6192_v17, %v3767_v63  ;;  %v6549_v4 = vpop.f32.mrb[41].mxu0 }
0x1544   : > { %v3770_v18 = vpop.f32.mrb[42].mxu0 }
0x1545   : > { %v9638_v19 = vpack.c.bf16 %v3768_v2, %v3768_v2  ;;  %v3771_v20 = vadd.f32 %v6192_v17, %v3770_v18  ;;  %v6550_v21 = vpop.f32.mrb[43].mxu0 }
0x1547   : > { %v9640_v22 = vpack.c.bf16 %v3771_v20, %v3771_v20  ;;  %v3786_v23 = vsel %vm2307_vm5, %v9638_v19, 0 }
0x1548   : > { %6552 = vmatpush3.bf16.xpose.msra.mxu1 %v3786_v23 }
0x1549   : > { %v3833_v24 = vsel %vm2307_vm5, %v9640_v22, 0  ;;  %6563 = vmatprep.subr.bf16.mxu1 %v8340_v60 }
0x154a   : > { %6558 = vmatpush3.bf16.xpose.msra.mxu0 %v3833_v24 }
0x154b   : > { %6569 = vmatprep.subr.bf16.mxu0 %v8340_v60 }
0x154f   : > { %6554 = vmatmul.mubr.msk.bf16.vlgmr.msra.gmra.mrb[36].mxu1 %vm2307_vm5, %v9634_v35 }
0x1550   : > { %6565 = vmatprep.mubr.msk.bf16.mxu1 %vm8341_vm4, %v8340_v60 }
0x1551   : > { %6560 = vmatmul.mubr.msk.bf16.vlgmr.msra.gmra.mrb[44].mxu0 %vm2307_vm5, %v9632_v34 }
0x1552   : > { %6571 = vmatprep.mubr.msk.bf16.mxu0 %vm8341_vm4, %v8340_v60 }
0x1622   : > { %v3822_v25 = vpop.f32.mrb[36].mxu1 }
0x1623   : > { %v6555_v26 = vpop.f32.mrb[37].mxu1  ;;  %v3876_v49 = vmul.f32 0.35355338, %v3822_v25 }
0x1624   : > { %v3825_v27 = vpop.f32.mrb[38].mxu1  ;;  %v3869_v6 = vpop.f32.mrb[44].mxu0 }
0x1625   : > { %v3878_v7 = vmul.f32 0.35355338, %v3869_v6  ;;  %v6556_v28 = vpop.f32.mrb[39].mxu1  ;;  %v6561_v29 = vpop.f32.mrb[45].mxu0  ;;  %v3877_v48 = vmul.f32 0.35355338, %v3825_v27 }
0x1626   : > { %v3872_v30 = vpop.f32.mrb[46].mxu0  ;;  %v3880_v51 = vsel %vm2307_vm5, %v3876_v49, -inf }
0x1627   : > { %v3879_v31 = vmul.f32 0.35355338, %v3872_v30  ;;  %v6562_v33 = vpop.f32.mrb[47].mxu0  ;;  %v3886_v36 = vsel %vm2307_vm5, %v3878_v7, -inf  ;;  %v3883_v50 = vsel %vm2307_vm5, %v3877_v48, -inf }
0x1628   : > { %3887 = vmax.xlane.f32.xlu1 %v3886_v36 }
0x1629   : > { %v3889_v37 = vsel %vm2307_vm5, %v3879_v31, -inf }
0x162a   : > { %3890 = vmax.xlane.f32.xlu0 %v3889_v37 }
0x16b5   : > { %v3888_v38 = vpop.xlane.xlu1 %3887 }
0x16b6   : > { %v3894_v39 = vsub.f32 %v3878_v7, %v3888_v38 }
0x16b7   : > { %v3891_v40 = vpop.xlane.xlu0 %3890 }
0x16b8   : > { %v3900_v41 = vmul.f32 1.442695, %v3894_v39  ;;  %v3895_v42 = vsub.f32 %v3879_v31, %v3891_v40 }
0x16ba   : > { %7112 = vpow2.f32 %v3900_v41  ;;  %v3902_v43 = vmul.f32 1.442695, %v3895_v42 }
0x16bc   : > { %7114 = vpow2.f32 %v3902_v43 }
0x16c4   : > { %v7113_v44 = vpop.eup %7112 }
0x16c5   : > { %v3910_v45 = vsel %vm2307_vm5, %v7113_v44, 0.0 }
0x16c6   : > { %v7115_v46 = vpop.eup %7114  ;;  %3911 = vadd.xlane.f32.xlu1 %v3910_v45 }
0x16c7   : > { %v3913_v47 = vsel %vm2307_vm5, %v7115_v46, 0.0 }
0x16c8   : > { %3914 = vadd.xlane.f32.xlu0 %v3913_v47 }
0x16d7   : > { %3977 = vrot.lane.b32.xlu1 %v9640_v22, %s8342_s17 }
0x16db   : > { %4081 = vrot.lane.b32.xlu1 %v9632_v34, %s8345_s7 }
0x16de   : > { %4083 = vrot.lane.b32.xlu0 %v9640_v22, %s8345_s7 }
0x16fd   : > { %3884 = vmax.xlane.f32.xlu0 %v3883_v50 }
0x16ff   : > { %3881 = vmax.xlane.f32.xlu1 %v3880_v51 }
0x1753   : > { %v3912_v52 = vpop.xlane.xlu1 %3911 }
0x1754   : > { %7116 = vrcp.f32 %v3912_v52 }
0x1755   : > { %v3915_v53 = vpop.xlane.xlu0 %3914 }
0x1756   : > { %7118 = vrcp.f32 %v3915_v53 }
0x1757   : > { %v3978_v54 = vpop.permute.xlu1 %3977 }
0x1758   : > { %v3983_v56 = vsel %vm2806_vm7, %v3978_v54, 0 }
0x1759   : > { %6570 = vmatpush3.bf16.msra.mxu0 %v3983_v56  ;;  %v4084_v3 = vpop.permute.xlu0 %4083 }
0x175a   : > { %6581 = vmatprep.subr.bf16.mxu0 %v8340_v60  ;;  %v4089_v8 = vsel %vm2307_vm5, %v4084_v3, 0 }
0x175b   : > { %v4082_v9 = vpop.permute.xlu1 %4081 }
0x175e   : > { %v7117_v57 = vpop.eup %7116 }
0x175f   : > { %v3922_v59 = vmul.f32 %v7117_v57, %v7113_v44 }
0x1760   : > { %v7119_v58 = vpop.eup %7118 }
0x1761   : > { %v3923_v0 = vmul.f32 %v7119_v58, %v7115_v46 }
0x1763   : > { %v3925_v5 = vpack.c.bf16 %v3923_v0, %v3922_v59 }
0x1765   : > { %6572 = vmatmul.mubr.msk.bf16.vlgmr.msra.gmra.mrb[48].mxu0 %vm2307_vm5, %v3925_v5 }
0x1766   : > { %6582 = vmatpush3.bf16.xpose.msra.mxu0 %v4089_v8  ;;  %6583 = vmatprep.mubr.msk.bf16.mxu0 %vm8341_vm4, %v8340_v60 }
0x1767   : > { %6593 = vmatprep.subr.bf16.mxu0 %v8340_v60 }
0x176d   : > { %6584 = vmatmul.mubr.msk.bf16.vlgmr.msra.gmra.mrb[52].mxu0 %vm2307_vm5, %v4082_v9 }
0x176e   : > { %6595 = vmatprep.mubr.msk.bf16.mxu0 %vm8341_vm4, %v8340_v60 }
0x178a   : > { %v3885_v10 = vpop.xlane.xlu0 %3884 }
0x178b   : > { %v3893_v11 = vsub.f32 %v3877_v48, %v3885_v10 }
0x178c   : > { %v3882_v12 = vpop.xlane.xlu1 %3881 }
0x178d   : > { %v3898_v13 = vmul.f32 1.442695, %v3893_v11  ;;  %v3892_v15 = vsub.f32 %v3876_v49, %v3882_v12 }
0x178f   : > { %7120 = vpow2.f32 %v3898_v13  ;;  %v3896_v14 = vmul.f32 1.442695, %v3892_v15 }
0x1791   : > { %7122 = vpow2.f32 %v3896_v14 }
0x1799   : > { %v7121_v16 = vpop.eup %7120 }
0x179a   : > { %v3907_v32 = vsel %vm2307_vm5, %v7121_v16, 0.0 }
0x179b   : > { %v7123_v17 = vpop.eup %7122  ;;  %3908 = vadd.xlane.f32.xlu1 %v3907_v32 }
0x179c   : > { %v3904_v63 = vsel %vm2307_vm5, %v7123_v17, 0.0 }
0x179d   : > { %3905 = vadd.xlane.f32.xlu0 %v3904_v63 }
0x17ac   : > { %4031 = vrot.lane.b32.xlu1 %v9638_v19, %s8345_s7 }
0x17b0   : > { %4029 = vrot.lane.b32.xlu1 %v9634_v35, %s8345_s7  ;;  %s10110_s7 = smov 80  }
0x17b3   : > { %3927 = vrot.lane.b32.xlu0 %v9638_v19, %s8342_s17 }
0x1828   : > { %v3909_v2 = vpop.xlane.xlu1 %3908 }
0x1829   : > { %7124 = vrcp.f32 %v3909_v2 }
0x182a   : > { %v3906_v4 = vpop.xlane.xlu0 %3905 }
0x182b   : > { %7126 = vrcp.f32 %v3906_v4 }
0x182c   : > { %v4032_v26 = vpop.permute.xlu1 %4031 }
0x182d   : > { %v4037_v28 = vsel %vm2307_vm5, %v4032_v26, 0 }
0x182e   : > { %v3928_v18 = vpop.permute.xlu0 %3927 }
0x182f   : > { %v3933_v20 = vsel %vm2806_vm7, %v3928_v18, 0 }
0x1830   : > { %6564 = vmatpush3.bf16.msra.mxu1 %v3933_v20  ;;  %v4030_v36 = vpop.permute.xlu1 %4029 }
0x1831   : > { %6575 = vmatprep.subr.bf16.mxu1 %v8340_v60 }
0x1833   : > { %v7125_v21 = vpop.eup %7124 }
0x1834   : > { %v3921_v24 = vmul.f32 %v7125_v21, %v7121_v16 }
0x1835   : > { %v7127_v23 = vpop.eup %7126 }
0x1836   : > { %v3920_v25 = vmul.f32 %v7127_v23, %v7123_v17 }
0x1838   : > { %v9688_v27 = vpop.f32.mrb[48].mxu0  ;;  %v3924_v6 = vpack.c.bf16 %v3921_v24, %v3920_v25 }
0x1839   : > { %v6573_v7 = vpop.f32.mrb[49].mxu0 }
0x183a   : > { %6566 = vmatmul.mubr.msk.bf16.vlgmr.msra.gmra.mrb[40].mxu1 %vm2307_vm5, %v3924_v6  ;;  %v9692_v29 = vpop.f32.mrb[50].mxu0 }
0x183b   : > { %v4027_v30 = vpack.c.bf16 %v9692_v29, %v9688_v27  ;;  %6576 = vmatpush3.bf16.xpose.msra.mxu1 %v4037_v28  ;;  %v6574_v31 = vpop.f32.mrb[51].mxu0  ;;  %6577 = vmatprep.mubr.msk.bf16.mxu1 %vm8341_vm4, %v8340_v60 }
0x183c   : > { %6587 = vmatprep.subr.bf16.mxu1 %v8340_v60 }
0x1840   : > { %v4125_v33 = vpop.f32.mrb[52].mxu0 }
0x1841   : > { %v4134_v37 = vmul.f32 0.35355338, %v4125_v33  ;;  %v6585_v38 = vpop.f32.mrb[53].mxu0 }
0x1842   : > { %6578 = vmatmul.mubr.msk.bf16.vlgmr.msra.gmra.mrb[44].mxu1 %vm2307_vm5, %v4030_v36  ;;  %v4128_v39 = vpop.f32.mrb[54].mxu0 }
0x1843   : > { %v4135_v40 = vmul.f32 0.35355338, %v4128_v39  ;;  %v6586_v41 = vpop.f32.mrb[55].mxu0  ;;  %v4142_v42 = vsel %vm2307_vm5, %v4134_v37, -inf  ;;  %6589 = vmatprep.mubr.msk.bf16.mxu1 %vm8341_vm4, %v8340_v60 }
0x1844   : > { %4143 = vmax.xlane.f32.xlu0 %v4142_v42 }
0x1845   : > { %v4145_v43 = vsel %vm2307_vm5, %v4135_v40, -inf }
0x1846   : > { %4146 = vmax.xlane.f32.xlu1 %v4145_v43 }
0x1857   : > { %4231 = vrot.lane.b32.xlu1 %v9640_v22, %s8343_s22 }
0x185b   : > { %4398 = vrot.lane.b32.xlu1 %v9634_v35, %s8347_s4 }
0x185f   : > { %4451 = vrot.lane.b32.xlu1 %v9640_v22, %s8347_s4 }
0x18d1   : > { %v4144_v44 = vpop.xlane.xlu0 %4143 }
0x18d2   : > { %v4150_v45 = vsub.f32 %v4134_v37, %v4144_v44 }
0x18d3   : > { %v4147_v46 = vpop.xlane.xlu1 %4146 }
0x18d4   : > { %v4156_v47 = vmul.f32 1.442695, %v4150_v45  ;;  %v4151_v48 = vsub.f32 %v4135_v40, %v4147_v46 }
0x18d6   : > { %7128 = vpow2.f32 %v4156_v47  ;;  %v4158_v49 = vmul.f32 1.442695, %v4151_v48 }
0x18d7   : > { %v4232_v50 = vpop.permute.xlu1 %4231 }
0x18d8   : > { %7130 = vpow2.f32 %v4158_v49  ;;  %v4237_v51 = vsel %vm2806_vm7, %v4232_v50, 0 }
0x18d9   : > { %6594 = vmatpush3.bf16.msra.mxu0 %v4237_v51 }
0x18da   : > { %6611 = vmatprep.subr.bf16.mxu0 %v8340_v60 }
0x18db   : > { %v4399_v20 = vpop.permute.xlu1 %4398 }
0x18df   : > { %v4452_v23 = vpop.permute.xlu1 %4451 }
0x18e0   : > { %v7129_v52 = vpop.eup %7128  ;;  %v4457_v24 = vsel %vm2307_vm5, %v4452_v23, 0 }
0x18e1   : > { %v4166_v53 = vsel %vm2307_vm5, %v7129_v52, 0.0 }
0x18e2   : > { %v7131_v54 = vpop.eup %7130  ;;  %4167 = vadd.xlane.f32.xlu0 %v4166_v53 }
0x18e3   : > { %v4169_v56 = vsel %vm2307_vm5, %v7131_v54, 0.0 }
0x18e6   : > { %4170 = vadd.xlane.f32.xlu0 %v4169_v56 }
0x18fc   : > { %4400 = vrot.lane.b32.xlu0 %v9638_v19, %s8347_s4 }
0x1900   : > { %4449 = vrot.lane.b32.xlu0 %v9632_v34, %s8347_s4  ;;  %s10111_s4 = scalar_lea.vmem [#allocation34], %s9305_s14 }
0x190d   : > { %v9718_v57 = vpop.f32.mrb[40].mxu1 }
0x190e   : > { %v6567_v58 = vpop.f32.mrb[41].mxu1 }
0x190f   : > { %v9720_v59 = vpop.f32.mrb[42].mxu1 }
0x1910   : > { %v4026_v0 = vpack.c.bf16 %v9720_v59, %v9718_v57  ;;  %v6568_v3 = vpop.f32.mrb[43].mxu1 }
0x1915   : > { %v4073_v5 = vpop.f32.mrb[44].mxu1 }
0x1916   : > { %v4132_v8 = vmul.f32 0.35355338, %v4073_v5  ;;  %v6579_v9 = vpop.f32.mrb[45].mxu1 }
0x1917   : > { %v4076_v10 = vpop.f32.mrb[46].mxu1 }
0x1918   : > { %v6580_v11 = vpop.f32.mrb[47].mxu1  ;;  %v4136_v12 = vsel %vm2307_vm5, %v4132_v8, -inf  ;;  %v4133_v13 = vmul.f32 0.35355338, %v4076_v10 }
0x1919   : > { %4137 = vmax.xlane.f32.xlu1 %v4136_v12 }
0x191a   : > { %v4139_v15 = vsel %vm2307_vm5, %v4133_v13, -inf }
0x191f   : > { %4140 = vmax.xlane.f32.xlu0 %v4139_v15 }
0x196f   : > { %v4168_v14 = vpop.xlane.xlu0 %4167 }
0x1970   : > { %7132 = vrcp.f32 %v4168_v14 }
0x1973   : > { %v4171_v16 = vpop.xlane.xlu0 %4170 }
0x1974   : > { %7134 = vrcp.f32 %v4171_v16 }
0x1977   : > { %v4401_v4 = vpop.permute.xlu0 %4400 }
0x1978   : > { %v4406_v21 = vsel %vm2307_vm5, %v4401_v4, 0  ;;  %v3774_v4 = vld [vmem:[%s9330_s19] sm:$0xf] }
0x197a   : > { %v7133_v32 = vpop.eup %7132 }
0x197b   : > { %v4178_v63 = vmul.f32 %v7133_v32, %v7129_v52  ;;  %v4450_v25 = vpop.permute.xlu0 %4449 }
0x197e   : > { %v7135_v17 = vpop.eup %7134 }
0x197f   : > { %v4179_v2 = vmul.f32 %v7135_v17, %v7131_v54 }
0x1981   : > { %v4181_v18 = vpack.c.bf16 %v4179_v2, %v4178_v63  ;;  %v3775_v63 = vld [vmem:[%s9330_s19 + $0x4] sm:$0xf] }
0x1982   : > { %v4289_v2 = vsel %vm2806_vm7, %v3775_v63, 0 }
0x1983   : > { %6596 = vmatmul.mubr.msk.bf16.vlgmr.msra.gmra.mrb[56].mxu0 %vm2307_vm5, %v4181_v18 }
0x1984   : > { %6612 = vmatpush3.bf16.xpose.msra.mxu0 %v4406_v21  ;;  %6613 = vmatprep.mubr.msk.bf16.mxu0 %vm8341_vm4, %v8340_v60 }
0x1985   : > { %6617 = vmatprep.subr.bf16.mxu0 %v8340_v60 }
0x198b   : > { %6614 = vmatmul.mubr.msk.bf16.vlgmr.msra.gmra.mrb[60].mxu0 %vm2307_vm5, %v4399_v20 }
0x198c   : > { %6618 = vmatpush3.bf16.xpose.msra.mxu0 %v4457_v24  ;;  %6619 = vmatprep.mubr.msk.bf16.mxu0 %vm8341_vm4, %v8340_v60 }
0x198d   : > { %6629 = vmatprep.subr.bf16.mxu0 %v8340_v60 }
0x1993   : > { %6620 = vmatmul.mubr.msk.bf16.vlgmr.msra.gmra.mrb[64].mxu0 %vm2307_vm5, %v4450_v25 }
0x1994   : > { %6631 = vmatprep.mubr.msk.bf16.mxu0 %vm8341_vm4, %v8340_v60 }
0x19a6   : > { %v4138_v26 = vpop.xlane.xlu1 %4137 }
0x19a7   : > { %v4148_v6 = vsub.f32 %v4132_v8, %v4138_v26 }
0x19a9   : > { %v4152_v7 = vmul.f32 1.442695, %v4148_v6 }
0x19ab   : > { %7136 = vpow2.f32 %v4152_v7 }
0x19ac   : > { %v4141_v28 = vpop.xlane.xlu0 %4140 }
0x19ad   : > { %v4149_v31 = vsub.f32 %v4133_v13, %v4141_v28 }
0x19af   : > { %v4154_v33 = vmul.f32 1.442695, %v4149_v31 }
0x19b1   : > { %7138 = vpow2.f32 %v4154_v33 }
0x19b5   : > { %v7137_v36 = vpop.eup %7136 }
0x19b6   : > { %v4160_v37 = vsel %vm2307_vm5, %v7137_v36, 0.0 }
0x19b7   : > { %4161 = vadd.xlane.f32.xlu0 %v4160_v37 }
0x19bb   : > { %v7139_v38 = vpop.eup %7138 }
0x19bc   : > { %v4163_v39 = vsel %vm2307_vm5, %v7139_v38, 0.0 }
0x19bd   : > { %4164 = vadd.xlane.f32.xlu1 %v4163_v39 }
0x19cd   : > { %4182 = vrot.lane.b32.xlu0 %v9638_v19, %s8343_s22 }
0x1a44   : > { %v4162_v40 = vpop.xlane.xlu0 %4161 }
0x1a45   : > { %7140 = vrcp.f32 %v4162_v40 }
0x1a48   : > { %v4183_v41 = vpop.permute.xlu0 %4182 }
0x1a49   : > { %v4188_v42 = vsel %vm2806_vm7, %v4183_v41, 0 }
0x1a4a   : > { %v4165_v43 = vpop.xlane.xlu1 %4164  ;;  %6588 = vmatpush3.bf16.msra.mxu1 %v4188_v42 }
0x1a4b   : > { %7142 = vrcp.f32 %v4165_v43  ;;  %6727 = vmatprep.subr.msk.bf16.mxu1 %vm2806_vm7, %v3775_v63 }
0x1a4f   : > { %v7141_v44 = vpop.eup %7140 }
0x1a50   : > { %v4176_v46 = vmul.f32 %v7141_v44, %v7137_v36 }
0x1a55   : > { %v7143_v45 = vpop.eup %7142 }
0x1a56   : > { %v4177_v47 = vmul.f32 %v7143_v45, %v7139_v38  ;;  %v9744_v48 = vpop.f32.mrb[56].mxu0 }
0x1a57   : > { %v6597_v49 = vpop.f32.mrb[57].mxu0 }
0x1a58   : > { %v9746_v50 = vpop.f32.mrb[58].mxu0  ;;  %v4180_v51 = vpack.c.bf16 %v4177_v47, %v4176_v46  ;;  %v4347_v47 = vsel %vm2806_vm7, %v3774_v4, 0 }
0x1a59   : > { %v4281_v52 = vpack.c.bf16 %v9746_v50, %v9744_v48  ;;  %v6598_v53 = vpop.f32.mrb[59].mxu0 }
0x1a5a   : > { %6590 = vmatmul.mubr.msk.bf16.vlgmr.msra.gmra.mrb[48].mxu1 %vm2307_vm5, %v4180_v51 }
0x1a5b   : > { %6600 = vmatpush3.bf16.msra.mxu1 %v4289_v2 }
0x1a5c   : > { %6728 = vmatprep.subr.msk.bf16.mxu1 %vm2806_vm7, %v3774_v4 }
0x1a5e   : > { %v4442_v54 = vpop.f32.mrb[60].mxu0 }
0x1a5f   : > { %v4500_v56 = vmul.f32 0.35355338, %v4442_v54  ;;  %v6615_v58 = vpop.f32.mrb[61].mxu0 }
0x1a60   : > { %v4445_v3 = vpop.f32.mrb[62].mxu0 }
0x1a61   : > { %v4501_v5 = vmul.f32 0.35355338, %v4445_v3  ;;  %v6616_v8 = vpop.f32.mrb[63].mxu0  ;;  %v4504_v9 = vsel %vm2307_vm5, %v4500_v56, -inf }
0x1a62   : > { %4505 = vmax.xlane.f32.xlu1 %v4504_v9 }
0x1a63   : > { %v4507_v10 = vsel %vm2307_vm5, %v4501_v5, -inf }
0x1a66   : > { %v4493_v11 = vpop.f32.mrb[64].mxu0  ;;  %4508 = vmax.xlane.f32.xlu1 %v4507_v10 }
0x1a67   : > { %v4502_v12 = vmul.f32 0.35355338, %v4493_v11  ;;  %v6621_v13 = vpop.f32.mrb[65].mxu0 }
0x1a68   : > { %v4496_v15 = vpop.f32.mrb[66].mxu0 }
0x1a69   : > { %v4503_v14 = vmul.f32 0.35355338, %v4496_v15  ;;  %v6622_v16 = vpop.f32.mrb[67].mxu0  ;;  %v4510_v32 = vsel %vm2307_vm5, %v4502_v12, -inf }
0x1a6a   : > { %4511 = vmax.xlane.f32.xlu1 %v4510_v32 }
0x1a6b   : > { %v4513_v17 = vsel %vm2307_vm5, %v4503_v14, -inf }
0x1a6e   : > { %4514 = vmax.xlane.f32.xlu1 %v4513_v17 }
0x1aef   : > { %v4506_v18 = vpop.xlane.xlu1 %4505 }
0x1af0   : > { %v4516_v20 = vsub.f32 %v4500_v56, %v4506_v18 }
0x1af2   : > { %v4520_v21 = vmul.f32 1.442695, %v4516_v20 }
0x1af3   : > { %v4509_v23 = vpop.xlane.xlu1 %4508 }
0x1af4   : > { %7144 = vpow2.f32 %v4520_v21  ;;  %v4517_v24 = vsub.f32 %v4501_v5, %v4509_v23 }
0x1af6   : > { %v4522_v25 = vmul.f32 1.442695, %v4517_v24 }
0x1af7   : > { %v4512_v26 = vpop.xlane.xlu1 %4511 }
0x1af8   : > { %7146 = vpow2.f32 %v4522_v25  ;;  %v4518_v6 = vsub.f32 %v4502_v12, %v4512_v26  ;;  %v3776_v12 = vld [vmem:[%s9330_s19 + $0x8] sm:$0xf] }
0x1af9   : > { %v4657_v13 = vsel %vm2806_vm7, %v3776_v12, 0 }
0x1afa   : > { %v4524_v7 = vmul.f32 1.442695, %v4518_v6 }
0x1afb   : > { %v4515_v39 = vpop.xlane.xlu1 %4514 }
0x1afc   : > { %7148 = vpow2.f32 %v4524_v7  ;;  %v4519_v40 = vsub.f32 %v4503_v14, %v4515_v39 }
0x1afe   : > { %v7145_v28 = vpop.eup %7144  ;;  %v4526_v41 = vmul.f32 1.442695, %v4519_v40 }
0x1aff   : > { %v4528_v31 = vsel %vm2307_vm5, %v7145_v28, 0.0 }
0x1b00   : > { %4529 = vadd.xlane.f32.xlu1 %v4528_v31  ;;  %7150 = vpow2.f32 %v4526_v41 }
0x1b02   : > { %v7147_v33 = vpop.eup %7146 }
0x1b03   : > { %v4531_v36 = vsel %vm2307_vm5, %v7147_v33, 0.0 }
0x1b04   : > { %4532 = vadd.xlane.f32.xlu1 %v4531_v36 }
0x1b06   : > { %v7149_v37 = vpop.eup %7148 }
0x1b07   : > { %v4534_v38 = vsel %vm2307_vm5, %v7149_v37, 0.0 }
0x1b08   : > { %4535 = vadd.xlane.f32.xlu0 %v4534_v38 }
0x1b0a   : > { %v7151_v49 = vpop.eup %7150 }
0x1b0b   : > { %v4537_v51 = vsel %vm2307_vm5, %v7151_v49, 0.0 }
0x1b15   : > { %4550 = vrot.lane.b32.xlu1 %v9638_v19, %s10110_s7 }
0x1b1e   : > { %4765 = vrot.lane.b32.xlu0 %v9640_v22, %s8351_s8 }
0x1b2d   : > { %v4224_v42 = vpop.f32.mrb[48].mxu1 }
0x1b2e   : > { %v6591_v43 = vpop.f32.mrb[49].mxu1 }
0x1b2f   : > { %v4227_v44 = vpop.f32.mrb[50].mxu1 }
0x1b30   : > { %v4280_v45 = vpack.c.bf16 %v4227_v44, %v4224_v42  ;;  %v6592_v46 = vpop.f32.mrb[51].mxu1 }
0x1b32   : > { %6601 = vmatprep.mubr.msk.bf16.mxu1 %vm2307_vm5, %v4280_v45 }
0x1b33   : > { %6602 = vmatmul.mubr.msk.bf16.vlgmr.msra.gmra.mrb[52].mxu1 %vm2307_vm5, %v4281_v52 }
0x1b34   : > { %6607 = vmatprep.mubr.msk.bf16.mxu1 %vm2307_vm5, %v4026_v0  ;;  %6606 = vmatpush3.bf16.msra.mxu1 %v4347_v47 }
0x1b35   : > { %6623 = vmatprep.subr.bf16.mxu1 %v8340_v60 }
0x1b39   : > { %4538 = vadd.xlane.f32.xlu1 %v4537_v51 }
0x1b3f   : > { %6608 = vmatmul.mubr.msk.bf16.vlgmr.msra.gmra.mrb[52].mxu1 %vm2307_vm5, %v4027_v30 }
0x1b40   : > { %6625 = vmatprep.mubr.msk.bf16.mxu1 %vm8341_vm4, %v8340_v60 }
0x1b4a   : > { %4599 = vrot.lane.b32.xlu1 %v9640_v22, %s10110_s7 }
0x1b4e   : > { %4714 = vrot.lane.b32.xlu1 %v9638_v19, %s8351_s8 }
0x1b52   : > { %4712 = vrot.lane.b32.xlu1 %v9634_v35, %s8351_s8 }
0x1b56   : > { %4763 = vrot.lane.b32.xlu1 %v9632_v34, %s8351_s8 }
0x1b8d   : > { %v4530_v57 = vpop.xlane.xlu1 %4529 }
0x1b8e   : > { %7152 = vrcp.f32 %v4530_v57 }
0x1b91   : > { %v4533_v27 = vpop.xlane.xlu1 %4532 }
0x1b92   : > { %7154 = vrcp.f32 %v4533_v27 }
0x1b95   : > { %v4551_v29 = vpop.permute.xlu1 %4550  ;;  %v4536_v53 = vpop.xlane.xlu0 %4535 }
0x1b96   : > { %v4556_v30 = vsel %vm2806_vm7, %v4551_v29, 0  ;;  %7156 = vrcp.f32 %v4536_v53 }
0x1b97   : > { %6624 = vmatpush3.bf16.msra.mxu1 %v4556_v30 }
0x1b98   : > { %v7153_v59 = vpop.eup %7152  ;;  %6729 = vmatprep.subr.msk.bf16.mxu1 %vm2806_vm7, %v3776_v12 }
0x1b99   : > { %v4544_v48 = vmul.f32 %v7153_v59, %v7145_v28  ;;  %v4766_v4 = vpop.permute.xlu0 %4765 }
0x1b9a   : > { %v4771_v23 = vsel %vm2307_vm5, %v4766_v4, 0  ;;  %v3777_v4 = vld [vmem:[%s9330_s19 + $0xc] sm:$0xf] }
0x1b9c   : > { %v7155_v0 = vpop.eup %7154 }
0x1b9d   : > { %v4545_v50 = vmul.f32 %v7155_v0, %v7147_v33 }
0x1b9f   : > { %v4548_v52 = vpack.c.bf16 %v4545_v50, %v4544_v48 }
0x1ba0   : > { %v7157_v56 = vpop.eup %7156 }
0x1ba1   : > { %6626 = vmatmul.mubr.msk.bf16.vlgmr.msra.gmra.mrb[56].mxu1 %vm2307_vm5, %v4548_v52  ;;  %v4546_v3 = vmul.f32 %v7157_v56, %v7149_v37 }
0x1ba2   : > { %6636 = vmatpush3.bf16.msra.mxu1 %v4657_v13 }
0x1ba3   : > { %6647 = vmatprep.subr.bf16.mxu1 %v8340_v60 }
0x1bc6   : > { %v4539_v35 = vpop.xlane.xlu1 %4538 }
0x1bc7   : > { %7158 = vrcp.f32 %v4539_v35 }
0x1bca   : > { %v4600_v34 = vpop.permute.xlu1 %4599 }
0x1bcb   : > { %v4605_v54 = vsel %vm2806_vm7, %v4600_v34, 0 }
0x1bcc   : > { %6630 = vmatpush3.bf16.msra.mxu0 %v4605_v54 }
0x1bcd   : > { %6641 = vmatprep.subr.bf16.mxu0 %v8340_v60 }
0x1bce   : > { %v4715_v8 = vpop.permute.xlu1 %4714 }
0x1bcf   : > { %v4720_v10 = vsel %vm2307_vm5, %v4715_v8, 0 }
0x1bd1   : > { %v7159_v58 = vpop.eup %7158 }
0x1bd2   : > { %v4547_v5 = vmul.f32 %v7159_v58, %v7151_v49  ;;  %v4713_v11 = vpop.permute.xlu1 %4712 }
0x1bd4   : > { %v4549_v9 = vpack.c.bf16 %v4547_v5, %v4546_v3 }
0x1bd6   : > { %6632 = vmatmul.mubr.msk.bf16.vlgmr.msra.gmra.mrb[68].mxu0 %vm2307_vm5, %v4549_v9  ;;  %v4764_v33 = vpop.permute.xlu1 %4763 }
0x1bd7   : > { %6642 = vmatpush3.bf16.xpose.msra.mxu0 %v4720_v10  ;;  %6643 = vmatprep.mubr.msk.bf16.mxu0 %vm8341_vm4, %v8340_v60 }
0x1bd8   : > { %6653 = vmatprep.subr.bf16.mxu0 %v8340_v60 }
0x1bde   : > { %6644 = vmatmul.mubr.msk.bf16.vlgmr.msra.gmra.mrb[72].mxu0 %vm2307_vm5, %v4713_v11 }
0x1bdf   : > { %6655 = vmatprep.mubr.msk.bf16.mxu0 %vm8341_vm4, %v8340_v60 }
0x1c74   : > { %v4592_v15 = vpop.f32.mrb[56].mxu1 }
0x1c75   : > { %v6627_v14 = vpop.f32.mrb[57].mxu1 }
0x1c76   : > { %v4595_v16 = vpop.f32.mrb[58].mxu1 }
0x1c77   : > { %v4648_v32 = vpack.c.bf16 %v4595_v16, %v4592_v15  ;;  %v6628_v17 = vpop.f32.mrb[59].mxu1 }
0x1c79   : > { %6637 = vmatprep.mubr.msk.bf16.mxu1 %vm2307_vm5, %v4648_v32 }
0x1ca9   : > { %v4641_v63 = vpop.f32.mrb[68].mxu0 }
0x1caa   : > { %v6633_v2 = vpop.f32.mrb[69].mxu0 }
0x1cab   : > { %v4644_v18 = vpop.f32.mrb[70].mxu0 }
0x1cac   : > { %v4649_v20 = vpack.c.bf16 %v4644_v18, %v4641_v63  ;;  %v6634_v21 = vpop.f32.mrb[71].mxu0  ;;  %v4971_v18 = vsel %vm2806_vm7, %v3777_v4, 0 }
0x1cae   : > { %6638 = vmatmul.mubr.msk.bf16.vlgmr.msra.gmra.mrb[52].mxu1 %vm2307_vm5, %v4649_v20 }
0x1caf   : > { %6648 = vmatpush3.bf16.xpose.msra.mxu1 %v4771_v23  ;;  %6649 = vmatprep.mubr.msk.bf16.mxu1 %vm8341_vm4, %v8340_v60 }
0x1cb0   : > { %6659 = vmatprep.subr.bf16.mxu1 %v8340_v60 }
0x1cb1   : > { %v4756_v24 = vpop.f32.mrb[72].mxu0 }
0x1cb2   : > { %v4814_v25 = vmul.f32 0.35355338, %v4756_v24  ;;  %v6645_v26 = vpop.f32.mrb[73].mxu0 }
0x1cb3   : > { %v4759_v6 = vpop.f32.mrb[74].mxu0 }
0x1cb4   : > { %v4815_v7 = vmul.f32 0.35355338, %v4759_v6  ;;  %v6646_v28 = vpop.f32.mrb[75].mxu0  ;;  %v4818_v31 = vsel %vm2307_vm5, %v4814_v25, -inf }
0x1cb5   : > { %4819 = vmax.xlane.f32.xlu1 %v4818_v31 }
0x1cb6   : > { %6650 = vmatmul.mubr.msk.bf16.vlgmr.msra.gmra.mrb[60].mxu1 %vm2307_vm5, %v4764_v33  ;;  %v4821_v36 = vsel %vm2307_vm5, %v4815_v7, -inf }
0x1cb7   : > { %4822 = vmax.xlane.f32.xlu0 %v4821_v36  ;;  %6661 = vmatprep.mubr.msk.bf16.mxu1 %vm8341_vm4, %v8340_v60  ;;  %v6220_v36 = vld [vmem:[%s10111_s4] ss:$0 sm:$0xff] }
0x1d42   : > { %v4820_v37 = vpop.xlane.xlu1 %4819 }
0x1d43   : > { %v4830_v38 = vsub.f32 %v4814_v25, %v4820_v37 }
0x1d44   : > { %v4823_v42 = vpop.xlane.xlu0 %4822 }
0x1d45   : > { %v4834_v39 = vmul.f32 1.442695, %v4830_v38  ;;  %v4831_v43 = vsub.f32 %v4815_v7, %v4823_v42 }
0x1d47   : > { %7160 = vpow2.f32 %v4834_v39  ;;  %v4836_v44 = vmul.f32 1.442695, %v4831_v43 }
0x1d49   : > { %7162 = vpow2.f32 %v4836_v44 }
0x1d51   : > { %v7161_v40 = vpop.eup %7160 }
0x1d52   : > { %v4842_v41 = vsel %vm2307_vm5, %v7161_v40, 0.0 }
0x1d53   : > { %4843 = vadd.xlane.f32.xlu0 %v4842_v41  ;;  %v7163_v29 = vpop.eup %7162 }
0x1d54   : > { %v4845_v30 = vsel %vm2307_vm5, %v7163_v29, 0.0 }
0x1d89   : > { %v4807_v45 = vpop.f32.mrb[60].mxu1 }
0x1d8a   : > { %v4816_v46 = vmul.f32 0.35355338, %v4807_v45  ;;  %v6651_v47 = vpop.f32.mrb[61].mxu1 }
0x1d8b   : > { %v4810_v49 = vpop.f32.mrb[62].mxu1 }
0x1d8c   : > { %v4817_v51 = vmul.f32 0.35355338, %v4810_v49  ;;  %v6652_v57 = vpop.f32.mrb[63].mxu1  ;;  %v4824_v60 = vsel %vm2307_vm5, %v4816_v46, -inf }
0x1d8d   : > { %4825 = vmax.xlane.f32.xlu1 %v4824_v60 }
0x1d8e   : > { %v4827_v27 = vsel %vm2307_vm5, %v4817_v51, -inf }
0x1d91   : > { %4828 = vmax.xlane.f32.xlu1 %v4827_v27 }
0x1d95   : > { %4846 = vadd.xlane.f32.xlu1 %v4845_v30 }
0x1de0   : > { %v4844_v3 = vpop.xlane.xlu0 %4843 }
0x1e1a   : > { %v4826_v59 = vpop.xlane.xlu1 %4825 }
0x1e1b   : > { %v4832_v0 = vsub.f32 %v4816_v46, %v4826_v59 }
0x1e1d   : > { %v4838_v48 = vmul.f32 1.442695, %v4832_v0 }
0x1e1e   : > { %v4829_v50 = vpop.xlane.xlu1 %4828 }
0x1e1f   : > { %7164 = vpow2.f32 %v4838_v48  ;;  %v4833_v52 = vsub.f32 %v4817_v51, %v4829_v50 }
0x1e21   : > { %v4840_v53 = vmul.f32 1.442695, %v4833_v52 }
0x1e22   : > { %v4847_v58 = vpop.xlane.xlu1 %4846 }
0x1e23   : > { %7166 = vpow2.f32 %v4840_v53 }
0x1e24   : > { %7168 = vrcp.f32 %v4847_v58 }
0x1e25   : > { %7170 = vrcp.f32 %v4844_v3 }
0x1e29   : > { %v7165_v35 = vpop.eup %7164 }
0x1e2a   : > { %v4848_v34 = vsel %vm2307_vm5, %v7165_v35, 0.0 }
0x1e2b   : > { %4849 = vadd.xlane.f32.xlu0 %v4848_v34 }
0x1e2d   : > { %v7167_v54 = vpop.eup %7166 }
0x1e2e   : > { %v4851_v56 = vsel %vm2307_vm5, %v7167_v54, 0.0  ;;  %v7169_v5 = vpop.eup %7168 }
0x1e2f   : > { %4852 = vadd.xlane.f32.xlu1 %v4851_v56  ;;  %v7171_v9 = vpop.eup %7170  ;;  %v4859_v10 = vmul.f32 %v7169_v5, %v7163_v29 }
0x1e30   : > { %v4858_v13 = vmul.f32 %v7171_v9, %v7161_v40 }
0x1e40   : > { %4913 = vrot.lane.b32.xlu1 %v9640_v22, %s8350_s6  ;;  %v4862_v22 = vpack.c.bf16 %v4859_v10, %v4858_v13 }
0x1e41   : > { %4864 = vrot.lane.b32.xlu0 %v9638_v19, %s8350_s6  ;;  %s10112_s6 = scalar_lea.vmem [#allocation37], %s9313_s12  ;;  %s10114_s12 = scalar_lea.vmem [#allocation35], %s9305_s14 }
0x1e42   : > { %s10113_s16 = smov %s10112_s6 }
0x1e43   : > { %v7027_v9 = vld [vmem:[%s10113_s16 + $0x8] sm:$0xff]  }
0x1eb8   : > { %v4850_v8 = vpop.xlane.xlu0 %4849 }
0x1eb9   : > { %7172 = vrcp.f32 %v4850_v8  ;;  %v7026_v8 = vld [vmem:[%s10112_s6] sm:$0xff]  }
0x1ebc   : > { %v4865_v11 = vpop.permute.xlu0 %4864  ;;  %v4853_v12 = vpop.xlane.xlu1 %4852 }
0x1ebd   : > { %v4870_v15 = vsel %vm2806_vm7, %v4865_v11, 0  ;;  %7174 = vrcp.f32 %v4853_v12 }
0x1ebe   : > { %6654 = vmatpush3.bf16.msra.mxu0 %v4870_v15 }
0x1ebf   : > { %6671 = vmatprep.subr.bf16.mxu0 %v7026_v8 }
0x1ec0   : > { %v4914_v14 = vpop.permute.xlu1 %4913 }
0x1ec1   : > { %v4919_v19 = vsel %vm2806_vm7, %v4914_v14, 0  ;;  %6656 = vmatmul.mubr.msk.bf16.vlgmr.msra.gmra.mrb[76].mxu0 %vm2307_vm5, %v4862_v22 }
0x1ec2   : > { %6660 = vmatpush3.bf16.msra.mxu1 %v4919_v19  ;;  %6672 = vmatpush3.bf16.msra.mxu0 %v7026_v8 }
0x1ec3   : > { %v7173_v16 = vpop.eup %7172  ;;  %6730 = vmatprep.subr.msk.bf16.mxu1 %vm2806_vm7, %v3777_v4  ;;  %6673 = vmatprep.subr.bf16.mxu0 %v7027_v9  ;;  %v6221_v4 = vld [vmem:[%s10114_s12] ss:$0 sm:$0xff] }
0x1ec4   : > { %v4860_v17 = vmul.f32 %v7173_v16, %v7165_v35 }
0x1ec6   : > { %6674 = vmatpush3.bf16.msra.mxu0 %v7027_v9 }
0x1ec7   : > { %v7175_v32 = vpop.eup %7174 }
0x1ec8   : > { %v4861_v63 = vmul.f32 %v7175_v32, %v7167_v54 }
0x1eca   : > { %v4863_v2 = vpack.c.bf16 %v4861_v63, %v4860_v17 }
0x1ecc   : > { %6662 = vmatmul.mubr.msk.bf16.vlgmr.msra.gmra.mrb[64].mxu1 %vm2307_vm5, %v4863_v2 }
0x1ecd   : > { %6666 = vmatpush3.bf16.msra.mxu1 %v4971_v18 }
0x1f94   : > { %v4906_v20 = vpop.f32.mrb[76].mxu0 }
0x1f95   : > { %v6657_v21 = vpop.f32.mrb[77].mxu0 }
0x1f96   : > { %v4909_v23 = vpop.f32.mrb[78].mxu0 }
0x1f97   : > { %v4962_v24 = vpack.c.bf16 %v4909_v23, %v4906_v20  ;;  %v6658_v25 = vpop.f32.mrb[79].mxu0 }
0x1f99   : > { %6667 = vmatprep.mubr.msk.bf16.mxu1 %vm2307_vm5, %v4962_v24  ;;  %v6222_v24 = vld [vmem:[%s10115_s15] ss:$0 sm:$0xff] }
0x1f9f   : > { %v4955_v26 = vpop.f32.mrb[64].mxu1 }
0x1fa0   : > { %v6663_v6 = vpop.f32.mrb[65].mxu1 }
0x1fa1   : > { %v4958_v7 = vpop.f32.mrb[66].mxu1 }
0x1fa2   : > { %v4963_v28 = vpack.c.bf16 %v4958_v7, %v4955_v26  ;;  %v6664_v31 = vpop.f32.mrb[67].mxu1 }
0x1fa4   : > { %6668 = vmatmul.mubr.msk.bf16.vlgmr.msra.gmra.mrb[52].mxu1 %vm2307_vm5, %v4963_v28 }
0x2077   : > { %v6669_v33 = vpop.f32.mrb[52].mxu1 }
0x2078   : > { %v5007_v37 = vpop.f32.mrb[53].mxu1  ;;  %v5028_v42 = vadd.f32 %v6669_v33, %v9586_v61 }
0x2079   : > { %v5026_v38 = vadd.f32 %v5007_v37, %v9584_v55  ;;  %v6670_v39 = vpop.f32.mrb[54].mxu1 }
0x207a   : > { %v5029_v40 = vadd.f32 %v6670_v39, %v9592_v1  ;;  %v5010_v41 = vpop.f32.mrb[55].mxu1  ;;  %v9853_v49 = vadd.f32 %v6220_v36, %v5028_v42  ;;  %v7028_v42 = vld [vmem:[%s9337_s5] sm:$0xff]  }
0x207b   : > { %v9844_v43 = vadd.f32 %v6220_v36, %v5026_v38  ;;  %v5027_v44 = vadd.f32 %v5010_v41, %v9588_v62  ;;  %6679 = vmatprep.subr.bf16.mxu0 %v7028_v42 }
0x207c   : > { %v9847_v45 = vadd.f32 %v6220_v36, %v5029_v40  ;;  %v5049_v62 = vsel %vm2144_vm3, %v9853_v49, 0.0 }
0x207d   : > { %v9849_v46 = vadd.f32 %v6220_v36, %v5027_v44  ;;  %v5043_v47 = vsel %vm2144_vm3, %v9844_v43, 0.0  ;;  %v7029_v44 = vld [vmem:[%s9337_s5 + $0x8] sm:$0xff]  }
0x207e   : > { %5044 = vadd.xlane.f32.xlu1 %v5043_v47  ;;  %v5052_v61 = vsel %vm2144_vm3, %v9847_v45, 0.0  ;;  %v7030_v47 = vld [vmem:[%s9337_s5 + $0x10] sm:$0xff]  }
0x207f   : > { %v5046_v55 = vsel %vm2144_vm3, %v9849_v46, 0.0 }
0x2080   : > { %5047 = vadd.xlane.f32.xlu0 %v5046_v55  ;;  %v7031_v55 = vld [vmem:[%s9337_s5 + $0x18] sm:$0xff]   ;;  %s10117_s5 = scalar_lea.vmem [#allocation40], %s9305_s14 }
0x2082   : > { %5053 = vadd.xlane.f32.xlu1 %v5052_v61  ;;  %v6223_v61 = vld [vmem:[%s10116_s23] ss:$0 sm:$0xff] }
0x2084   : > { %5050 = vadd.xlane.f32.xlu0 %v5049_v62 }
0x210b   : > { %v5045_v1 = vpop.xlane.xlu1 %5044 }
0x210c   : > { %v5055_v51 = vmul.f32 0.03125, %v5045_v1 }
0x210d   : > { %v5048_v57 = vpop.xlane.xlu0 %5047 }
0x210e   : > { %v5059_v60 = vsub.f32 %v9844_v43, %v5055_v51  ;;  %v5056_v27 = vmul.f32 0.03125, %v5048_v57 }
0x210f   : > { %v5054_v29 = vpop.xlane.xlu1 %5053 }
0x2110   : > { %v5060_v30 = vsub.f32 %v9849_v46, %v5056_v27  ;;  %v5058_v59 = vmul.f32 0.03125, %v5054_v29  ;;  %v5063_v0 = vmul.f32 %v5059_v60, %v5059_v60 }
0x2111   : > { %v5051_v48 = vpop.xlane.xlu0 %5050 }
0x2112   : > { %v5062_v50 = vsub.f32 %v9847_v45, %v5058_v59  ;;  %v5057_v52 = vmul.f32 0.03125, %v5051_v48  ;;  %v5067_v53 = vsel %vm2144_vm3, %v5063_v0, 0.0  ;;  %v5064_v35 = vmul.f32 %v5060_v30, %v5060_v30 }
0x2113   : > { %5068 = vadd.xlane.f32.xlu0 %v5067_v53 }
0x2114   : > { %v5061_v34 = vsub.f32 %v9853_v49, %v5057_v52  ;;  %v5070_v54 = vsel %vm2144_vm3, %v5064_v35, 0.0  ;;  %v5066_v56 = vmul.f32 %v5062_v50, %v5062_v50 }
0x2115   : > { %5071 = vadd.xlane.f32.xlu1 %v5070_v54 }
0x2116   : > { %v5065_v58 = vmul.f32 %v5061_v34, %v5061_v34  ;;  %v5076_v3 = vsel %vm2144_vm3, %v5066_v56, 0.0 }
0x2118   : > { %v5073_v5 = vsel %vm2144_vm3, %v5065_v58, 0.0 }
0x2119   : > { %5077 = vadd.xlane.f32.xlu1 %v5076_v3  ;;  %5074 = vadd.xlane.f32.xlu0 %v5073_v5 }
0x21a0   : > { %v5069_v10 = vpop.xlane.xlu0 %5068 }
0x21a1   : > { %v5079_v11 = vmul.f32 0.03125, %v5069_v10 }
0x21a2   : > { %v5072_v12 = vpop.xlane.xlu1 %5071 }
0x21a3   : > { %v5083_v13 = vadd.f32 1e-05, %v5079_v11  ;;  %v5080_v15 = vmul.f32 0.03125, %v5072_v12 }
0x21a5   : > { %7176 = vrsqrt.f32 %v5083_v13  ;;  %v5084_v22 = vadd.f32 1e-05, %v5080_v15 }
0x21a6   : > { %v5078_v14 = vpop.xlane.xlu1 %5077  ;;  %v5075_v19 = vpop.xlane.xlu0 %5074 }
0x21a7   : > { %7178 = vrsqrt.f32 %v5084_v22  ;;  %v5082_v16 = vmul.f32 0.03125, %v5078_v14  ;;  %v5081_v32 = vmul.f32 0.03125, %v5075_v19 }
0x21a9   : > { %v5086_v17 = vadd.f32 1e-05, %v5082_v16  ;;  %v5085_v63 = vadd.f32 1e-05, %v5081_v32 }
0x21ab   : > { %7180 = vrsqrt.f32 %v5086_v17 }
0x21ac   : > { %7182 = vrsqrt.f32 %v5085_v63 }
0x21af   : > { %v7177_v2 = vpop.eup %7176 }
0x21b0   : > { %v5091_v18 = vmul.f32 %v7177_v2, %v5059_v60 }
0x21b1   : > { %v7179_v20 = vpop.eup %7178 }
0x21b2   : > { %v5092_v21 = vmul.f32 %v7179_v20, %v5060_v30  ;;  %v5101_v23 = vmul.f32 %v6221_v4, %v5091_v18 }
0x21b4   : > { %v5102_v25 = vmul.f32 %v6221_v4, %v5092_v21  ;;  %v5111_v28 = vadd.f32 %v6222_v24, %v5101_v23 }
0x21b5   : > { %v7181_v26 = vpop.eup %7180 }
0x21b6   : > { %v7183_v6 = vpop.eup %7182  ;;  %v5094_v7 = vmul.f32 %v7181_v26, %v5062_v50  ;;  %v5112_v31 = vadd.f32 %v6222_v24, %v5102_v25 }
0x21b7   : > { %v5093_v33 = vmul.f32 %v7183_v6, %v5061_v34 }
0x21b8   : > { %v5104_v36 = vmul.f32 %v6221_v4, %v5094_v7  ;;  %v5120_v37 = vpack.c.bf16 %v5112_v31, %v5111_v28  ;;  %v6228_v28 = vld [vmem:[%s10117_s5] ss:$0 sm:$0xff] }
0x21b9   : > { %v5103_v38 = vmul.f32 %v6221_v4, %v5093_v33 }
0x21ba   : > { %6675 = vmatprep.mubr.msk.bf16.mxu0 %vm2144_vm3, %v5120_v37  ;;  %v5114_v39 = vadd.f32 %v6222_v24, %v5104_v36 }
0x21bb   : > { %v5113_v40 = vadd.f32 %v6222_v24, %v5103_v38 }
0x21bd   : > { %v5121_v41 = vpack.c.bf16 %v5114_v39, %v5113_v40 }
0x21bf   : > { %6676 = vmatmul.mubr.msk.bf16.vlgmr.msra.gmra.mrb[80].mxu0 %vm2144_vm3, %v5121_v41 }
0x21c0   : > { %6680 = vmatpush3.bf16.msra.mxu0 %v7028_v42 }
0x21c1   : > { %6681 = vmatprep.subr.bf16.mxu0 %v7029_v44 }
0x21c4   : > { %6682 = vmatpush3.bf16.msra.mxu0 %v7029_v44 }
0x21c5   : > { %6683 = vmatprep.subr.bf16.mxu0 %v7030_v47 }
0x21c8   : > { %6684 = vmatpush3.bf16.msra.mxu0 %v7030_v47 }
0x21c9   : > { %6685 = vmatprep.subr.bf16.mxu0 %v7031_v55 }
0x21cc   : > { %6686 = vmatpush3.bf16.msra.mxu0 %v7031_v55 }
0x2292   : > { %v6677_v62 = vpop.f32.mrb[80].mxu0 }
0x2293   : > { %v5189_v1 = vadd.f32 %v6677_v62, %v6223_v61  ;;  %v5180_v51 = vpop.f32.mrb[81].mxu0 }
0x2294   : > { %v5181_v57 = vadd.f32 %v6223_v61, %v5180_v51  ;;  %v6678_v60 = vpop.f32.mrb[82].mxu0 }
0x2295   : > { %v5197_v27 = vmul.f32 %v5189_v1, %v5189_v1  ;;  %v5192_v29 = vadd.f32 %v6678_v60, %v6223_v61  ;;  %v5183_v30 = vpop.f32.mrb[83].mxu0 }
0x2296   : > { %v5195_v59 = vmul.f32 %v5181_v57, %v5181_v57  ;;  %v5184_v0 = vadd.f32 %v6223_v61, %v5183_v30 }
0x2297   : > { %v5201_v48 = vmul.f32 %v5197_v27, %v5189_v1  ;;  %v5198_v50 = vmul.f32 %v5192_v29, %v5192_v29 }
0x2298   : > { %v5199_v52 = vmul.f32 %v5195_v59, %v5181_v57  ;;  %v5196_v53 = vmul.f32 %v5184_v0, %v5184_v0 }
0x2299   : > { %v5205_v35 = vmul.f32 0.044715, %v5201_v48  ;;  %v5202_v34 = vmul.f32 %v5198_v50, %v5192_v29 }
0x229a   : > { %v5203_v54 = vmul.f32 0.044715, %v5199_v52  ;;  %v5200_v56 = vmul.f32 %v5196_v53, %v5184_v0 }
0x229b   : > { %v5209_v58 = vadd.f32 %v5205_v35, %v5189_v1  ;;  %v5206_v3 = vmul.f32 0.044715, %v5202_v34 }
0x229c   : > { %v5207_v5 = vadd.f32 %v5203_v54, %v5181_v57  ;;  %v5204_v8 = vmul.f32 0.044715, %v5200_v56 }
0x229d   : > { %v5213_v9 = vmul.f32 0.7978846, %v5209_v58  ;;  %v5210_v10 = vadd.f32 %v5206_v3, %v5192_v29  ;;  %v7196_v3 = vld [vmem:[#allocation43] sm:$0xff] (!%p6235_p2)  }
0x229e   : > { %v5211_v11 = vmul.f32 0.7978846, %v5207_v5  ;;  %v5208_v12 = vadd.f32 %v5204_v8, %v5184_v0  ;;  %v7197_v5 = vld [vmem:[#allocation43 + $0x8] sm:$0xff] (!%p6235_p2)   ;;  %6691 = vmatprep.subr.bf16.mxu0 (!%p6235_p2), %v7196_v3 }
0x229f   : > { %7184 = vtanh.f32 %v5213_v9  ;;  %v5214_v13 = vmul.f32 0.7978846, %v5210_v10 }
0x22a0   : > { %7186 = vtanh.f32 %v5211_v11  ;;  %v5212_v15 = vmul.f32 0.7978846, %v5208_v12 }
0x22a1   : > { %7188 = vtanh.f32 %v5214_v13 }
0x22a2   : > { %7190 = vtanh.f32 %v5212_v15 }
0x22a9   : > { %v7185_v22 = vpop.eup %7184 }
0x22aa   : > { %v7187_v14 = vpop.eup %7186  ;;  %v5221_v19 = vadd.f32 1.0, %v7185_v22 }
0x22ab   : > { %v7189_v16 = vpop.eup %7188  ;;  %v5219_v32 = vadd.f32 1.0, %v7187_v14 }
0x22ac   : > { %v7191_v17 = vpop.eup %7190  ;;  %v5225_v63 = vmul.f32 0.5, %v5221_v19  ;;  %v5222_v2 = vadd.f32 1.0, %v7189_v16 }
0x22ad   : > { %v5223_v4 = vmul.f32 0.5, %v5219_v32  ;;  %v5220_v18 = vadd.f32 1.0, %v7191_v17 }
0x22ae   : > { %v5226_v20 = vmul.f32 0.5, %v5222_v2  ;;  %v5229_v23 = vmul.f32 %v5225_v63, %v5189_v1  ;;  %v6236_v2 = vld [vmem:[#allocation41] ss:$0 sm:$0xff] (!%p6235_p2) }
0x22af   : > { %v5224_v21 = vmul.f32 0.5, %v5220_v18  ;;  %v5227_v25 = vmul.f32 %v5223_v4, %v5181_v57 }
0x22b0   : > { %v5230_v24 = vmul.f32 %v5226_v20, %v5192_v29 }
0x22b1   : > { %v5228_v26 = vmul.f32 %v5224_v21, %v5184_v0 }
0x22b2   : > { %v5241_v6 = vpack.c.bf16 %v5230_v24, %v5229_v23  ;;  %v6237_v23 = vld [vmem:[#allocation42] ss:$0 sm:$0xff] (!%p6235_p2) }
0x22b3   : > { %v5240_v7 = vpack.c.bf16 %v5228_v26, %v5227_v25 }
0x22b5   : > { %6687 = vmatprep.mubr.msk.bf16.mxu0 %vm5272_vm8, %v5240_v7 }
0x22b6   : > { %6688 = vmatmul.mubr.msk.bf16.vlgmr.msra.gmra.mrb[84].mxu0 %vm5272_vm8, %v5241_v6 }
0x22b7   : > { %6692 = vmatpush3.bf16.msra.mxu0 (!%p6235_p2), %v7196_v3 }
0x22b8   : > { %6693 = vmatprep.subr.bf16.mxu0 (!%p6235_p2), %v7197_v5 }
0x22bb   : > { %6694 = vmatpush3.bf16.msra.mxu0 (!%p6235_p2), %v7197_v5 }
0x2389   : > { %v6689_v31 = vpop.f32.mrb[84].mxu0 }
0x238a   : > { %v5322_v33 = vadd.f32 %v6689_v31, %v6228_v28  ;;  %v5313_v36 = vpop.f32.mrb[85].mxu0 }
0x238b   : > { %v5314_v37 = vadd.f32 %v6228_v28, %v5313_v36  ;;  %v6690_v38 = vpop.f32.mrb[86].mxu0  ;;  %5339 = sbr.rel (%p6235_p2) target bundleno = 9644 (0x25ac), region = 300 }
0x238c   : > { %v5330_v39 = vadd.f32 %v5322_v33, %v9853_v49  ;;  %v5325_v40 = vadd.f32 %v6690_v38, %v6228_v28  ;;  %v5316_v41 = vpop.f32.mrb[87].mxu0 }
0x238d   : > { %v5328_v42 = vadd.f32 %v5314_v37, %v9844_v43  ;;  %v5317_v44 = vadd.f32 %v6228_v28, %v5316_v41 }
0x238e   : > { %5334 = vst.msk [vmem:[#allocation2 + $0x10] sm:$0xff] %vm2144_vm3, %v5330_v39  ;;  %v5331_v47 = vadd.f32 %v5325_v40, %v9847_v45  ;;  %v5348_v43 = vsel (!%p6235_p2), %vm2144_vm3, %v5330_v39, 0.0  ;;  %v6238_v40 = vld [vmem:[#allocation44] ss:$0 sm:$0xff] (!%p6235_p2) }
0x238f   : > { %5332 = vst.msk [vmem:[#allocation2] sm:$0xff] %vm2144_vm3, %v5328_v42  ;;  %v5329_v55 = vadd.f32 %v5317_v44, %v9849_v46  ;;  %v5342_v49 = vsel (!%p6235_p2), %vm2144_vm3, %v5328_v42, 0.0  ;;  %5349 = vadd.xlane.f32.xlu1 (!%p6235_p2), %v5348_v43 }
0x2390   : > { %5335 = vst.msk [vmem:[#allocation2 + $0x18] sm:$0xff] %vm2144_vm3, %v5331_v47  ;;  %5343 = vadd.xlane.f32.xlu0 (!%p6235_p2), %v5342_v49  ;;  %v5351_v45 = vsel (!%p6235_p2), %vm2144_vm3, %v5331_v47, 0.0 }
0x2391   : > { %5333 = vst.msk [vmem:[#allocation2 + $0x8] sm:$0xff] %vm2144_vm3, %v5329_v55  ;;  %v5345_v61 = vsel (!%p6235_p2), %vm2144_vm3, %v5329_v55, 0.0 }
0x2393   : > { %5352 = vadd.xlane.f32.xlu1 %v5351_v45 }
0x2394   : > { %5346 = vadd.xlane.f32.xlu0 %v5345_v61 }
0x241c   : > { %v5350_v62 = vpop.xlane.xlu1 %5349 }
0x241d   : > { %v5344_v46 = vpop.xlane.xlu0 %5343  ;;  %v5356_v51 = vmul.f32 0.03125, %v5350_v62 }
0x241e   : > { %v5354_v1 = vmul.f32 0.03125, %v5344_v46 }
0x241f   : > { %v5360_v60 = vsub.f32 %v5330_v39, %v5356_v51 }
0x2420   : > { %v5358_v57 = vsub.f32 %v5328_v42, %v5354_v1  ;;  %v5353_v29 = vpop.xlane.xlu1 %5352 }
0x2421   : > { %v5347_v27 = vpop.xlane.xlu0 %5346  ;;  %v5357_v59 = vmul.f32 0.03125, %v5353_v29  ;;  %v5364_v48 = vmul.f32 %v5360_v60, %v5360_v60 }
0x2422   : > { %v5355_v30 = vmul.f32 0.03125, %v5347_v27  ;;  %v5362_v0 = vmul.f32 %v5358_v57, %v5358_v57 }
0x2423   : > { %v5361_v52 = vsub.f32 %v5331_v47, %v5357_v59  ;;  %v5372_v35 = vsel %vm2144_vm3, %v5364_v48, 0.0 }
0x2424   : > { %v5359_v50 = vsub.f32 %v5329_v55, %v5355_v30  ;;  %v5366_v53 = vsel %vm2144_vm3, %v5362_v0, 0.0 }
0x2425   : > { %5367 = vadd.xlane.f32.xlu0 %v5366_v53  ;;  %v5365_v54 = vmul.f32 %v5361_v52, %v5361_v52 }
0x2426   : > { %v5363_v34 = vmul.f32 %v5359_v50, %v5359_v50 }
0x2427   : > { %v5375_v58 = vsel %vm2144_vm3, %v5365_v54, 0.0 }
0x2428   : > { %v5369_v56 = vsel %vm2144_vm3, %v5363_v34, 0.0 }
0x2429   : > { %5373 = vadd.xlane.f32.xlu0 %v5372_v35  ;;  %5370 = vadd.xlane.f32.xlu1 %v5369_v56 }
0x242d   : > { %5376 = vadd.xlane.f32.xlu1 %v5375_v58 }
0x24b2   : > { %v5368_v8 = vpop.xlane.xlu0 %5367 }
0x24b3   : > { %v5378_v9 = vmul.f32 0.03125, %v5368_v8 }
0x24b5   : > { %v5382_v10 = vadd.f32 1e-05, %v5378_v9 }
0x24b6   : > { %v5371_v11 = vpop.xlane.xlu1 %5370  ;;  %v5374_v12 = vpop.xlane.xlu0 %5373 }
0x24b7   : > { %7198 = vrsqrt.f32 %v5382_v10  ;;  %v5379_v13 = vmul.f32 0.03125, %v5371_v11  ;;  %v5380_v15 = vmul.f32 0.03125, %v5374_v12 }
0x24b9   : > { %v5383_v22 = vadd.f32 1e-05, %v5379_v13  ;;  %v5384_v14 = vadd.f32 1e-05, %v5380_v15 }
0x24ba   : > { %v5377_v19 = vpop.xlane.xlu1 %5376 }
0x24bb   : > { %7200 = vrsqrt.f32 %v5383_v22  ;;  %v5381_v16 = vmul.f32 0.03125, %v5377_v19 }
0x24bc   : > { %7202 = vrsqrt.f32 %v5384_v14 }
0x24bd   : > { %v5385_v32 = vadd.f32 1e-05, %v5381_v16 }
0x24bf   : > { %7204 = vrsqrt.f32 %v5385_v32 }
0x24c1   : > { %v7199_v17 = vpop.eup %7198 }
0x24c2   : > { %v5390_v63 = vmul.f32 %v7199_v17, %v5358_v57 }
0x24c4   : > { %v5400_v21 = vmul.f32 %v6236_v2, %v5390_v63 }
0x24c5   : > { %v7201_v4 = vpop.eup %7200 }
0x24c6   : > { %v7203_v18 = vpop.eup %7202  ;;  %v5391_v20 = vmul.f32 %v7201_v4, %v5359_v50  ;;  %v5410_v6 = vadd.f32 %v6237_v23, %v5400_v21 }
0x24c7   : > { %v5392_v24 = vmul.f32 %v7203_v18, %v5360_v60 }
0x24c8   : > { %v5401_v25 = vmul.f32 %v6236_v2, %v5391_v20 }
0x24c9   : > { %v7205_v26 = vpop.eup %7204  ;;  %v5402_v31 = vmul.f32 %v6236_v2, %v5392_v24 }
0x24ca   : > { %v5411_v7 = vadd.f32 %v6237_v23, %v5401_v25  ;;  %v5393_v28 = vmul.f32 %v7205_v26, %v5361_v52 }
0x24cb   : > { %v5412_v37 = vadd.f32 %v6237_v23, %v5402_v31 }
0x24cc   : > { %v5419_v33 = vpack.c.bf16 %v5411_v7, %v5410_v6  ;;  %v5403_v36 = vmul.f32 %v6236_v2, %v5393_v28 }
0x24ce   : > { %6695 = vmatprep.mubr.msk.bf16.mxu0 %vm2144_vm3, %v5419_v33  ;;  %v5413_v38 = vadd.f32 %v6237_v23, %v5403_v36 }
0x24d0   : > { %v5420_v39 = vpack.c.bf16 %v5413_v38, %v5412_v37 }
0x24d2   : > { %6696 = vmatmul.mubr.msk.bf16.vlgmr.msra.gmra.mrb[0].mxu0 %vm2144_vm3, %v5420_v39 }
0x25a5   : > { %v6697_v41 = vpop.f32.mrb[0].mxu0 }
0x25a6   : > { %v5488_v42 = vadd.f32 %v6697_v41, %v6238_v40  ;;  %v5479_v44 = vpop.f32.mrb[1].mxu0 }
0x25a7   : > { %v5480_v47 = vadd.f32 %v6238_v40, %v5479_v44  ;;  %v6698_v55 = vpop.f32.mrb[2].mxu0 }
0x25a8   : > { %5496 = vst.msk [vmem:[#allocation45 + $0x10] sm:$0xff] %vm5272_vm8, %v5488_v42  ;;  %v5491_v49 = vadd.f32 %v6698_v55, %v6238_v40  ;;  %v5482_v43 = vpop.f32.mrb[3].mxu0 }
0x25a9   : > { %5494 = vst.msk [vmem:[#allocation45] sm:$0xff] %vm5272_vm8, %v5480_v47  ;;  %v5483_v61 = vadd.f32 %v6238_v40, %v5482_v43 }
0x25aa   : > { %5497 = vst.msk [vmem:[#allocation45 + $0x18] sm:$0xff] %vm5272_vm8, %v5491_v49 }
0x25ab   : > { %5495 = vst.msk [vmem:[#allocation45 + $0x8] sm:$0xff] %vm5272_vm8, %v5483_v61 }
0x25ac PF: > { %p6902_p3 = scmp.eq.s32.totalorder %s8555_s0, 1  ;;  %s8353_s14 = smov [#allocation45]  }
0x25ad   : > { %s5504_s3 = sshll.u32 %s8353_s14, 4  ;;  %s5505_s3 = int_to_ptr.vmem [resolvable:$true] %s5504_s3 }
0x25ae   : > { %s8158_s28 = scalar_lea.vmem %s5505_s3, 512  ;;  %p8165_p9 = scmp.lt.s32.totalorder %s5505_s3, %s5505_s3 }
0x25af   : > { %p8159_p5 = scmp.ne.s32.totalorder %s5505_s3, %s8158_s28  ;;  %p8166_p10 = scmp.lt.s32.totalorder %s8158_s28, %s8158_s28 }
0x25b1   : > { %p8160_p8 = pnand %p8159_p5, %p6902_p3  ;;  %p8167_p7 = por %p8166_p10, %p8165_p9 }
0x25b3   : > { %p8161_p6 = pneg %p8160_p8 }
0x25b5   : > { %p8168_p4 = pnand %p8167_p7, %p8161_p6 }
0x25b7   : > { %8171 = shalt.err (!%p8168_p4)
}
0x25b8   : > { %s10118_s2 = sld [smem:[#allocation86_spill]] }
0x25be   : > { %s8172_s10 = scalar_lea.hbm %s10118_s2, 512 }
0x25bf   : > { %p8173_p11 = scmp.ne.s32.totalorder %s10118_s2, %s8172_s10  ;;  %p8178_p1 = scmp.lt.u32.totalorder %s8172_s10, %s10118_s2 }
0x25c1   : > { %p8174_p12 = pnand %p8173_p11, %p6902_p3 }
0x25c3   : > { %p8175_p0 = pneg %p8174_p12 }
0x25c5   : > { %p8180_p13 = pnand %p8178_p1, %p8175_p0 }
0x25c7   : > { %8183 = shalt.err (!%p8180_p13)
}
0x25c8   : > { %s8354_s1 = smov 128   ;;  %s8355_s19 = smov 8  }
0x25c9   : > { %6828 = dma.vmem_to_hbm [thread:$0]  (%p6902_p3), %s5505_s3, 512, %s10118_s2, [#allocation6], %s8354_s1, %s8354_s1, %s8355_s19  }
0x25ca   : > { %8245 = dma.done.wait (%p6902_p3), [#allocation6], 512  }
0x25cb   : > { %8247 = vsyncadd (%p6902_p3), [#allocation6], 4294966784 }
0x25cc PF: > { %s10119_s22 = sld [smem:[#allocation88_spill]]  ;;  %s10120_s15 = sld [smem:[#allocation87_spill]] }
0x25cd   : > { %s10121_s17 = sld [smem:[#allocation89_spill]]  ;;  %s10122_s16 = smov %s8258_s18 }
0x25d2   : > { %p83_p2 = scmp.ge.s32.totalorder %s10119_s22, 4  }
0x25d3   : > { %s10123_s18 = smov %s10121_s17 }
0x25d4   :  { %85 = sbr.rel (!%p83_p2) target bundleno = 82 (0x52), region = 501 }
0x25db   :  { %5520 = vsyncpa [#allocation5], 1 }
0x25dc   :  { %5522 = vsyncpa [#allocation5 + $0x1], 1 }
0x25dd   :  { %5523 = vsyncpa [#allocation8], 1 }
0x25de   :  { %5524 = vsyncpa [#allocation11], 1 }
0x25df   :  { %5525 = vsyncpa [#allocation14], 1 }
0x25e0   :  { %5526 = vsyncpa [#allocation17], 1 }
0x25e1   :  { %5527 = vsyncpa [#allocation20], 1 }
0x25e2   :  { %5528 = vsyncpa [#allocation6], 1 }
0x25e3   :  { %5530 = vsyncpa [#allocation6 + $0x1], 1 }

</bundles_post_ra>
